<compile_context>
chip_gen: v7x
topology: tpu7x:2x2x1
jax: 0.10.0
libtpu: 0.0.40
codegen_flags: <defaults>
</compile_context>

<pallas_src>
import math
from functools import partial

import numpy as np
import jax
import jax.numpy as jnp
from jax.experimental import pallas as pl
from jax.experimental.pallas import tpu as pltpu

EPS = 1e-5                              # nn.BatchNorm2d default
VMEM_LIMIT = 48 * 1024 * 1024           # > v5e 16MiB / v6e-v7x 32MiB scoped defaults,
                                        # < v7x 64MiB physical VMEM


def _mosaic(sem):
    return pltpu.CompilerParams(dimension_semantics=sem,
                                vmem_limit_bytes=VMEM_LIMIT)


# ----------------------------- Pallas kernels -----------------------------

def _stats_kernel(x_ref, sum_ref, ssq_ref):
    """Per-tile partial sum / sum-of-squares (finalized to mean/var in JAX glue)."""
    x = x_ref[...]
    sum_ref[...] = jnp.sum(x, axis=0, keepdims=True)
    ssq_ref[...] = jnp.sum(x * x, axis=0, keepdims=True)


def _shrink_kernel(x_ref, s_ref, b_ref, w_ref, c_ref, y_ref, sum_ref, ssq_ref):
    """y = relu6(x*s + b) @ W + c (bf16 MXU operands, f32 acc) + per-tile stats of y."""
    h = jnp.clip(x_ref[...] * s_ref[...] + b_ref[...], 0.0, 6.0)
    y = jnp.dot(h.astype(w_ref.dtype), w_ref[...],
                preferred_element_type=jnp.float32) + c_ref[...]
    y_ref[...] = y
    sum_ref[...] = jnp.sum(y, axis=0, keepdims=True)
    ssq_ref[...] = jnp.sum(y * y, axis=0, keepdims=True)


def _conv3x3s2_stats_kernel(s0_ref, s1_ref, w_ref, b_ref,
                            y_ref, sum_ref, ssq_ref, *, wo, tr, align):
    """3x3 stride-2 conv: 3 per-kh matmuls with K = 3*Cin over pre-gathered parity
    slabs (kw folded into channels), row-tiled; plus per-tile stats of the result."""
    start = pl.program_id(1) * tr
    if align > 1:
        start = pl.multiple_of(start, align)
    cout = w_ref.shape[-1]
    acc = jnp.zeros((tr, cout), jnp.float32) + b_ref[...]
    slabs = (s0_ref, s1_ref)                      # indexed by kh % 2
    for kh in range(3):
        tap = slabs[kh % 2][pl.ds(start + (kh // 2) * wo, tr), :]   # bf16
        acc = acc + jnp.dot(tap, w_ref[kh], preferred_element_type=jnp.float32)
    y_ref[...] = acc
    sum_ref[...] = jnp.sum(acc, axis=0, keepdims=True)
    ssq_ref[...] = jnp.sum(acc * acc, axis=0, keepdims=True)


def _expand_shortcut_kernel(y_ref, s_ref, b_ref, we_ref, ce_ref,
                            x0_ref, x1_ref, ws_ref, cs_ref, o_ref, *, wo, tr, align):
    """out = relu6(y*s + b) @ We + ce  +  conv3x3s2(x) (kw-folded taps) + cs (fused)."""
    start = pl.program_id(1) * tr
    if align > 1:
        start = pl.multiple_of(start, align)
    h = jnp.clip(y_ref[...] * s_ref[...] + b_ref[...], 0.0, 6.0)
    acc = jnp.dot(h.astype(we_ref.dtype), we_ref[...],
                  preferred_element_type=jnp.float32) + ce_ref[...] + cs_ref[...]
    slabs = (x0_ref, x1_ref)
    for kh in range(3):
        tap = slabs[kh % 2][pl.ds(start + (kh // 2) * wo, tr), :]
        acc = acc + jnp.dot(tap, ws_ref[kh], preferred_element_type=jnp.float32)
    o_ref[...] = acc


# ----------------------------- tiling helpers -----------------------------

def _pick_row_tile(rows, target):
    """Largest tile <= target that divides rows and keeps the sublane dim 8-aligned."""
    t = min(target, rows)
    while t > 1:
        if rows % t == 0 and (t % 8 == 0 or t == rows):
            return t
        t -= 1
    return rows


def _pick_conv_row_tile(ho, wo, target):
    """Largest multiple of wo that divides ho*wo and is <= target (keeps the kh=2 tap
    offset a static +wo and the output blocks non-overlapping)."""
    max_k = max(1, min(ho, target // wo if target >= wo else 1))
    for k in range(max_k, 0, -1):
        if ho % k == 0:
            return k * wo
    return wo


def _finalize_stats(sums, ssqs, count):
    """Combine per-tile partial sums -> mean / biased variance (tiny, runs in XLA)."""
    s = jnp.sum(sums, axis=0)                   # (1, C)
    ss = jnp.sum(ssqs, axis=0)                  # (1, C)
    m = s * (1.0 / count)
    v = ss * (1.0 / count) - m * m
    return m, v


def _parity_slabs_kwfold(x_nhwc, dtype):
    """Zero-pad H/W by 1 and pre-gather the 2 row-parity slabs of a 3x3 stride-2 conv
    with the 3 kw column taps stacked channel-wise (last dim = 3*Cin).  Each slab is
    flattened per image so every in-kernel tap is a contiguous row slice; the kh=2 tap
    is the same slab shifted by +wo rows.  Total bytes ~1.5x the input (no 9x im2col)."""
    n, h, w, c = x_nhwc.shape
    ho, wo = h // 2, w // 2
    xp = jnp.pad(x_nhwc, ((0, 0), (1, 1), (1, 1), (0, 0)))
    slabs = []
    for p in (0, 1):                            # row parity = kh % 2
        taps = [xp[:, p::2, kw:kw + 2 * wo:2, :] for kw in range(3)]  # (n, ho+1, wo, c)
        s = jnp.concatenate(taps, axis=-1)                            # (n, ho+1, wo, 3c)
        slabs.append(s.reshape(n, (ho + 1) * wo, 3 * c).astype(dtype))
    return slabs, ho, wo


# ----------------------------- pallas_call wrappers -----------------------------

def _batch_stats(x2d, tile):
    rows, c = x2d.shape
    nt = rows // tile
    part = pl.BlockSpec((None, 1, c), lambda i: (i, 0, 0))
    sums, ssqs = pl.pallas_call(
        _stats_kernel,
        grid=(nt,),
        in_specs=[pl.BlockSpec((tile, c), lambda i: (i, 0))],
        out_specs=(part, part),
        out_shape=(jax.ShapeDtypeStruct((nt, 1, c), jnp.float32),
                   jax.ShapeDtypeStruct((nt, 1, c), jnp.float32)),
        compiler_params=_mosaic(("parallel",)),
    )(x2d)
    return sums, ssqs


def _shrink(x2d, s1, b1, w_bf16, bias, tile):
    rows, c = x2d.shape
    cc = w_bf16.shape[1]
    nt = rows // tile
    vec = lambda k: pl.BlockSpec((1, k), lambda i: (0, 0))
    part = pl.BlockSpec((None, 1, cc), lambda i: (i, 0, 0))
    y1, sums, ssqs = pl.pallas_call(
        _shrink_kernel,
        grid=(nt,),
        in_specs=[pl.BlockSpec((tile, c), lambda i: (i, 0)),
                  vec(c), vec(c),
                  pl.BlockSpec((c, cc), lambda i: (0, 0)), vec(cc)],
        out_specs=(pl.BlockSpec((tile, cc), lambda i: (i, 0)), part, part),
        out_shape=(jax.ShapeDtypeStruct((rows, cc), jnp.float32),
                   jax.ShapeDtypeStruct((nt, 1, cc), jnp.float32),
                   jax.ShapeDtypeStruct((nt, 1, cc), jnp.float32)),
        compiler_params=_mosaic(("parallel",)),
    )(x2d, s1, b1, w_bf16, bias)
    return y1, sums, ssqs


def _conv3x3s2_with_stats(slabs, ho, wo, w3_bf16, bias, tr):
    n, srows, kin = slabs[0].shape
    cout = w3_bf16.shape[-1]
    rows = ho * wo
    nt = rows // tr
    align = math.gcd(tr, 128)                   # power-of-two alignment hint
    slab_spec = pl.BlockSpec((None, srows, kin), lambda b, t: (b, 0, 0))
    part = pl.BlockSpec((None, 1, cout), lambda b, t: (b * nt + t, 0, 0))
    y2, sums, ssqs = pl.pallas_call(
        partial(_conv3x3s2_stats_kernel, wo=wo, tr=tr, align=align),
        grid=(n, nt),
        in_specs=[slab_spec, slab_spec,
                  pl.BlockSpec((3, kin, cout), lambda b, t: (0, 0, 0)),
                  pl.BlockSpec((1, cout), lambda b, t: (0, 0))],
        out_specs=(pl.BlockSpec((None, tr, cout), lambda b, t: (b, t, 0)),
                   part, part),
        out_shape=(jax.ShapeDtypeStruct((n, rows, cout), jnp.float32),
                   jax.ShapeDtypeStruct((n * nt, 1, cout), jnp.float32),
                   jax.ShapeDtypeStruct((n * nt, 1, cout), jnp.float32)),
        compiler_params=_mosaic(("parallel", "parallel")),
    )(slabs[0], slabs[1], w3_bf16, bias)
    return y2, sums, ssqs


def _expand_plus_shortcut(y2, s3, b3, we_bf16, be, xslabs, ws_bf16, bs, ho, wo, tr):
    n, rows, cc = y2.shape
    _, sxrows, kinx = xslabs[0].shape
    cout = we_bf16.shape[-1]
    nt = rows // tr
    align = math.gcd(tr, 128)
    vec = lambda k: pl.BlockSpec((1, k), lambda b, t: (0, 0))
    xslab_spec = pl.BlockSpec((None, sxrows, kinx), lambda b, t: (b, 0, 0))
    out = pl.pallas_call(
        partial(_expand_shortcut_kernel, wo=wo, tr=tr, align=align),
        grid=(n, nt),
        in_specs=[pl.BlockSpec((None, tr, cc), lambda b, t: (b, t, 0)),
                  vec(cc), vec(cc),
                  pl.BlockSpec((cc, cout), lambda b, t: (0, 0)), vec(cout),
                  xslab_spec, xslab_spec,
                  pl.BlockSpec((3, kinx, cout), lambda b, t: (0, 0, 0)), vec(cout)],
        out_specs=pl.BlockSpec((None, tr, cout), lambda b, t: (b, t, 0)),
        out_shape=jax.ShapeDtypeStruct((n, rows, cout), jnp.float32),
        compiler_params=_mosaic(("parallel", "parallel")),
    )(y2, s3, b3, we_bf16, be, xslabs[0], xslabs[1], ws_bf16, bs)
    return out


# ----------------------------- parameters -----------------------------

def init_params(key, in_channels, expansion=2):
    c = in_channels
    cc = c // 4
    cout = c * expansion

    def kaiming_uniform(k, shape):  # PyTorch (Cout, Cin, kh, kw), fan_in, relu gain
        fan_in = int(np.prod(shape[1:]))
        bound = math.sqrt(2.0) * math.sqrt(3.0 / fan_in)
        return jax.random.uniform(k, shape, jnp.float32, -bound, bound)

    k1, k2, k3, k4 = jax.random.split(key, 4)
    w_shrink_t = kaiming_uniform(k1, (cc, c, 1, 1))
    w_3x3_t = kaiming_uniform(k2, (cc, cc, 3, 3))
    w_expand_t = kaiming_uniform(k3, (cout, cc, 1, 1))
    w_short_t = kaiming_uniform(k4, (cout, c, 3, 3))

    return {
        "bn_shrink_gamma": jnp.ones((1, c), jnp.float32),
        "bn_shrink_beta": jnp.zeros((1, c), jnp.float32),
        "bn_3x3_gamma": jnp.ones((1, cc), jnp.float32),
        "bn_3x3_beta": jnp.zeros((1, cc), jnp.float32),
        "bn_expand_gamma": jnp.ones((1, cc), jnp.float32),
        "bn_expand_beta": jnp.zeros((1, cc), jnp.float32),
        "w_shrink": jnp.transpose(w_shrink_t[:, :, 0, 0], (1, 0)),    # (C, Cc)
        "b_shrink": jnp.zeros((1, cc), jnp.float32),
        "w_3x3": jnp.transpose(w_3x3_t, (2, 3, 1, 0)),                # (3,3,Cc,Cc) HWIO
        "b_3x3": jnp.zeros((1, cc), jnp.float32),
        "w_expand": jnp.transpose(w_expand_t[:, :, 0, 0], (1, 0)),    # (Cc, Cout)
        "b_expand": jnp.zeros((1, cout), jnp.float32),
        "w_shortcut": jnp.transpose(w_short_t, (2, 3, 1, 0)),         # (3,3,C,Cout) HWIO
        "b_shortcut": jnp.zeros((1, cout), jnp.float32),
    }


# ----------------------------- forward -----------------------------

def downsample_bottleneck_forward(x_nchw, params, *, row_tile=1024, conv_row_tile=512):
    # row_tile: K0/K1 pixel-row tile (1024 is near the HBM roofline on v6e; drop
    # toward 512 on v7x's 64 MiB VMEM).  conv_row_tile: K2/K3 output-pixel tile.
    n, c, h, w = x_nchw.shape
    assert c % 4 == 0 and h % 2 == 0 and w % 2 == 0
    cc = c // 4
    cout = params["w_expand"].shape[1]
    x = jnp.transpose(x_nchw, (0, 2, 3, 1)).astype(jnp.float32)      # NHWC
    rows = n * h * w
    tile = _pick_row_tile(rows, row_tile)
    x2d = x.reshape(rows, c)

    # bf16 copies of all matmul operands (MXU-native); accumulation stays f32.
    w_shrink = params["w_shrink"].astype(jnp.bfloat16)                        # (C, Cc)
    w_3x3 = params["w_3x3"].reshape(3, 3 * cc, cc).astype(jnp.bfloat16)       # kw folded
    w_expand = params["w_expand"].astype(jnp.bfloat16)                        # (Cc, Cout)
    w_short = params["w_shortcut"].reshape(3, 3 * c, cout).astype(jnp.bfloat16)

    # (K0) per-tile partial batch stats of x for bn_shrink (finalized in glue).
    sx, ssx = _batch_stats(x2d, tile)
    m1, v1 = _finalize_stats(sx, ssx, float(rows))
    s1 = params["bn_shrink_gamma"] / jnp.sqrt(v1 + EPS)
    b1 = params["bn_shrink_beta"] - m1 * s1

    # (K1) relu6(bn_shrink(x)) @ W_shrink + b, with fused per-tile stats for bn_3x3.
    y1, sy, ssy = _shrink(x2d, s1, b1, w_shrink, params["b_shrink"], tile)
    m2, v2 = _finalize_stats(sy, ssy, float(rows))

    # bn_3x3 affine + relu6 applied as JAX glue so the zero padding of the 3x3 conv
    # stays exact; XLA fuses it into the pad/slab gather (bf16) needed anyway.
    s2 = params["bn_3x3_gamma"] / jnp.sqrt(v2 + EPS)
    b2 = params["bn_3x3_beta"] - m2 * s2
    h2 = jnp.clip(y1 * s2 + b2, 0.0, 6.0).reshape(n, h, w, cc)
    h2_slabs, ho, wo = _parity_slabs_kwfold(h2, jnp.bfloat16)
    tr = _pick_conv_row_tile(ho, wo, conv_row_tile)

    # (K2) 3x3 stride-2 conv (kw folded into K), row-tiled, fused stats for bn_expand.
    y2, s2s, ss2s = _conv3x3s2_with_stats(h2_slabs, ho, wo, w_3x3, params["b_3x3"], tr)
    m3, v3 = _finalize_stats(s2s, ss2s, float(n * ho * wo))

    # (K3) relu6(bn_expand(y2)) @ W_expand + 3x3 stride-2 shortcut conv(x) + add.
    s3 = params["bn_expand_gamma"] / jnp.sqrt(v3 + EPS)
    b3 = params["bn_expand_beta"] - m3 * s3
    x_slabs, _, _ = _parity_slabs_kwfold(x, jnp.bfloat16)
    out2d = _expand_plus_shortcut(y2, s3, b3, w_expand, params["b_expand"],
                                  x_slabs, w_short, params["b_shortcut"], ho, wo, tr)
    out = out2d.reshape(n, ho, wo, cout)
    return jnp.transpose(out, (0, 3, 1, 2))     # back to NCHW


# ----------------------------- pure-JAX reference -----------------------------

def reference_forward(x_nchw, params):
    x = jnp.transpose(x_nchw, (0, 2, 3, 1)).astype(jnp.float32)
    c = x.shape[-1]
    cc = c // 4
    cout = params["w_expand"].shape[1]

    def bn(v):  # gamma=1, beta=0 (init), training-mode batch stats
        m = jnp.mean(v, axis=(0, 1, 2), keepdims=True)
        var = jnp.mean((v - m) ** 2, axis=(0, 1, 2), keepdims=True)
        return (v - m) / jnp.sqrt(var + EPS)

    relu6 = lambda v: jnp.clip(v, 0.0, 6.0)

    def conv(v, w_hwio, b, stride, pad):
        o = jax.lax.conv_general_dilated(
            v, w_hwio, (stride, stride), [(pad, pad), (pad, pad)],
            dimension_numbers=("NHWC", "HWIO", "NHWC"),
            precision=jax.lax.Precision.HIGHEST)
        return o + b.reshape(1, 1, 1, -1)

    w_shrink = params["w_shrink"].reshape(1, 1, c, cc)
    w_3x3 = params["w_3x3"]                       # (3,3,cc,cc)
    w_expand = params["w_expand"].reshape(1, 1, cc, cout)
    w_short = params["w_shortcut"]                # (3,3,c,cout)

    out = conv(relu6(bn(x)), w_shrink, params["b_shrink"], 1, 0)
    out = conv(relu6(bn(out)), w_3x3, params["b_3x3"], 2, 1)
    out = conv(relu6(bn(out)), w_expand, params["b_expand"], 1, 0)
    short = conv(x, w_short, params["b_shortcut"], 2, 1)
    return jnp.transpose(out + short, (0, 3, 1, 2))


# ----------------------------- main -----------------------------

if __name__ == "__main__":
    key = jax.random.PRNGKey(0)
    kx, kp = jax.random.split(key)

    # NCHW input: in_channels=16 -> bottleneck channels=4, out_channels=32, 32 -> 16
    # spatially.  rows = 2*32*32 = 2048 -> 2 row tiles for K0/K1; ho*wo = 256 with a
    # conv row tile of 128 -> 2 row tiles per image for K2/K3 (exercises the tiling).
    N, C, H, W = 2, 16, 32, 32
    x = jax.random.normal(kx, (N, C, H, W), jnp.float32)
    params = init_params(kp, C, expansion=2)

    fwd = jax.jit(partial(downsample_bottleneck_forward,
                          row_tile=1024, conv_row_tile=128))
    out = jax.block_until_ready(fwd(x, params))
    ref = jax.block_until_ready(reference_forward(x, params))

    assert out.shape == (N, 2 * C, H // 2, W // 2), out.shape
    # bf16 matmul operands (f32 accumulation) vs f32 HIGHEST reference.
    np.testing.assert_allclose(np.asarray(out), np.asarray(ref), rtol=3e-2, atol=3e-2)
    print("KERNEL_OK")
</pallas_src>

<mosaic_0001>
module attributes {stable_mosaic.version = 11 : i64} {
  func.func @_stats_kernel(%arg0: i32, %arg1: memref<1024x16xf32, #tpu.memory_space<vmem>>, %arg2: memref<1x1x16xf32, #tpu.memory_space<vmem>>, %arg3: memref<1x1x16xf32, #tpu.memory_space<vmem>>) attributes {dimension_semantics = [#tpu.dimension_semantics<parallel>], iteration_bounds = array<i64: 2>, scalar_prefetch = 0 : i64, scratch_operands = 0 : i64, tpu.core_type = #tpu.core_type<tc>, window_params = [{transform_indices = @transform_0, window_bounds = array<i64: 1024, 16>}, {transform_indices = @transform_1, window_bounds = array<i64: 1, 1, 16>}, {transform_indices = @transform_2, window_bounds = array<i64: 1, 1, 16>}]} {
    %c0 = arith.constant 0 : index
    %c0_0 = arith.constant 0 : index
    %0 = vector.load %arg1[%c0, %c0_0] : memref<1024x16xf32, #tpu.memory_space<vmem>>, vector<1024x16xf32>
    %cst = arith.constant dense<0.000000e+00> : vector<16xf32>
    %1 = vector.multi_reduction <add>, %0, %cst [0] : vector<1024x16xf32> to vector<16xf32>
    %2 = vector.shape_cast %1 : vector<16xf32> to vector<1x16xf32>
    %c0_1 = arith.constant 0 : index
    %c0_2 = arith.constant 0 : index
    %c0_3 = arith.constant 0 : index
    %3 = vector.load %arg2[%c0_1, %c0_2, %c0_3] : memref<1x1x16xf32, #tpu.memory_space<vmem>>, vector<1x1x16xf32>
    %4 = vector.shape_cast %3 : vector<1x1x16xf32> to vector<1x16xf32>
    %5 = vector.shape_cast %2 : vector<1x16xf32> to vector<1x1x16xf32>
    tpu.vector_store %arg2[%c0_1, %c0_2, %c0_3], %5 {strides = array<i32>} : memref<1x1x16xf32, #tpu.memory_space<vmem>>, vector<1x1x16xf32>,
    %6 = arith.mulf %0, %0 : vector<1024x16xf32>
    %cst_4 = arith.constant dense<0.000000e+00> : vector<16xf32>
    %7 = vector.multi_reduction <add>, %6, %cst_4 [0] : vector<1024x16xf32> to vector<16xf32>
    %8 = vector.shape_cast %7 : vector<16xf32> to vector<1x16xf32>
    %c0_5 = arith.constant 0 : index
    %c0_6 = arith.constant 0 : index
    %c0_7 = arith.constant 0 : index
    %9 = vector.load %arg3[%c0_5, %c0_6, %c0_7] : memref<1x1x16xf32, #tpu.memory_space<vmem>>, vector<1x1x16xf32>
    %10 = vector.shape_cast %9 : vector<1x1x16xf32> to vector<1x16xf32>
    %11 = vector.shape_cast %8 : vector<1x16xf32> to vector<1x1x16xf32>
    tpu.vector_store %arg3[%c0_5, %c0_6, %c0_7], %11 {strides = array<i32>} : memref<1x1x16xf32, #tpu.memory_space<vmem>>, vector<1x1x16xf32>,
    return
  }
  func.func @transform_0(%arg0: i32) -> (i32, i32) {
    %c0_i32 = arith.constant 0 : i32
    %c0_i32_0 = arith.constant 0 : i32
    return %arg0, %c0_i32 : i32, i32
  }
  func.func @transform_1(%arg0: i32) -> (i32, i32, i32) {
    %c0_i32 = arith.constant 0 : i32
    %c0_i32_0 = arith.constant 0 : i32
    %c0_i32_1 = arith.constant 0 : i32
    return %arg0, %c0_i32, %c0_i32_0 : i32, i32, i32
  }
  func.func @transform_2(%arg0: i32) -> (i32, i32, i32) {
    %c0_i32 = arith.constant 0 : i32
    %c0_i32_0 = arith.constant 0 : i32
    %c0_i32_1 = arith.constant 0 : i32
    return %arg0, %c0_i32, %c0_i32_0 : i32, i32, i32
  }
}

module attributes {stable_mosaic.version = 11 : i64} {
  func.func @_shrink_kernel(%arg0: i32, %arg1: memref<1024x16xf32, #tpu.memory_space<vmem>>, %arg2: memref<1x16xf32, #tpu.memory_space<vmem>>, %arg3: memref<1x16xf32, #tpu.memory_space<vmem>>, %arg4: memref<16x4xbf16, #tpu.memory_space<vmem>>, %arg5: memref<1x4xf32, #tpu.memory_space<vmem>>, %arg6: memref<1024x4xf32, #tpu.memory_space<vmem>>, %arg7: memref<1x1x4xf32, #tpu.memory_space<vmem>>, %arg8: memref<1x1x4xf32, #tpu.memory_space<vmem>>) attributes {dimension_semantics = [#tpu.dimension_semantics<parallel>], iteration_bounds = array<i64: 2>, scalar_prefetch = 0 : i64, scratch_operands = 0 : i64, tpu.core_type = #tpu.core_type<tc>, window_params = [{transform_indices = @transform_0, window_bounds = array<i64: 1024, 16>}, {pipeline_mode = #tpu.pipeline_mode<synchronous>, transform_indices = @transform_1, window_bounds = array<i64: 1, 16>}, {pipeline_mode = #tpu.pipeline_mode<synchronous>, transform_indices = @transform_2, window_bounds = array<i64: 1, 16>}, {pipeline_mode = #tpu.pipeline_mode<synchronous>, transform_indices = @transform_3, window_bounds = array<i64: 16, 4>}, {pipeline_mode = #tpu.pipeline_mode<synchronous>, transform_indices = @transform_4, window_bounds = array<i64: 1, 4>}, {transform_indices = @transform_5, window_bounds = array<i64: 1024, 4>}, {transform_indices = @transform_6, window_bounds = array<i64: 1, 1, 4>}, {transform_indices = @transform_7, window_bounds = array<i64: 1, 1, 4>}]} {
    %c0 = arith.constant 0 : index
    %c0_0 = arith.constant 0 : index
    %0 = vector.load %arg1[%c0, %c0_0] : memref<1024x16xf32, #tpu.memory_space<vmem>>, vector<1024x16xf32>
    %c0_1 = arith.constant 0 : index
    %c0_2 = arith.constant 0 : index
    %1 = vector.load %arg2[%c0_1, %c0_2] : memref<1x16xf32, #tpu.memory_space<vmem>>, vector<1x16xf32>
    %2 = vector.broadcast %1 : vector<1x16xf32> to vector<1024x16xf32>
    %3 = arith.mulf %0, %2 : vector<1024x16xf32>
    %c0_3 = arith.constant 0 : index
    %c0_4 = arith.constant 0 : index
    %4 = vector.load %arg3[%c0_3, %c0_4] : memref<1x16xf32, #tpu.memory_space<vmem>>, vector<1x16xf32>
    %5 = vector.broadcast %4 : vector<1x16xf32> to vector<1024x16xf32>
    %6 = arith.addf %3, %5 : vector<1024x16xf32>
    %cst = arith.constant 0.000000e+00 : f32
    %cst_5 = arith.constant 6.000000e+00 : f32
    %7 = vector.broadcast %cst : f32 to vector<1024x16xf32>
    %8 = arith.maximumf %7, %6 : vector<1024x16xf32>
    %9 = vector.broadcast %cst_5 : f32 to vector<1024x16xf32>
    %10 = arith.minimumf %9, %8 : vector<1024x16xf32>
    %11 = arith.truncf %10 : vector<1024x16xf32> to vector<1024x16xbf16>
    %c0_6 = arith.constant 0 : index
    %c0_7 = arith.constant 0 : index
    %12 = vector.load %arg4[%c0_6, %c0_7] : memref<16x4xbf16, #tpu.memory_space<vmem>>, vector<16x4xbf16>
    %cst_8 = arith.constant dense<0.000000e+00> : vector<1024x4xf32>
    %13 = tpu.matmul %11, %12, %cst_8 {dimension_numbers = #tpu.dot_dimension_numbers<[1], [0], [0], [1], [0, 0, 1, 1], [], []>} : vector<1024x16xbf16>, vector<16x4xbf16>, vector<1024x4xf32> -> vector<1024x4xf32>
    %c0_9 = arith.constant 0 : index
    %c0_10 = arith.constant 0 : index
    %14 = vector.load %arg5[%c0_9, %c0_10] : memref<1x4xf32, #tpu.memory_space<vmem>>, vector<1x4xf32>
    %15 = vector.broadcast %14 : vector<1x4xf32> to vector<1024x4xf32>
    %16 = arith.addf %13, %15 : vector<1024x4xf32>
    %c0_11 = arith.constant 0 : index
    %c0_12 = arith.constant 0 : index
    %17 = vector.load %arg6[%c0_11, %c0_12] : memref<1024x4xf32, #tpu.memory_space<vmem>>, vector<1024x4xf32>
    tpu.vector_store %arg6[%c0_11, %c0_12], %16 {strides = array<i32>} : memref<1024x4xf32, #tpu.memory_space<vmem>>, vector<1024x4xf32>,
    %cst_13 = arith.constant dense<0.000000e+00> : vector<4xf32>
    %18 = vector.multi_reduction <add>, %16, %cst_13 [0] : vector<1024x4xf32> to vector<4xf32>
    %19 = vector.shape_cast %18 : vector<4xf32> to vector<1x4xf32>
    %c0_14 = arith.constant 0 : index
    %c0_15 = arith.constant 0 : index
    %c0_16 = arith.constant 0 : index
    %20 = vector.load %arg7[%c0_14, %c0_15, %c0_16] : memref<1x1x4xf32, #tpu.memory_space<vmem>>, vector<1x1x4xf32>
    %21 = vector.shape_cast %20 : vector<1x1x4xf32> to vector<1x4xf32>
    %22 = vector.shape_cast %19 : vector<1x4xf32> to vector<1x1x4xf32>
    tpu.vector_store %arg7[%c0_14, %c0_15, %c0_16], %22 {strides = array<i32>} : memref<1x1x4xf32, #tpu.memory_space<vmem>>, vector<1x1x4xf32>,
    %23 = arith.mulf %16, %16 : vector<1024x4xf32>
    %cst_17 = arith.constant dense<0.000000e+00> : vector<4xf32>
    %24 = vector.multi_reduction <add>, %23, %cst_17 [0] : vector<1024x4xf32> to vector<4xf32>
    %25 = vector.shape_cast %24 : vector<4xf32> to vector<1x4xf32>
    %c0_18 = arith.constant 0 : index
    %c0_19 = arith.constant 0 : index
    %c0_20 = arith.constant 0 : index
    %26 = vector.load %arg8[%c0_18, %c0_19, %c0_20] : memref<1x1x4xf32, #tpu.memory_space<vmem>>, vector<1x1x4xf32>
    %27 = vector.shape_cast %26 : vector<1x1x4xf32> to vector<1x4xf32>
    %28 = vector.shape_cast %25 : vector<1x4xf32> to vector<1x1x4xf32>
    tpu.vector_store %arg8[%c0_18, %c0_19, %c0_20], %28 {strides = array<i32>} : memref<1x1x4xf32, #tpu.memory_space<vmem>>, vector<1x1x4xf32>,
    return
  }
  func.func @transform_0(%arg0: i32) -> (i32, i32) {
    %c0_i32 = arith.constant 0 : i32
    %c0_i32_0 = arith.constant 0 : i32
    return %arg0, %c0_i32 : i32, i32
  }
  func.func @transform_1(%arg0: i32) -> (i32, i32) {
    %c0_i32 = arith.constant 0 : i32
    %c0_i32_0 = arith.constant 0 : i32
    %c0_i32_1 = arith.constant 0 : i32
    return %c0_i32, %c0_i32_0 : i32, i32
  }
  func.func @transform_2(%arg0: i32) -> (i32, i32) {
    %c0_i32 = arith.constant 0 : i32
    %c0_i32_0 = arith.constant 0 : i32
    %c0_i32_1 = arith.constant 0 : i32
    return %c0_i32, %c0_i32_0 : i32, i32
  }
  func.func @transform_3(%arg0: i32) -> (i32, i32) {
    %c0_i32 = arith.constant 0 : i32
    %c0_i32_0 = arith.constant 0 : i32
    %c0_i32_1 = arith.constant 0 : i32
    return %c0_i32, %c0_i32_0 : i32, i32
  }
  func.func @transform_4(%arg0: i32) -> (i32, i32) {
    %c0_i32 = arith.constant 0 : i32
    %c0_i32_0 = arith.constant 0 : i32
    %c0_i32_1 = arith.constant 0 : i32
    return %c0_i32, %c0_i32_0 : i32, i32
  }
  func.func @transform_5(%arg0: i32) -> (i32, i32) {
    %c0_i32 = arith.constant 0 : i32
    %c0_i32_0 = arith.constant 0 : i32
    return %arg0, %c0_i32 : i32, i32
  }
  func.func @transform_6(%arg0: i32) -> (i32, i32, i32) {
    %c0_i32 = arith.constant 0 : i32
    %c0_i32_0 = arith.constant 0 : i32
    %c0_i32_1 = arith.constant 0 : i32
    return %arg0, %c0_i32, %c0_i32_0 : i32, i32, i32
  }
  func.func @transform_7(%arg0: i32) -> (i32, i32, i32) {
    %c0_i32 = arith.constant 0 : i32
    %c0_i32_0 = arith.constant 0 : i32
    %c0_i32_1 = arith.constant 0 : i32
    return %arg0, %c0_i32, %c0_i32_0 : i32, i32, i32
  }
}

module attributes {stable_mosaic.version = 11 : i64} {
  func.func @_expand_shortcut_kernel(%arg0: i32, %arg1: i32, %arg2: memref<1x128x4xf32, #tpu.memory_space<vmem>>, %arg3: memref<1x4xf32, #tpu.memory_space<vmem>>, %arg4: memref<1x4xf32, #tpu.memory_space<vmem>>, %arg5: memref<4x32xbf16, #tpu.memory_space<vmem>>, %arg6: memref<1x32xf32, #tpu.memory_space<vmem>>, %arg7: memref<1x272x48xbf16, #tpu.memory_space<vmem>>, %arg8: memref<1x272x48xbf16, #tpu.memory_space<vmem>>, %arg9: memref<3x48x32xbf16, #tpu.memory_space<vmem>>, %arg10: memref<1x32xf32, #tpu.memory_space<vmem>>, %arg11: memref<1x128x32xf32, #tpu.memory_space<vmem>>) attributes {dimension_semantics = [#tpu.dimension_semantics<parallel>, #tpu.dimension_semantics<parallel>], iteration_bounds = array<i64: 2, 2>, scalar_prefetch = 0 : i64, scratch_operands = 0 : i64, tpu.core_type = #tpu.core_type<tc>, window_params = [{transform_indices = @transform_0, window_bounds = array<i64: 1, 128, 4>}, {pipeline_mode = #tpu.pipeline_mode<synchronous>, transform_indices = @transform_1, window_bounds = array<i64: 1, 4>}, {pipeline_mode = #tpu.pipeline_mode<synchronous>, transform_indices = @transform_2, window_bounds = array<i64: 1, 4>}, {pipeline_mode = #tpu.pipeline_mode<synchronous>, transform_indices = @transform_3, window_bounds = array<i64: 4, 32>}, {pipeline_mode = #tpu.pipeline_mode<synchronous>, transform_indices = @transform_4, window_bounds = array<i64: 1, 32>}, {transform_indices = @transform_5, window_bounds = array<i64: 1, 272, 48>}, {transform_indices = @transform_6, window_bounds = array<i64: 1, 272, 48>}, {pipeline_mode = #tpu.pipeline_mode<synchronous>, transform_indices = @transform_7, window_bounds = array<i64: 3, 48, 32>}, {pipeline_mode = #tpu.pipeline_mode<synchronous>, transform_indices = @transform_8, window_bounds = array<i64: 1, 32>}, {transform_indices = @transform_9, window_bounds = array<i64: 1, 128, 32>}]} {
    %c128_i32 = arith.constant 128 : i32
    %0 = arith.muli %arg1, %c128_i32 : i32
    %1 = tpu.assume_multiple %0, 128 : i32
    %c0 = arith.constant 0 : index
    %c0_0 = arith.constant 0 : index
    %c0_1 = arith.constant 0 : index
    %2 = vector.load %arg2[%c0, %c0_0, %c0_1] : memref<1x128x4xf32, #tpu.memory_space<vmem>>, vector<1x128x4xf32>
    %3 = vector.shape_cast %2 : vector<1x128x4xf32> to vector<128x4xf32>
    %c0_2 = arith.constant 0 : index
    %c0_3 = arith.constant 0 : index
    %4 = vector.load %arg3[%c0_2, %c0_3] : memref<1x4xf32, #tpu.memory_space<vmem>>, vector<1x4xf32>
    %5 = vector.broadcast %4 : vector<1x4xf32> to vector<128x4xf32>
    %6 = arith.mulf %3, %5 : vector<128x4xf32>
    %c0_4 = arith.constant 0 : index
    %c0_5 = arith.constant 0 : index
    %7 = vector.load %arg4[%c0_4, %c0_5] : memref<1x4xf32, #tpu.memory_space<vmem>>, vector<1x4xf32>
    %8 = vector.broadcast %7 : vector<1x4xf32> to vector<128x4xf32>
    %9 = arith.addf %6, %8 : vector<128x4xf32>
    %cst = arith.constant 0.000000e+00 : f32
    %cst_6 = arith.constant 6.000000e+00 : f32
    %10 = vector.broadcast %cst : f32 to vector<128x4xf32>
    %11 = arith.maximumf %10, %9 : vector<128x4xf32>
    %12 = vector.broadcast %cst_6 : f32 to vector<128x4xf32>
    %13 = arith.minimumf %12, %11 : vector<128x4xf32>
    %14 = arith.truncf %13 : vector<128x4xf32> to vector<128x4xbf16>
    %c0_7 = arith.constant 0 : index
    %c0_8 = arith.constant 0 : index
    %15 = vector.load %arg5[%c0_7, %c0_8] : memref<4x32xbf16, #tpu.memory_space<vmem>>, vector<4x32xbf16>
    %cst_9 = arith.constant dense<0.000000e+00> : vector<128x32xf32>
    %16 = tpu.matmul %14, %15, %cst_9 {dimension_numbers = #tpu.dot_dimension_numbers<[1], [0], [0], [1], [0, 0, 1, 1], [], []>} : vector<128x4xbf16>, vector<4x32xbf16>, vector<128x32xf32> -> vector<128x32xf32>
    %c0_10 = arith.constant 0 : index
    %c0_11 = arith.constant 0 : index
    %17 = vector.load %arg6[%c0_10, %c0_11] : memref<1x32xf32, #tpu.memory_space<vmem>>, vector<1x32xf32>
    %18 = vector.broadcast %17 : vector<1x32xf32> to vector<128x32xf32>
    %19 = arith.addf %16, %18 : vector<128x32xf32>
    %c0_12 = arith.constant 0 : index
    %c0_13 = arith.constant 0 : index
    %20 = vector.load %arg10[%c0_12, %c0_13] : memref<1x32xf32, #tpu.memory_space<vmem>>, vector<1x32xf32>
    %21 = vector.broadcast %20 : vector<1x32xf32> to vector<128x32xf32>
    %22 = arith.addf %19, %21 : vector<128x32xf32>
    %c0_i32 = arith.constant 0 : i32
    %23 = arith.addi %1, %c0_i32 : i32
    %c0_14 = arith.constant 0 : index
    %24 = arith.index_cast %23 : i32 to index
    %c0_15 = arith.constant 0 : index
    %25 = vector.load %arg7[%c0_14, %24, %c0_15] : memref<1x272x48xbf16, #tpu.memory_space<vmem>>, vector<1x128x48xbf16>
    %26 = vector.shape_cast %25 : vector<1x128x48xbf16> to vector<128x48xbf16>
    %c0_16 = arith.constant 0 : index
    %c0_17 = arith.constant 0 : index
    %c0_18 = arith.constant 0 : index
    %27 = vector.load %arg9[%c0_16, %c0_17, %c0_18] : memref<3x48x32xbf16, #tpu.memory_space<vmem>>, vector<1x48x32xbf16>
    %28 = vector.shape_cast %27 : vector<1x48x32xbf16> to vector<48x32xbf16>
    %cst_19 = arith.constant dense<0.000000e+00> : vector<128x32xf32>
    %29 = tpu.matmul %26, %28, %cst_19 {dimension_numbers = #tpu.dot_dimension_numbers<[1], [0], [0], [1], [0, 0, 1, 1], [], []>} : vector<128x48xbf16>, vector<48x32xbf16>, vector<128x32xf32> -> vector<128x32xf32>
    %30 = arith.addf %22, %29 : vector<128x32xf32>
    %c0_i32_20 = arith.constant 0 : i32
    %31 = arith.addi %1, %c0_i32_20 : i32
    %c0_21 = arith.constant 0 : index
    %32 = arith.index_cast %31 : i32 to index
    %c0_22 = arith.constant 0 : index
    %33 = vector.load %arg8[%c0_21, %32, %c0_22] : memref<1x272x48xbf16, #tpu.memory_space<vmem>>, vector<1x128x48xbf16>
    %34 = vector.shape_cast %33 : vector<1x128x48xbf16> to vector<128x48xbf16>
    %c1 = arith.constant 1 : index
    %c0_23 = arith.constant 0 : index
    %c0_24 = arith.constant 0 : index
    %35 = vector.load %arg9[%c1, %c0_23, %c0_24] : memref<3x48x32xbf16, #tpu.memory_space<vmem>>, vector<1x48x32xbf16>
    %36 = vector.shape_cast %35 : vector<1x48x32xbf16> to vector<48x32xbf16>
    %cst_25 = arith.constant dense<0.000000e+00> : vector<128x32xf32>
    %37 = tpu.matmul %34, %36, %cst_25 {dimension_numbers = #tpu.dot_dimension_numbers<[1], [0], [0], [1], [0, 0, 1, 1], [], []>} : vector<128x48xbf16>, vector<48x32xbf16>, vector<128x32xf32> -> vector<128x32xf32>
    %38 = arith.addf %30, %37 : vector<128x32xf32>
    %c16_i32 = arith.constant 16 : i32
    %39 = arith.addi %1, %c16_i32 : i32
    %c0_26 = arith.constant 0 : index
    %40 = arith.index_cast %39 : i32 to index
    %c0_27 = arith.constant 0 : index
    %41 = vector.load %arg7[%c0_26, %40, %c0_27] : memref<1x272x48xbf16, #tpu.memory_space<vmem>>, vector<1x128x48xbf16>
    %42 = vector.shape_cast %41 : vector<1x128x48xbf16> to vector<128x48xbf16>
    %c2 = arith.constant 2 : index
    %c0_28 = arith.constant 0 : index
    %c0_29 = arith.constant 0 : index
    %43 = vector.load %arg9[%c2, %c0_28, %c0_29] : memref<3x48x32xbf16, #tpu.memory_space<vmem>>, vector<1x48x32xbf16>
    %44 = vector.shape_cast %43 : vector<1x48x32xbf16> to vector<48x32xbf16>
    %cst_30 = arith.constant dense<0.000000e+00> : vector<128x32xf32>
    %45 = tpu.matmul %42, %44, %cst_30 {dimension_numbers = #tpu.dot_dimension_numbers<[1], [0], [0], [1], [0, 0, 1, 1], [], []>} : vector<128x48xbf16>, vector<48x32xbf16>, vector<128x32xf32> -> vector<128x32xf32>
    %46 = arith.addf %38, %45 : vector<128x32xf32>
    %c0_31 = arith.constant 0 : index
    %c0_32 = arith.constant 0 : index
    %c0_33 = arith.constant 0 : index
    %47 = vector.load %arg11[%c0_31, %c0_32, %c0_33] : memref<1x128x32xf32, #tpu.memory_space<vmem>>, vector<1x128x32xf32>
    %48 = vector.shape_cast %47 : vector<1x128x32xf32> to vector<128x32xf32>
    %49 = vector.shape_cast %46 : vector<128x32xf32> to vector<1x128x32xf32>
    tpu.vector_store %arg11[%c0_31, %c0_32, %c0_33], %49 {strides = array<i32>} : memref<1x128x32xf32, #tpu.memory_space<vmem>>, vector<1x128x32xf32>,
    return
  }
  func.func @transform_0(%arg0: i32, %arg1: i32) -> (i32, i32, i32) {
    %c0_i32 = arith.constant 0 : i32
    %c0_i32_0 = arith.constant 0 : i32
    return %arg0, %arg1, %c0_i32 : i32, i32, i32
  }
  func.func @transform_1(%arg0: i32, %arg1: i32) -> (i32, i32) {
    %c0_i32 = arith.constant 0 : i32
    %c0_i32_0 = arith.constant 0 : i32
    %c0_i32_1 = arith.constant 0 : i32
    return %c0_i32, %c0_i32_0 : i32, i32
  }
  func.func @transform_2(%arg0: i32, %arg1: i32) -> (i32, i32) {
    %c0_i32 = arith.constant 0 : i32
    %c0_i32_0 = arith.constant 0 : i32
    %c0_i32_1 = arith.constant 0 : i32
    return %c0_i32, %c0_i32_0 : i32, i32
  }
  func.func @transform_3(%arg0: i32, %arg1: i32) -> (i32, i32) {
    %c0_i32 = arith.constant 0 : i32
    %c0_i32_0 = arith.constant 0 : i32
    %c0_i32_1 = arith.constant 0 : i32
    return %c0_i32, %c0_i32_0 : i32, i32
  }
  func.func @transform_4(%arg0: i32, %arg1: i32) -> (i32, i32) {
    %c0_i32 = arith.constant 0 : i32
    %c0_i32_0 = arith.constant 0 : i32
    %c0_i32_1 = arith.constant 0 : i32
    return %c0_i32, %c0_i32_0 : i32, i32
  }
  func.func @transform_5(%arg0: i32, %arg1: i32) -> (i32, i32, i32) {
    %c0_i32 = arith.constant 0 : i32
    %c0_i32_0 = arith.constant 0 : i32
    %c0_i32_1 = arith.constant 0 : i32
    return %arg0, %c0_i32, %c0_i32_0 : i32, i32, i32
  }
  func.func @transform_6(%arg0: i32, %arg1: i32) -> (i32, i32, i32) {
    %c0_i32 = arith.constant 0 : i32
    %c0_i32_0 = arith.constant 0 : i32
    %c0_i32_1 = arith.constant 0 : i32
    return %arg0, %c0_i32, %c0_i32_0 : i32, i32, i32
  }
  func.func @transform_7(%arg0: i32, %arg1: i32) -> (i32, i32, i32) {
    %c0_i32 = arith.constant 0 : i32
    %c0_i32_0 = arith.constant 0 : i32
    %c0_i32_1 = arith.constant 0 : i32
    %c0_i32_2 = arith.constant 0 : i32
    return %c0_i32, %c0_i32_0, %c0_i32_1 : i32, i32, i32
  }
  func.func @transform_8(%arg0: i32, %arg1: i32) -> (i32, i32) {
    %c0_i32 = arith.constant 0 : i32
    %c0_i32_0 = arith.constant 0 : i32
    %c0_i32_1 = arith.constant 0 : i32
    return %c0_i32, %c0_i32_0 : i32, i32
  }
  func.func @transform_9(%arg0: i32, %arg1: i32) -> (i32, i32, i32) {
    %c0_i32 = arith.constant 0 : i32
    %c0_i32_0 = arith.constant 0 : i32
    return %arg0, %arg1, %c0_i32 : i32, i32, i32
  }
}

module attributes {stable_mosaic.version = 11 : i64} {
  func.func @_conv3x3s2_stats_kernel(%arg0: i32, %arg1: i32, %arg2: memref<1x272x12xbf16, #tpu.memory_space<vmem>>, %arg3: memref<1x272x12xbf16, #tpu.memory_space<vmem>>, %arg4: memref<3x12x4xbf16, #tpu.memory_space<vmem>>, %arg5: memref<1x4xf32, #tpu.memory_space<vmem>>, %arg6: memref<1x128x4xf32, #tpu.memory_space<vmem>>, %arg7: memref<1x1x4xf32, #tpu.memory_space<vmem>>, %arg8: memref<1x1x4xf32, #tpu.memory_space<vmem>>) attributes {dimension_semantics = [#tpu.dimension_semantics<parallel>, #tpu.dimension_semantics<parallel>], iteration_bounds = array<i64: 2, 2>, scalar_prefetch = 0 : i64, scratch_operands = 0 : i64, tpu.core_type = #tpu.core_type<tc>, window_params = [{transform_indices = @transform_0, window_bounds = array<i64: 1, 272, 12>}, {transform_indices = @transform_1, window_bounds = array<i64: 1, 272, 12>}, {pipeline_mode = #tpu.pipeline_mode<synchronous>, transform_indices = @transform_2, window_bounds = array<i64: 3, 12, 4>}, {pipeline_mode = #tpu.pipeline_mode<synchronous>, transform_indices = @transform_3, window_bounds = array<i64: 1, 4>}, {transform_indices = @transform_4, window_bounds = array<i64: 1, 128, 4>}, {transform_indices = @transform_5, window_bounds = array<i64: 1, 1, 4>}, {transform_indices = @transform_6, window_bounds = array<i64: 1, 1, 4>}]} {
    %c128_i32 = arith.constant 128 : i32
    %0 = arith.muli %arg1, %c128_i32 : i32
    %1 = tpu.assume_multiple %0, 128 : i32
    %cst = arith.constant 0.000000e+00 : f32
    %2 = vector.broadcast %cst : f32 to vector<128x4xf32>
    %c0 = arith.constant 0 : index
    %c0_0 = arith.constant 0 : index
    %3 = vector.load %arg5[%c0, %c0_0] : memref<1x4xf32, #tpu.memory_space<vmem>>, vector<1x4xf32>
    %4 = vector.broadcast %3 : vector<1x4xf32> to vector<128x4xf32>
    %5 = arith.addf %2, %4 : vector<128x4xf32>
    %c0_i32 = arith.constant 0 : i32
    %6 = arith.addi %1, %c0_i32 : i32
    %c0_1 = arith.constant 0 : index
    %7 = arith.index_cast %6 : i32 to index
    %c0_2 = arith.constant 0 : index
    %8 = vector.load %arg2[%c0_1, %7, %c0_2] : memref<1x272x12xbf16, #tpu.memory_space<vmem>>, vector<1x128x12xbf16>
    %9 = vector.shape_cast %8 : vector<1x128x12xbf16> to vector<128x12xbf16>
    %c0_3 = arith.constant 0 : index
    %c0_4 = arith.constant 0 : index
    %c0_5 = arith.constant 0 : index
    %10 = vector.load %arg4[%c0_3, %c0_4, %c0_5] : memref<3x12x4xbf16, #tpu.memory_space<vmem>>, vector<1x12x4xbf16>
    %11 = vector.shape_cast %10 : vector<1x12x4xbf16> to vector<12x4xbf16>
    %cst_6 = arith.constant dense<0.000000e+00> : vector<128x4xf32>
    %12 = tpu.matmul %9, %11, %cst_6 {dimension_numbers = #tpu.dot_dimension_numbers<[1], [0], [0], [1], [0, 0, 1, 1], [], []>} : vector<128x12xbf16>, vector<12x4xbf16>, vector<128x4xf32> -> vector<128x4xf32>
    %13 = arith.addf %5, %12 : vector<128x4xf32>
    %c0_i32_7 = arith.constant 0 : i32
    %14 = arith.addi %1, %c0_i32_7 : i32
    %c0_8 = arith.constant 0 : index
    %15 = arith.index_cast %14 : i32 to index
    %c0_9 = arith.constant 0 : index
    %16 = vector.load %arg3[%c0_8, %15, %c0_9] : memref<1x272x12xbf16, #tpu.memory_space<vmem>>, vector<1x128x12xbf16>
    %17 = vector.shape_cast %16 : vector<1x128x12xbf16> to vector<128x12xbf16>
    %c1 = arith.constant 1 : index
    %c0_10 = arith.constant 0 : index
    %c0_11 = arith.constant 0 : index
    %18 = vector.load %arg4[%c1, %c0_10, %c0_11] : memref<3x12x4xbf16, #tpu.memory_space<vmem>>, vector<1x12x4xbf16>
    %19 = vector.shape_cast %18 : vector<1x12x4xbf16> to vector<12x4xbf16>
    %cst_12 = arith.constant dense<0.000000e+00> : vector<128x4xf32>
    %20 = tpu.matmul %17, %19, %cst_12 {dimension_numbers = #tpu.dot_dimension_numbers<[1], [0], [0], [1], [0, 0, 1, 1], [], []>} : vector<128x12xbf16>, vector<12x4xbf16>, vector<128x4xf32> -> vector<128x4xf32>
    %21 = arith.addf %13, %20 : vector<128x4xf32>
    %c16_i32 = arith.constant 16 : i32
    %22 = arith.addi %1, %c16_i32 : i32
    %c0_13 = arith.constant 0 : index
    %23 = arith.index_cast %22 : i32 to index
    %c0_14 = arith.constant 0 : index
    %24 = vector.load %arg2[%c0_13, %23, %c0_14] : memref<1x272x12xbf16, #tpu.memory_space<vmem>>, vector<1x128x12xbf16>
    %25 = vector.shape_cast %24 : vector<1x128x12xbf16> to vector<128x12xbf16>
    %c2 = arith.constant 2 : index
    %c0_15 = arith.constant 0 : index
    %c0_16 = arith.constant 0 : index
    %26 = vector.load %arg4[%c2, %c0_15, %c0_16] : memref<3x12x4xbf16, #tpu.memory_space<vmem>>, vector<1x12x4xbf16>
    %27 = vector.shape_cast %26 : vector<1x12x4xbf16> to vector<12x4xbf16>
    %cst_17 = arith.constant dense<0.000000e+00> : vector<128x4xf32>
    %28 = tpu.matmul %25, %27, %cst_17 {dimension_numbers = #tpu.dot_dimension_numbers<[1], [0], [0], [1], [0, 0, 1, 1], [], []>} : vector<128x12xbf16>, vector<12x4xbf16>, vector<128x4xf32> -> vector<128x4xf32>
    %29 = arith.addf %21, %28 : vector<128x4xf32>
    %c0_18 = arith.constant 0 : index
    %c0_19 = arith.constant 0 : index
    %c0_20 = arith.constant 0 : index
    %30 = vector.load %arg6[%c0_18, %c0_19, %c0_20] : memref<1x128x4xf32, #tpu.memory_space<vmem>>, vector<1x128x4xf32>
    %31 = vector.shape_cast %30 : vector<1x128x4xf32> to vector<128x4xf32>
    %32 = vector.shape_cast %29 : vector<128x4xf32> to vector<1x128x4xf32>
    tpu.vector_store %arg6[%c0_18, %c0_19, %c0_20], %32 {strides = array<i32>} : memref<1x128x4xf32, #tpu.memory_space<vmem>>, vector<1x128x4xf32>,
    %cst_21 = arith.constant dense<0.000000e+00> : vector<4xf32>
    %33 = vector.multi_reduction <add>, %29, %cst_21 [0] : vector<128x4xf32> to vector<4xf32>
    %34 = vector.shape_cast %33 : vector<4xf32> to vector<1x4xf32>
    %c0_22 = arith.constant 0 : index
    %c0_23 = arith.constant 0 : index
    %c0_24 = arith.constant 0 : index
    %35 = vector.load %arg7[%c0_22, %c0_23, %c0_24] : memref<1x1x4xf32, #tpu.memory_space<vmem>>, vector<1x1x4xf32>
    %36 = vector.shape_cast %35 : vector<1x1x4xf32> to vector<1x4xf32>
    %37 = vector.shape_cast %34 : vector<1x4xf32> to vector<1x1x4xf32>
    tpu.vector_store %arg7[%c0_22, %c0_23, %c0_24], %37 {strides = array<i32>} : memref<1x1x4xf32, #tpu.memory_space<vmem>>, vector<1x1x4xf32>,
    %38 = arith.mulf %29, %29 : vector<128x4xf32>
    %cst_25 = arith.constant dense<0.000000e+00> : vector<4xf32>
    %39 = vector.multi_reduction <add>, %38, %cst_25 [0] : vector<128x4xf32> to vector<4xf32>
    %40 = vector.shape_cast %39 : vector<4xf32> to vector<1x4xf32>
    %c0_26 = arith.constant 0 : index
    %c0_27 = arith.constant 0 : index
    %c0_28 = arith.constant 0 : index
    %41 = vector.load %arg8[%c0_26, %c0_27, %c0_28] : memref<1x1x4xf32, #tpu.memory_space<vmem>>, vector<1x1x4xf32>
    %42 = vector.shape_cast %41 : vector<1x1x4xf32> to vector<1x4xf32>
    %43 = vector.shape_cast %40 : vector<1x4xf32> to vector<1x1x4xf32>
    tpu.vector_store %arg8[%c0_26, %c0_27, %c0_28], %43 {strides = array<i32>} : memref<1x1x4xf32, #tpu.memory_space<vmem>>, vector<1x1x4xf32>,
    return
  }
  func.func @transform_0(%arg0: i32, %arg1: i32) -> (i32, i32, i32) {
    %c0_i32 = arith.constant 0 : i32
    %c0_i32_0 = arith.constant 0 : i32
    %c0_i32_1 = arith.constant 0 : i32
    return %arg0, %c0_i32, %c0_i32_0 : i32, i32, i32
  }
  func.func @transform_1(%arg0: i32, %arg1: i32) -> (i32, i32, i32) {
    %c0_i32 = arith.constant 0 : i32
    %c0_i32_0 = arith.constant 0 : i32
    %c0_i32_1 = arith.constant 0 : i32
    return %arg0, %c0_i32, %c0_i32_0 : i32, i32, i32
  }
  func.func @transform_2(%arg0: i32, %arg1: i32) -> (i32, i32, i32) {
    %c0_i32 = arith.constant 0 : i32
    %c0_i32_0 = arith.constant 0 : i32
    %c0_i32_1 = arith.constant 0 : i32
    %c0_i32_2 = arith.constant 0 : i32
    return %c0_i32, %c0_i32_0, %c0_i32_1 : i32, i32, i32
  }
  func.func @transform_3(%arg0: i32, %arg1: i32) -> (i32, i32) {
    %c0_i32 = arith.constant 0 : i32
    %c0_i32_0 = arith.constant 0 : i32
    %c0_i32_1 = arith.constant 0 : i32
    return %c0_i32, %c0_i32_0 : i32, i32
  }
  func.func @transform_4(%arg0: i32, %arg1: i32) -> (i32, i32, i32) {
    %c0_i32 = arith.constant 0 : i32
    %c0_i32_0 = arith.constant 0 : i32
    return %arg0, %arg1, %c0_i32 : i32, i32, i32
  }
  func.func @transform_5(%arg0: i32, %arg1: i32) -> (i32, i32, i32) {
    %c2_i32 = arith.constant 2 : i32
    %0 = arith.muli %arg0, %c2_i32 : i32
    %1 = arith.addi %0, %arg1 : i32
    %c0_i32 = arith.constant 0 : i32
    %c0_i32_0 = arith.constant 0 : i32
    %c0_i32_1 = arith.constant 0 : i32
    return %1, %c0_i32, %c0_i32_0 : i32, i32, i32
  }
  func.func @transform_6(%arg0: i32, %arg1: i32) -> (i32, i32, i32) {
    %c2_i32 = arith.constant 2 : i32
    %0 = arith.muli %arg0, %c2_i32 : i32
    %1 = arith.addi %0, %arg1 : i32
    %c0_i32 = arith.constant 0 : i32
    %c0_i32_0 = arith.constant 0 : i32
    %c0_i32_1 = arith.constant 0 : i32
    return %1, %c0_i32, %c0_i32_0 : i32, i32, i32
  }
}

</mosaic_0001>

<bundles_post_ra>
// kernel: downsample_bottleneck_forward.4
= control target key start
LH: loop header
LB: loop body
LE: loop exit
PB: predicated region body
PF: predicated region fallthrough
CT: control target
= control target key end

     0   :  { %s1045_s9 = smov 0   ;;  %s2102_s0 = inlined_call_operand.vmem [shape: f32[2048,16], index: 0, kind: input, shape index: {}]   ;;  %s2103_s1 = inlined_call_operand.vmem [shape: f32[2,1,16], index: 1, kind: output, shape index: {0}]   ;;  %s2104_s2 = inlined_call_operand.vmem [shape: f32[2,1,16], index: 2, kind: output, shape index: {1}]  }
   0x1 LB: > { %s1051_s10 = sadd.s32 4294967295, %s1028_s9   ;;  %p1009_p0 = scmp.ge.s32.totalorder %s1028_s9, 1  ;;  %s1028_s9 = sphi %s1045_s9, %s13_s9  }
   0x2   : > { %p116_p1 = scmp.lt.s32.totalorder %s1028_s9, 3 }
   0x4   : > { %p117_p2 = pnand %p1009_p0, %p116_p1 }
   0x5   : > { %s1010_s11 = sshll.u32 (!%p117_p2), %s1051_s10, 7  ;;  %vm279_vm0 = vcmask (!%p117_p2), 130048   ;;  %p145_p4 = scmp.lt.s32.totalorder (!%p117_p2), %s1051_s10, 1  ;;  %vm541_vm1 = vcmask (!%p117_p2), 122880  }
   0x6   : > { %120 = sbr.rel (%p117_p2) target bundleno = 325 (0x145), region = 24  ;;  %p140_p3 = scmp.lt.s32.totalorder (!%p117_p2), %s1010_s11, 255 }
   0xd   : > { %s2106_s11 = smov (!%p140_p3, %s1010_s11), 255  ;;  %s2108_s10 = smov (!%p145_p4, %s1051_s10), 1 }
   0xe   : > { %s1011_s12 = sshll.u32 %s2106_s11, 3  ;;  %s147_s18 = scalar_lea.vmem %s2103_s1, %s2108_s10 }
   0xf   : > { %s1059_s15 = scalar_lea.vmem %s2102_s0, %s1011_s12  ;;  %s150_s21 = scalar_lea.vmem %s2104_s2, %s2108_s10 }
  0x10   : > { %v1062_v0 = vld [vmem:[%s1059_s15] sm:$0xff]  ;;  %v1065_v1 = vld [vmem:[%s1059_s15 + $0x8] sm:$0xff]  ;;  %v1068_v2 = vld [vmem:[%s1059_s15 + $0x10] sm:$0xff] }
  0x11   : > { %v280_v3 = vsel %vm279_vm0, %v1062_v0, 0.0  ;;  %v281_v4 = vsel %vm279_vm0, %v1065_v1, 0.0  ;;  %v283_v5 = vsel %vm279_vm0, %v1068_v2, 0.0  ;;  %v1077_v6 = vld [vmem:[%s1059_s15 + $0x18] sm:$0xff]  ;;  %v1082_v9 = vld [vmem:[%s1059_s15 + $0x20] sm:$0xff]  ;;  %v1087_v12 = vld [vmem:[%s1059_s15 + $0x28] sm:$0xff] }
  0x12   : > { %v282_v7 = vadd.f32 %v281_v4, %v280_v3  ;;  %v285_v8 = vsel %vm279_vm0, %v1077_v6, 0.0  ;;  %v287_v11 = vsel %vm279_vm0, %v1082_v9, 0.0  ;;  %v289_v14 = vsel %vm279_vm0, %v1087_v12, 0.0  ;;  %v1092_v15 = vld [vmem:[%s1059_s15 + $0x30] sm:$0xff]  ;;  %v1097_v18 = vld [vmem:[%s1059_s15 + $0x38] sm:$0xff]  ;;  %v1102_v21 = vld [vmem:[%s1059_s15 + $0x40] sm:$0xff] }
  0x13   : > { %v291_v17 = vsel %vm279_vm0, %v1092_v15, 0.0  ;;  %v293_v20 = vsel %vm279_vm0, %v1097_v18, 0.0  ;;  %v295_v23 = vsel %vm279_vm0, %v1102_v21, 0.0  ;;  %v1107_v24 = vld [vmem:[%s1059_s15 + $0x48] sm:$0xff]  ;;  %v1112_v27 = vld [vmem:[%s1059_s15 + $0x50] sm:$0xff]  ;;  %v1117_v30 = vld [vmem:[%s1059_s15 + $0x58] sm:$0xff] }
  0x14   : > { %v284_v10 = vadd.f32 %v283_v5, %v282_v7  ;;  %v297_v26 = vsel %vm279_vm0, %v1107_v24, 0.0  ;;  %v299_v29 = vsel %vm279_vm0, %v1112_v27, 0.0  ;;  %v301_v32 = vsel %vm279_vm0, %v1117_v30, 0.0  ;;  %v1122_v33 = vld [vmem:[%s1059_s15 + $0x60] sm:$0xff]  ;;  %v1127_v36 = vld [vmem:[%s1059_s15 + $0x68] sm:$0xff]  ;;  %v1132_v39 = vld [vmem:[%s1059_s15 + $0x70] sm:$0xff] }
  0x15   : > { %v303_v35 = vsel %vm279_vm0, %v1122_v33, 0.0  ;;  %v305_v38 = vsel %vm279_vm0, %v1127_v36, 0.0  ;;  %v307_v41 = vsel %vm279_vm0, %v1132_v39, 0.0  ;;  %v1137_v42 = vld [vmem:[%s1059_s15 + $0x78] sm:$0xff]  ;;  %v1142_v45 = vld [vmem:[%s1059_s15 + $0x80] sm:$0xff]  ;;  %v1147_v48 = vld [vmem:[%s1059_s15 + $0x88] sm:$0xff] }
  0x16   : > { %v286_v13 = vadd.f32 %v285_v8, %v284_v10  ;;  %v309_v44 = vsel %vm279_vm0, %v1137_v42, 0.0  ;;  %v311_v47 = vsel %vm279_vm0, %v1142_v45, 0.0  ;;  %v313_v50 = vsel %vm279_vm0, %v1147_v48, 0.0  ;;  %v1152_v51 = vld [vmem:[%s1059_s15 + $0x90] sm:$0xff]  ;;  %v1157_v54 = vld [vmem:[%s1059_s15 + $0x98] sm:$0xff]  ;;  %v1162_v57 = vld [vmem:[%s1059_s15 + $0xa0] sm:$0xff] }
  0x17   : > { %v315_v53 = vsel %vm279_vm0, %v1152_v51, 0.0  ;;  %v317_v56 = vsel %vm279_vm0, %v1157_v54, 0.0  ;;  %v319_v59 = vsel %vm279_vm0, %v1162_v57, 0.0  ;;  %v1167_v60 = vld [vmem:[%s1059_s15 + $0xa8] sm:$0xff]  ;;  %v1172_v63 = vld [vmem:[%s1059_s15 + $0xb0] sm:$0xff]  ;;  %v1177_v5 = vld [vmem:[%s1059_s15 + $0xb8] sm:$0xff] }
  0x18   : > { %v288_v16 = vadd.f32 %v287_v11, %v286_v13  ;;  %v321_v62 = vsel %vm279_vm0, %v1167_v60, 0.0  ;;  %v323_v4 = vsel %vm279_vm0, %v1172_v63, 0.0  ;;  %v325_v8 = vsel %vm279_vm0, %v1177_v5, 0.0  ;;  %v1182_v10 = vld [vmem:[%s1059_s15 + $0xc0] sm:$0xff] }
  0x19   : > { %v327_v13 = vsel %vm279_vm0, %v1182_v10, 0.0 }
  0x1a   : > { %v290_v19 = vadd.f32 %v289_v14, %v288_v16  ;;  %v1187_v14 = vld [vmem:[%s1059_s15 + $0xc8] sm:$0xff] }
  0x1c   : > { %v292_v22 = vadd.f32 %v291_v17, %v290_v19  ;;  %v329_v17 = vsel %vm279_vm0, %v1187_v14, 0.0  ;;  %v1192_v19 = vld [vmem:[%s1059_s15 + $0xd0] sm:$0xff] }
  0x1e   : > { %v294_v25 = vadd.f32 %v293_v20, %v292_v22  ;;  %v331_v22 = vsel %vm279_vm0, %v1192_v19, 0.0 }
  0x20   : > { %v296_v28 = vadd.f32 %v295_v23, %v294_v25  ;;  %v543_v23 = vmul.f32 %v1062_v0, %v1062_v0  ;;  %v544_v25 = vmul.f32 %v1065_v1, %v1065_v1  ;;  %v547_v0 = vmul.f32 %v1082_v9, %v1082_v9 }
  0x21   : > { %v548_v9 = vmul.f32 %v1087_v12, %v1087_v12 }
  0x22   : > { %v298_v31 = vadd.f32 %v297_v26, %v296_v28  ;;  %v545_v26 = vmul.f32 %v1068_v2, %v1068_v2  ;;  %v1203_v28 = vld [vmem:[%s1059_s15 + $0xd8] sm:$0xff]  ;;  %v671_v2 = vsel %vm279_vm0, %v543_v23, 0.0 }
  0x24   : > { %v300_v34 = vadd.f32 %v299_v29, %v298_v31  ;;  %v333_v31 = vsel %vm279_vm0, %v1203_v28, 0.0 }
  0x26   : > { %v302_v37 = vadd.f32 %v301_v32, %v300_v34  ;;  %v546_v32 = vmul.f32 %v1077_v6, %v1077_v6  ;;  %v1210_v34 = vld [vmem:[%s1059_s15 + $0xe0] sm:$0xff] }
  0x27   : > { %v335_v1 = vsel %vm279_vm0, %v1210_v34, 0.0 }
  0x28   : > { %v304_v40 = vadd.f32 %v303_v35, %v302_v37  ;;  %v672_v37 = vsel %vm279_vm0, %v544_v25, 0.0 }
  0x29   : > { %v673_v6 = vadd.f32 %v672_v37, %v671_v2  ;;  %v1276_v2 = vld [vmem:[%s1059_s15 + $0x120] sm:$0xff] }
  0x2a   : > { %v306_v43 = vadd.f32 %v305_v38, %v304_v40  ;;  %v674_v38 = vsel %vm279_vm0, %v545_v26, 0.0  ;;  %v1220_v40 = vld [vmem:[%s1059_s15 + $0xe8] sm:$0xff]  ;;  %v553_v26 = vmul.f32 %v1112_v27, %v1112_v27  ;;  %v351_v27 = vsel %vm279_vm0, %v1276_v2, 0.0 }
  0x2c   : > { %v308_v46 = vadd.f32 %v307_v41, %v306_v43  ;;  %v337_v43 = vsel %vm279_vm0, %v1220_v40, 0.0 }
  0x2e   : > { %v310_v49 = vadd.f32 %v309_v44, %v308_v46  ;;  %v676_v44 = vsel %vm279_vm0, %v546_v32, 0.0  ;;  %v1228_v46 = vld [vmem:[%s1059_s15 + $0xf0] sm:$0xff] }
  0x30   : > { %v312_v52 = vadd.f32 %v311_v47, %v310_v49  ;;  %v675_v49 = vadd.f32 %v674_v38, %v673_v6  ;;  %v690_v6 = vsel %vm279_vm0, %v553_v26, 0.0 }
  0x32   : > { %v314_v55 = vadd.f32 %v313_v50, %v312_v52  ;;  %v339_v50 = vsel %vm279_vm0, %v1228_v46, 0.0  ;;  %v549_v52 = vmul.f32 %v1092_v15, %v1092_v15 }
  0x34   : > { %v316_v58 = vadd.f32 %v315_v53, %v314_v55  ;;  %v678_v53 = vsel %vm279_vm0, %v547_v0, 0.0  ;;  %v1236_v55 = vld [vmem:[%s1059_s15 + $0xf8] sm:$0xff]  ;;  %v554_v0 = vmul.f32 %v1117_v30, %v1117_v30 }
  0x35   : > { %v341_v12 = vsel %vm279_vm0, %v1236_v55, 0.0 }
  0x36   : > { %v318_v61 = vadd.f32 %v317_v56, %v316_v58  ;;  %v677_v58 = vadd.f32 %v676_v44, %v675_v49  ;;  %v692_v49 = vsel %vm279_vm0, %v554_v0, 0.0 }
  0x38   : > { %v320_v3 = vadd.f32 %v319_v59, %v318_v61  ;;  %v550_v59 = vmul.f32 %v1097_v18, %v1097_v18  ;;  %v680_v61 = vsel %vm279_vm0, %v548_v9, 0.0 }
  0x3a   : > { %v322_v7 = vadd.f32 %v321_v62, %v320_v3  ;;  %v1244_v62 = vld [vmem:[%s1059_s15 + $0x100] sm:$0xff] }
  0x3b   : > { %v343_v15 = vsel %vm279_vm0, %v1244_v62, 0.0 }
  0x3c   : > { %v324_v11 = vadd.f32 %v323_v4, %v322_v7  ;;  %v679_v4 = vadd.f32 %v678_v53, %v677_v58  ;;  %v551_v7 = vmul.f32 %v1102_v21, %v1102_v21 }
  0x3e   : > { %v326_v16 = vadd.f32 %v325_v8, %v324_v11  ;;  %v682_v8 = vsel %vm279_vm0, %v549_v52, 0.0  ;;  %v1252_v11 = vld [vmem:[%s1059_s15 + $0x108] sm:$0xff] }
  0x3f   : > { %v345_v18 = vsel %vm279_vm0, %v1252_v11, 0.0 }
  0x40   : > { %v328_v20 = vadd.f32 %v327_v13, %v326_v16  ;;  %v681_v16 = vadd.f32 %v680_v61, %v679_v4 }
  0x42   : > { %v330_v29 = vadd.f32 %v329_v17, %v328_v20  ;;  %v552_v17 = vmul.f32 %v1107_v24, %v1107_v24  ;;  %v684_v20 = vsel %vm279_vm0, %v550_v59, 0.0  ;;  %v683_v25 = vadd.f32 %v682_v8, %v681_v16 }
  0x44   : > { %v332_v35 = vadd.f32 %v331_v22, %v330_v29  ;;  %v1260_v22 = vld [vmem:[%s1059_s15 + $0x110] sm:$0xff]  ;;  %v686_v29 = vsel %vm279_vm0, %v551_v7, 0.0 }
  0x45   : > { %v347_v21 = vsel %vm279_vm0, %v1260_v22, 0.0 }
  0x46   : > { %v334_v41 = vadd.f32 %v333_v31, %v332_v35  ;;  %v1268_v31 = vld [vmem:[%s1059_s15 + $0x118] sm:$0xff]  ;;  %v685_v35 = vadd.f32 %v684_v20, %v683_v25 }
  0x47   : > { %v349_v24 = vsel %vm279_vm0, %v1268_v31, 0.0 }
  0x48   : > { %v336_v47 = vadd.f32 %v335_v1, %v334_v41  ;;  %v688_v1 = vsel %vm279_vm0, %v552_v17, 0.0  ;;  %v687_v38 = vadd.f32 %v686_v29, %v685_v35  ;;  %v555_v41 = vmul.f32 %v1122_v33, %v1122_v33 }
  0x4a   : > { %v338_v56 = vadd.f32 %v337_v43, %v336_v47  ;;  %v1284_v43 = vld [vmem:[%s1059_s15 + $0x128] sm:$0xff]  ;;  %v689_v44 = vadd.f32 %v688_v1, %v687_v38  ;;  %v556_v47 = vmul.f32 %v1127_v36, %v1127_v36  ;;  %v694_v58 = vsel %vm279_vm0, %v555_v41, 0.0 }
  0x4b   : > { %v353_v30 = vsel %vm279_vm0, %v1284_v43, 0.0 }
  0x4c   : > { %v340_v3 = vadd.f32 %v339_v50, %v338_v56  ;;  %v1292_v50 = vld [vmem:[%s1059_s15 + $0x130] sm:$0xff]  ;;  %v691_v53 = vadd.f32 %v690_v6, %v689_v44  ;;  %v557_v56 = vmul.f32 %v1132_v39, %v1132_v39  ;;  %v696_v4 = vsel %vm279_vm0, %v556_v47, 0.0 }
  0x4d   : > { %v355_v33 = vsel %vm279_vm0, %v1292_v50, 0.0 }
  0x4e   : > { %v342_v13 = vadd.f32 %v341_v12, %v340_v3  ;;  %v1300_v12 = vld [vmem:[%s1059_s15 + $0x138] sm:$0xff]  ;;  %v693_v61 = vadd.f32 %v692_v49, %v691_v53  ;;  %v558_v3 = vmul.f32 %v1137_v42, %v1137_v42  ;;  %v698_v16 = vsel %vm279_vm0, %v557_v56, 0.0 }
  0x4f   : > { %v357_v36 = vsel %vm279_vm0, %v1300_v12, 0.0 }
  0x50   : > { %v344_v23 = vadd.f32 %v343_v15, %v342_v13  ;;  %v1308_v15 = vld [vmem:[%s1059_s15 + $0x140] sm:$0xff]  ;;  %v695_v8 = vadd.f32 %v694_v58, %v693_v61  ;;  %v559_v13 = vmul.f32 %v1142_v45, %v1142_v45  ;;  %v700_v25 = vsel %vm279_vm0, %v558_v3, 0.0 }
  0x51   : > { %v359_v39 = vsel %vm279_vm0, %v1308_v15, 0.0 }
  0x52   : > { %v346_v32 = vadd.f32 %v345_v18, %v344_v23  ;;  %v1316_v18 = vld [vmem:[%s1059_s15 + $0x148] sm:$0xff]  ;;  %v697_v20 = vadd.f32 %v696_v4, %v695_v8  ;;  %v560_v23 = vmul.f32 %v1147_v48, %v1147_v48  ;;  %v702_v35 = vsel %vm279_vm0, %v559_v13, 0.0 }
  0x53   : > { %v361_v42 = vsel %vm279_vm0, %v1316_v18, 0.0 }
  0x54   : > { %v348_v37 = vadd.f32 %v347_v21, %v346_v32  ;;  %v1324_v21 = vld [vmem:[%s1059_s15 + $0x150] sm:$0xff]  ;;  %v699_v29 = vadd.f32 %v698_v16, %v697_v20  ;;  %v561_v32 = vmul.f32 %v1152_v51, %v1152_v51  ;;  %v704_v38 = vsel %vm279_vm0, %v560_v23, 0.0 }
  0x55   : > { %v363_v45 = vsel %vm279_vm0, %v1324_v21, 0.0 }
  0x56   : > { %v350_v9 = vadd.f32 %v349_v24, %v348_v37  ;;  %v1332_v24 = vld [vmem:[%s1059_s15 + $0x158] sm:$0xff]  ;;  %v701_v1 = vadd.f32 %v700_v25, %v699_v29  ;;  %v562_v37 = vmul.f32 %v1157_v54, %v1157_v54  ;;  %v706_v44 = vsel %vm279_vm0, %v561_v32, 0.0 }
  0x57   : > { %v365_v48 = vsel %vm279_vm0, %v1332_v24, 0.0 }
  0x58   : > { %v352_v52 = vadd.f32 %v351_v27, %v350_v9  ;;  %v1340_v27 = vld [vmem:[%s1059_s15 + $0x160] sm:$0xff]  ;;  %v703_v6 = vadd.f32 %v702_v35, %v701_v1  ;;  %v563_v9 = vmul.f32 %v1162_v57, %v1162_v57  ;;  %v708_v53 = vsel %vm279_vm0, %v562_v37, 0.0 }
  0x59   : > { %v367_v51 = vsel %vm279_vm0, %v1340_v27, 0.0 }
  0x5a   : > { %v354_v59 = vadd.f32 %v353_v30, %v352_v52  ;;  %v1348_v30 = vld [vmem:[%s1059_s15 + $0x168] sm:$0xff]  ;;  %v705_v49 = vadd.f32 %v704_v38, %v703_v6  ;;  %v564_v52 = vmul.f32 %v1167_v60, %v1167_v60  ;;  %v710_v61 = vsel %vm279_vm0, %v563_v9, 0.0 }
  0x5b   : > { %v369_v54 = vsel %vm279_vm0, %v1348_v30, 0.0 }
  0x5c   : > { %v356_v7 = vadd.f32 %v355_v33, %v354_v59  ;;  %v1356_v33 = vld [vmem:[%s1059_s15 + $0x170] sm:$0xff]  ;;  %v707_v58 = vadd.f32 %v706_v44, %v705_v49  ;;  %v565_v59 = vmul.f32 %v1172_v63, %v1172_v63  ;;  %v712_v8 = vsel %vm279_vm0, %v564_v52, 0.0 }
  0x5d   : > { %v371_v57 = vsel %vm279_vm0, %v1356_v33, 0.0 }
  0x5e   : > { %v358_v17 = vadd.f32 %v357_v36, %v356_v7  ;;  %v1364_v36 = vld [vmem:[%s1059_s15 + $0x178] sm:$0xff]  ;;  %v709_v4 = vadd.f32 %v708_v53, %v707_v58  ;;  %v566_v7 = vmul.f32 %v1177_v5, %v1177_v5  ;;  %v714_v20 = vsel %vm279_vm0, %v565_v59, 0.0 }
  0x5f   : > { %v373_v60 = vsel %vm279_vm0, %v1364_v36, 0.0 }
  0x60   : > { %v360_v26 = vadd.f32 %v359_v39, %v358_v17  ;;  %v1372_v39 = vld [vmem:[%s1059_s15 + $0x180] sm:$0xff]  ;;  %v711_v16 = vadd.f32 %v710_v61, %v709_v4  ;;  %v567_v17 = vmul.f32 %v1182_v10, %v1182_v10  ;;  %v716_v29 = vsel %vm279_vm0, %v566_v7, 0.0 }
  0x61   : > { %v375_v63 = vsel %vm279_vm0, %v1372_v39, 0.0 }
  0x62   : > { %v362_v0 = vadd.f32 %v361_v42, %v360_v26  ;;  %v1380_v42 = vld [vmem:[%s1059_s15 + $0x188] sm:$0xff]  ;;  %v713_v25 = vadd.f32 %v712_v8, %v711_v16  ;;  %v568_v26 = vmul.f32 %v1187_v14, %v1187_v14  ;;  %v718_v1 = vsel %vm279_vm0, %v567_v17, 0.0 }
  0x63   : > { %v377_v5 = vsel %vm279_vm0, %v1380_v42, 0.0 }
  0x64   : > { %v364_v41 = vadd.f32 %v363_v45, %v362_v0  ;;  %v1388_v45 = vld [vmem:[%s1059_s15 + $0x190] sm:$0xff]  ;;  %v715_v35 = vadd.f32 %v714_v20, %v713_v25  ;;  %v569_v0 = vmul.f32 %v1192_v19, %v1192_v19  ;;  %v720_v6 = vsel %vm279_vm0, %v568_v26, 0.0 }
  0x65   : > { %v379_v10 = vsel %vm279_vm0, %v1388_v45, 0.0 }
  0x66   : > { %v366_v47 = vadd.f32 %v365_v48, %v364_v41  ;;  %v1396_v48 = vld [vmem:[%s1059_s15 + $0x198] sm:$0xff]  ;;  %v717_v38 = vadd.f32 %v716_v29, %v715_v35  ;;  %v570_v41 = vmul.f32 %v1203_v28, %v1203_v28  ;;  %v722_v49 = vsel %vm279_vm0, %v569_v0, 0.0 }
  0x67   : > { %v381_v14 = vsel %vm279_vm0, %v1396_v48, 0.0 }
  0x68   : > { %v368_v56 = vadd.f32 %v367_v51, %v366_v47  ;;  %v1404_v51 = vld [vmem:[%s1059_s15 + $0x1a0] sm:$0xff]  ;;  %v719_v44 = vadd.f32 %v718_v1, %v717_v38  ;;  %v571_v47 = vmul.f32 %v1210_v34, %v1210_v34  ;;  %v724_v58 = vsel %vm279_vm0, %v570_v41, 0.0 }
  0x69   : > { %v383_v19 = vsel %vm279_vm0, %v1404_v51, 0.0 }
  0x6a   : > { %v370_v3 = vadd.f32 %v369_v54, %v368_v56  ;;  %v1412_v54 = vld [vmem:[%s1059_s15 + $0x1a8] sm:$0xff]  ;;  %v721_v53 = vadd.f32 %v720_v6, %v719_v44  ;;  %v572_v56 = vmul.f32 %v1220_v40, %v1220_v40  ;;  %v726_v4 = vsel %vm279_vm0, %v571_v47, 0.0 }
  0x6b   : > { %v385_v28 = vsel %vm279_vm0, %v1412_v54, 0.0 }
  0x6c   : > { %v372_v13 = vadd.f32 %v371_v57, %v370_v3  ;;  %v1420_v57 = vld [vmem:[%s1059_s15 + $0x1b0] sm:$0xff]  ;;  %v723_v61 = vadd.f32 %v722_v49, %v721_v53  ;;  %v573_v3 = vmul.f32 %v1228_v46, %v1228_v46  ;;  %v728_v16 = vsel %vm279_vm0, %v572_v56, 0.0 }
  0x6d   : > { %v387_v34 = vsel %vm279_vm0, %v1420_v57, 0.0 }
  0x6e   : > { %v374_v23 = vadd.f32 %v373_v60, %v372_v13  ;;  %v1428_v60 = vld [vmem:[%s1059_s15 + $0x1b8] sm:$0xff]  ;;  %v725_v8 = vadd.f32 %v724_v58, %v723_v61  ;;  %v574_v13 = vmul.f32 %v1236_v55, %v1236_v55  ;;  %v730_v25 = vsel %vm279_vm0, %v573_v3, 0.0 }
  0x6f   : > { %v389_v40 = vsel %vm279_vm0, %v1428_v60, 0.0 }
  0x70   : > { %v376_v32 = vadd.f32 %v375_v63, %v374_v23  ;;  %v1436_v63 = vld [vmem:[%s1059_s15 + $0x1c0] sm:$0xff]  ;;  %v727_v20 = vadd.f32 %v726_v4, %v725_v8  ;;  %v575_v23 = vmul.f32 %v1244_v62, %v1244_v62  ;;  %v732_v35 = vsel %vm279_vm0, %v574_v13, 0.0 }
  0x71   : > { %v391_v46 = vsel %vm279_vm0, %v1436_v63, 0.0 }
  0x72   : > { %v378_v37 = vadd.f32 %v377_v5, %v376_v32  ;;  %v1444_v5 = vld [vmem:[%s1059_s15 + $0x1c8] sm:$0xff]  ;;  %v729_v29 = vadd.f32 %v728_v16, %v727_v20  ;;  %v576_v32 = vmul.f32 %v1252_v11, %v1252_v11  ;;  %v734_v38 = vsel %vm279_vm0, %v575_v23, 0.0 }
  0x73   : > { %v393_v55 = vsel %vm279_vm0, %v1444_v5, 0.0 }
  0x74   : > { %v380_v9 = vadd.f32 %v379_v10, %v378_v37  ;;  %v1452_v10 = vld [vmem:[%s1059_s15 + $0x1d0] sm:$0xff]  ;;  %v731_v1 = vadd.f32 %v730_v25, %v729_v29  ;;  %v577_v37 = vmul.f32 %v1260_v22, %v1260_v22  ;;  %v736_v44 = vsel %vm279_vm0, %v576_v32, 0.0 }
  0x75   : > { %v395_v62 = vsel %vm279_vm0, %v1452_v10, 0.0 }
  0x76   : > { %v382_v52 = vadd.f32 %v381_v14, %v380_v9  ;;  %v1460_v14 = vld [vmem:[%s1059_s15 + $0x1d8] sm:$0xff]  ;;  %v733_v6 = vadd.f32 %v732_v35, %v731_v1  ;;  %v578_v9 = vmul.f32 %v1268_v31, %v1268_v31  ;;  %v738_v53 = vsel %vm279_vm0, %v577_v37, 0.0 }
  0x77   : > { %v397_v11 = vsel %vm279_vm0, %v1460_v14, 0.0 }
  0x78   : > { %v384_v59 = vadd.f32 %v383_v19, %v382_v52  ;;  %v1468_v19 = vld [vmem:[%s1059_s15 + $0x1e0] sm:$0xff]  ;;  %v735_v49 = vadd.f32 %v734_v38, %v733_v6  ;;  %v579_v52 = vmul.f32 %v1276_v2, %v1276_v2  ;;  %v740_v61 = vsel %vm279_vm0, %v578_v9, 0.0 }
  0x79   : > { %v399_v22 = vsel %vm279_vm0, %v1468_v19, 0.0 }
  0x7a   : > { %v386_v7 = vadd.f32 %v385_v28, %v384_v59  ;;  %v1476_v28 = vld [vmem:[%s1059_s15 + $0x1e8] sm:$0xff]  ;;  %v737_v58 = vadd.f32 %v736_v44, %v735_v49  ;;  %v580_v59 = vmul.f32 %v1284_v43, %v1284_v43  ;;  %v742_v8 = vsel %vm279_vm0, %v579_v52, 0.0 }
  0x7b   : > { %v401_v31 = vsel %vm279_vm0, %v1476_v28, 0.0 }
  0x7c   : > { %v388_v17 = vadd.f32 %v387_v34, %v386_v7  ;;  %v1484_v34 = vld [vmem:[%s1059_s15 + $0x1f0] sm:$0xff]  ;;  %v739_v4 = vadd.f32 %v738_v53, %v737_v58  ;;  %v581_v7 = vmul.f32 %v1292_v50, %v1292_v50  ;;  %v744_v20 = vsel %vm279_vm0, %v580_v59, 0.0 }
  0x7d   : > { %v403_v2 = vsel %vm279_vm0, %v1484_v34, 0.0 }
  0x7e   : > { %v390_v26 = vadd.f32 %v389_v40, %v388_v17  ;;  %v1492_v40 = vld [vmem:[%s1059_s15 + $0x1f8] sm:$0xff]  ;;  %v741_v16 = vadd.f32 %v740_v61, %v739_v4  ;;  %v582_v17 = vmul.f32 %v1300_v12, %v1300_v12  ;;  %v746_v29 = vsel %vm279_vm0, %v581_v7, 0.0 }
  0x7f   : > { %v405_v43 = vsel %vm279_vm0, %v1492_v40, 0.0 }
  0x80   : > { %v392_v0 = vadd.f32 %v391_v46, %v390_v26  ;;  %v1500_v46 = vld [vmem:[%s1059_s15 + $0x200] sm:$0xff]  ;;  %v743_v25 = vadd.f32 %v742_v8, %v741_v16  ;;  %v583_v26 = vmul.f32 %v1308_v15, %v1308_v15  ;;  %v748_v1 = vsel %vm279_vm0, %v582_v17, 0.0 }
  0x81   : > { %v407_v50 = vsel %vm279_vm0, %v1500_v46, 0.0 }
  0x82   : > { %v394_v41 = vadd.f32 %v393_v55, %v392_v0  ;;  %v1508_v55 = vld [vmem:[%s1059_s15 + $0x208] sm:$0xff]  ;;  %v745_v35 = vadd.f32 %v744_v20, %v743_v25  ;;  %v584_v0 = vmul.f32 %v1316_v18, %v1316_v18  ;;  %v750_v6 = vsel %vm279_vm0, %v583_v26, 0.0 }
  0x83   : > { %v409_v12 = vsel %vm279_vm0, %v1508_v55, 0.0 }
  0x84   : > { %v396_v47 = vadd.f32 %v395_v62, %v394_v41  ;;  %v1516_v62 = vld [vmem:[%s1059_s15 + $0x210] sm:$0xff]  ;;  %v747_v38 = vadd.f32 %v746_v29, %v745_v35  ;;  %v585_v41 = vmul.f32 %v1324_v21, %v1324_v21  ;;  %v752_v49 = vsel %vm279_vm0, %v584_v0, 0.0 }
  0x85   : > { %v411_v15 = vsel %vm279_vm0, %v1516_v62, 0.0 }
  0x86   : > { %v398_v56 = vadd.f32 %v397_v11, %v396_v47  ;;  %v1524_v11 = vld [vmem:[%s1059_s15 + $0x218] sm:$0xff]  ;;  %v749_v44 = vadd.f32 %v748_v1, %v747_v38  ;;  %v586_v47 = vmul.f32 %v1332_v24, %v1332_v24  ;;  %v754_v58 = vsel %vm279_vm0, %v585_v41, 0.0 }
  0x87   : > { %v413_v18 = vsel %vm279_vm0, %v1524_v11, 0.0 }
  0x88   : > { %v400_v3 = vadd.f32 %v399_v22, %v398_v56  ;;  %v1532_v22 = vld [vmem:[%s1059_s15 + $0x220] sm:$0xff]  ;;  %v751_v53 = vadd.f32 %v750_v6, %v749_v44  ;;  %v587_v56 = vmul.f32 %v1340_v27, %v1340_v27  ;;  %v756_v4 = vsel %vm279_vm0, %v586_v47, 0.0 }
  0x89   : > { %v415_v21 = vsel %vm279_vm0, %v1532_v22, 0.0 }
  0x8a   : > { %v402_v13 = vadd.f32 %v401_v31, %v400_v3  ;;  %v1540_v31 = vld [vmem:[%s1059_s15 + $0x228] sm:$0xff]  ;;  %v753_v61 = vadd.f32 %v752_v49, %v751_v53  ;;  %v588_v3 = vmul.f32 %v1348_v30, %v1348_v30  ;;  %v758_v16 = vsel %vm279_vm0, %v587_v56, 0.0 }
  0x8b   : > { %v417_v24 = vsel %vm279_vm0, %v1540_v31, 0.0 }
  0x8c   : > { %v404_v23 = vadd.f32 %v403_v2, %v402_v13  ;;  %v1548_v2 = vld [vmem:[%s1059_s15 + $0x230] sm:$0xff]  ;;  %v755_v8 = vadd.f32 %v754_v58, %v753_v61  ;;  %v589_v13 = vmul.f32 %v1356_v33, %v1356_v33  ;;  %v760_v25 = vsel %vm279_vm0, %v588_v3, 0.0 }
  0x8d   : > { %v419_v27 = vsel %vm279_vm0, %v1548_v2, 0.0 }
  0x8e   : > { %v406_v32 = vadd.f32 %v405_v43, %v404_v23  ;;  %v1556_v43 = vld [vmem:[%s1059_s15 + $0x238] sm:$0xff]  ;;  %v757_v20 = vadd.f32 %v756_v4, %v755_v8  ;;  %v590_v23 = vmul.f32 %v1364_v36, %v1364_v36  ;;  %v762_v35 = vsel %vm279_vm0, %v589_v13, 0.0 }
  0x8f   : > { %v421_v30 = vsel %vm279_vm0, %v1556_v43, 0.0 }
  0x90   : > { %v408_v37 = vadd.f32 %v407_v50, %v406_v32  ;;  %v1564_v50 = vld [vmem:[%s1059_s15 + $0x240] sm:$0xff]  ;;  %v759_v29 = vadd.f32 %v758_v16, %v757_v20  ;;  %v591_v32 = vmul.f32 %v1372_v39, %v1372_v39  ;;  %v764_v38 = vsel %vm279_vm0, %v590_v23, 0.0 }
  0x91   : > { %v423_v33 = vsel %vm279_vm0, %v1564_v50, 0.0 }
  0x92   : > { %v410_v9 = vadd.f32 %v409_v12, %v408_v37  ;;  %v1572_v12 = vld [vmem:[%s1059_s15 + $0x248] sm:$0xff]  ;;  %v761_v1 = vadd.f32 %v760_v25, %v759_v29  ;;  %v592_v37 = vmul.f32 %v1380_v42, %v1380_v42  ;;  %v766_v44 = vsel %vm279_vm0, %v591_v32, 0.0 }
  0x93   : > { %v425_v36 = vsel %vm279_vm0, %v1572_v12, 0.0 }
  0x94   : > { %v412_v52 = vadd.f32 %v411_v15, %v410_v9  ;;  %v1580_v15 = vld [vmem:[%s1059_s15 + $0x250] sm:$0xff]  ;;  %v763_v6 = vadd.f32 %v762_v35, %v761_v1  ;;  %v593_v9 = vmul.f32 %v1388_v45, %v1388_v45  ;;  %v768_v53 = vsel %vm279_vm0, %v592_v37, 0.0 }
  0x95   : > { %v427_v39 = vsel %vm279_vm0, %v1580_v15, 0.0 }
  0x96   : > { %v414_v59 = vadd.f32 %v413_v18, %v412_v52  ;;  %v1588_v18 = vld [vmem:[%s1059_s15 + $0x258] sm:$0xff]  ;;  %v765_v49 = vadd.f32 %v764_v38, %v763_v6  ;;  %v594_v52 = vmul.f32 %v1396_v48, %v1396_v48  ;;  %v770_v61 = vsel %vm279_vm0, %v593_v9, 0.0 }
  0x97   : > { %v429_v42 = vsel %vm279_vm0, %v1588_v18, 0.0 }
  0x98   : > { %v416_v7 = vadd.f32 %v415_v21, %v414_v59  ;;  %v1596_v21 = vld [vmem:[%s1059_s15 + $0x260] sm:$0xff]  ;;  %v767_v58 = vadd.f32 %v766_v44, %v765_v49  ;;  %v595_v59 = vmul.f32 %v1404_v51, %v1404_v51  ;;  %v772_v8 = vsel %vm279_vm0, %v594_v52, 0.0 }
  0x99   : > { %v431_v45 = vsel %vm279_vm0, %v1596_v21, 0.0 }
  0x9a   : > { %v418_v17 = vadd.f32 %v417_v24, %v416_v7  ;;  %v1604_v24 = vld [vmem:[%s1059_s15 + $0x268] sm:$0xff]  ;;  %v769_v4 = vadd.f32 %v768_v53, %v767_v58  ;;  %v596_v7 = vmul.f32 %v1412_v54, %v1412_v54  ;;  %v774_v20 = vsel %vm279_vm0, %v595_v59, 0.0 }
  0x9b   : > { %v433_v48 = vsel %vm279_vm0, %v1604_v24, 0.0 }
  0x9c   : > { %v420_v26 = vadd.f32 %v419_v27, %v418_v17  ;;  %v1612_v27 = vld [vmem:[%s1059_s15 + $0x270] sm:$0xff]  ;;  %v771_v16 = vadd.f32 %v770_v61, %v769_v4  ;;  %v597_v17 = vmul.f32 %v1420_v57, %v1420_v57  ;;  %v776_v29 = vsel %vm279_vm0, %v596_v7, 0.0 }
  0x9d   : > { %v435_v51 = vsel %vm279_vm0, %v1612_v27, 0.0 }
  0x9e   : > { %v422_v0 = vadd.f32 %v421_v30, %v420_v26  ;;  %v1620_v30 = vld [vmem:[%s1059_s15 + $0x278] sm:$0xff]  ;;  %v773_v25 = vadd.f32 %v772_v8, %v771_v16  ;;  %v598_v26 = vmul.f32 %v1428_v60, %v1428_v60  ;;  %v778_v1 = vsel %vm279_vm0, %v597_v17, 0.0 }
  0x9f   : > { %v437_v54 = vsel %vm279_vm0, %v1620_v30, 0.0 }
  0xa0   : > { %v424_v41 = vadd.f32 %v423_v33, %v422_v0  ;;  %v1628_v33 = vld [vmem:[%s1059_s15 + $0x280] sm:$0xff]  ;;  %v775_v35 = vadd.f32 %v774_v20, %v773_v25  ;;  %v599_v0 = vmul.f32 %v1436_v63, %v1436_v63  ;;  %v780_v6 = vsel %vm279_vm0, %v598_v26, 0.0 }
  0xa1   : > { %v439_v57 = vsel %vm279_vm0, %v1628_v33, 0.0 }
  0xa2   : > { %v426_v47 = vadd.f32 %v425_v36, %v424_v41  ;;  %v1636_v36 = vld [vmem:[%s1059_s15 + $0x288] sm:$0xff]  ;;  %v777_v38 = vadd.f32 %v776_v29, %v775_v35  ;;  %v600_v41 = vmul.f32 %v1444_v5, %v1444_v5  ;;  %v782_v49 = vsel %vm279_vm0, %v599_v0, 0.0 }
  0xa3   : > { %v441_v60 = vsel %vm279_vm0, %v1636_v36, 0.0 }
  0xa4   : > { %v428_v56 = vadd.f32 %v427_v39, %v426_v47  ;;  %v1644_v39 = vld [vmem:[%s1059_s15 + $0x290] sm:$0xff]  ;;  %v779_v44 = vadd.f32 %v778_v1, %v777_v38  ;;  %v601_v47 = vmul.f32 %v1452_v10, %v1452_v10  ;;  %v784_v58 = vsel %vm279_vm0, %v600_v41, 0.0 }
  0xa5   : > { %v443_v63 = vsel %vm279_vm0, %v1644_v39, 0.0 }
  0xa6   : > { %v430_v3 = vadd.f32 %v429_v42, %v428_v56  ;;  %v1652_v42 = vld [vmem:[%s1059_s15 + $0x298] sm:$0xff]  ;;  %v781_v53 = vadd.f32 %v780_v6, %v779_v44  ;;  %v602_v56 = vmul.f32 %v1460_v14, %v1460_v14  ;;  %v786_v4 = vsel %vm279_vm0, %v601_v47, 0.0 }
  0xa7   : > { %v445_v5 = vsel %vm279_vm0, %v1652_v42, 0.0 }
  0xa8   : > { %v432_v13 = vadd.f32 %v431_v45, %v430_v3  ;;  %v1660_v45 = vld [vmem:[%s1059_s15 + $0x2a0] sm:$0xff]  ;;  %v783_v61 = vadd.f32 %v782_v49, %v781_v53  ;;  %v603_v3 = vmul.f32 %v1468_v19, %v1468_v19  ;;  %v788_v16 = vsel %vm279_vm0, %v602_v56, 0.0 }
  0xa9   : > { %v447_v10 = vsel %vm279_vm0, %v1660_v45, 0.0 }
  0xaa   : > { %v434_v23 = vadd.f32 %v433_v48, %v432_v13  ;;  %v1668_v48 = vld [vmem:[%s1059_s15 + $0x2a8] sm:$0xff]  ;;  %v785_v8 = vadd.f32 %v784_v58, %v783_v61  ;;  %v604_v13 = vmul.f32 %v1476_v28, %v1476_v28  ;;  %v790_v25 = vsel %vm279_vm0, %v603_v3, 0.0 }
  0xab   : > { %v449_v14 = vsel %vm279_vm0, %v1668_v48, 0.0 }
  0xac   : > { %v436_v32 = vadd.f32 %v435_v51, %v434_v23  ;;  %v1676_v51 = vld [vmem:[%s1059_s15 + $0x2b0] sm:$0xff]  ;;  %v787_v20 = vadd.f32 %v786_v4, %v785_v8  ;;  %v605_v23 = vmul.f32 %v1484_v34, %v1484_v34  ;;  %v792_v35 = vsel %vm279_vm0, %v604_v13, 0.0 }
  0xad   : > { %v451_v19 = vsel %vm279_vm0, %v1676_v51, 0.0 }
  0xae   : > { %v438_v37 = vadd.f32 %v437_v54, %v436_v32  ;;  %v1684_v54 = vld [vmem:[%s1059_s15 + $0x2b8] sm:$0xff]  ;;  %v789_v29 = vadd.f32 %v788_v16, %v787_v20  ;;  %v606_v32 = vmul.f32 %v1492_v40, %v1492_v40  ;;  %v794_v38 = vsel %vm279_vm0, %v605_v23, 0.0 }
  0xaf   : > { %v453_v28 = vsel %vm279_vm0, %v1684_v54, 0.0 }
  0xb0   : > { %v440_v9 = vadd.f32 %v439_v57, %v438_v37  ;;  %v1692_v57 = vld [vmem:[%s1059_s15 + $0x2c0] sm:$0xff]  ;;  %v791_v1 = vadd.f32 %v790_v25, %v789_v29  ;;  %v607_v37 = vmul.f32 %v1500_v46, %v1500_v46  ;;  %v796_v44 = vsel %vm279_vm0, %v606_v32, 0.0 }
  0xb1   : > { %v455_v34 = vsel %vm279_vm0, %v1692_v57, 0.0 }
  0xb2   : > { %v442_v52 = vadd.f32 %v441_v60, %v440_v9  ;;  %v1700_v60 = vld [vmem:[%s1059_s15 + $0x2c8] sm:$0xff]  ;;  %v793_v6 = vadd.f32 %v792_v35, %v791_v1  ;;  %v608_v9 = vmul.f32 %v1508_v55, %v1508_v55  ;;  %v798_v53 = vsel %vm279_vm0, %v607_v37, 0.0 }
  0xb3   : > { %v457_v40 = vsel %vm279_vm0, %v1700_v60, 0.0 }
  0xb4   : > { %v444_v59 = vadd.f32 %v443_v63, %v442_v52  ;;  %v1708_v63 = vld [vmem:[%s1059_s15 + $0x2d0] sm:$0xff]  ;;  %v795_v49 = vadd.f32 %v794_v38, %v793_v6  ;;  %v609_v52 = vmul.f32 %v1516_v62, %v1516_v62  ;;  %v800_v61 = vsel %vm279_vm0, %v608_v9, 0.0 }
  0xb5   : > { %v459_v46 = vsel %vm279_vm0, %v1708_v63, 0.0 }
  0xb6   : > { %v446_v7 = vadd.f32 %v445_v5, %v444_v59  ;;  %v1716_v5 = vld [vmem:[%s1059_s15 + $0x2d8] sm:$0xff]  ;;  %v797_v58 = vadd.f32 %v796_v44, %v795_v49  ;;  %v610_v59 = vmul.f32 %v1524_v11, %v1524_v11  ;;  %v802_v8 = vsel %vm279_vm0, %v609_v52, 0.0 }
  0xb7   : > { %v461_v55 = vsel %vm279_vm0, %v1716_v5, 0.0 }
  0xb8   : > { %v448_v17 = vadd.f32 %v447_v10, %v446_v7  ;;  %v1724_v10 = vld [vmem:[%s1059_s15 + $0x2e0] sm:$0xff]  ;;  %v799_v4 = vadd.f32 %v798_v53, %v797_v58  ;;  %v611_v7 = vmul.f32 %v1532_v22, %v1532_v22  ;;  %v804_v20 = vsel %vm279_vm0, %v610_v59, 0.0 }
  0xb9   : > { %v463_v62 = vsel %vm279_vm0, %v1724_v10, 0.0 }
  0xba   : > { %v450_v26 = vadd.f32 %v449_v14, %v448_v17  ;;  %v1732_v14 = vld [vmem:[%s1059_s15 + $0x2e8] sm:$0xff]  ;;  %v801_v16 = vadd.f32 %v800_v61, %v799_v4  ;;  %v612_v17 = vmul.f32 %v1540_v31, %v1540_v31  ;;  %v806_v29 = vsel %vm279_vm0, %v611_v7, 0.0 }
  0xbb   : > { %v465_v11 = vsel %vm279_vm0, %v1732_v14, 0.0 }
  0xbc   : > { %v452_v0 = vadd.f32 %v451_v19, %v450_v26  ;;  %v1740_v19 = vld [vmem:[%s1059_s15 + $0x2f0] sm:$0xff]  ;;  %v803_v25 = vadd.f32 %v802_v8, %v801_v16  ;;  %v613_v26 = vmul.f32 %v1548_v2, %v1548_v2  ;;  %v808_v1 = vsel %vm279_vm0, %v612_v17, 0.0 }
  0xbd   : > { %v467_v22 = vsel %vm279_vm0, %v1740_v19, 0.0 }
  0xbe   : > { %v454_v41 = vadd.f32 %v453_v28, %v452_v0  ;;  %v1748_v28 = vld [vmem:[%s1059_s15 + $0x2f8] sm:$0xff]  ;;  %v805_v35 = vadd.f32 %v804_v20, %v803_v25  ;;  %v614_v0 = vmul.f32 %v1556_v43, %v1556_v43  ;;  %v810_v6 = vsel %vm279_vm0, %v613_v26, 0.0 }
  0xbf   : > { %v469_v31 = vsel %vm279_vm0, %v1748_v28, 0.0 }
  0xc0   : > { %v456_v47 = vadd.f32 %v455_v34, %v454_v41  ;;  %v1756_v34 = vld [vmem:[%s1059_s15 + $0x300] sm:$0xff]  ;;  %v807_v38 = vadd.f32 %v806_v29, %v805_v35  ;;  %v615_v41 = vmul.f32 %v1564_v50, %v1564_v50  ;;  %v812_v49 = vsel %vm279_vm0, %v614_v0, 0.0 }
  0xc1   : > { %v471_v2 = vsel %vm279_vm0, %v1756_v34, 0.0 }
  0xc2   : > { %v458_v56 = vadd.f32 %v457_v40, %v456_v47  ;;  %v1764_v40 = vld [vmem:[%s1059_s15 + $0x308] sm:$0xff]  ;;  %v809_v44 = vadd.f32 %v808_v1, %v807_v38  ;;  %v616_v47 = vmul.f32 %v1572_v12, %v1572_v12  ;;  %v814_v58 = vsel %vm279_vm0, %v615_v41, 0.0 }
  0xc3   : > { %v473_v43 = vsel %vm279_vm0, %v1764_v40, 0.0 }
  0xc4   : > { %v460_v3 = vadd.f32 %v459_v46, %v458_v56  ;;  %v1772_v46 = vld [vmem:[%s1059_s15 + $0x310] sm:$0xff]  ;;  %v811_v53 = vadd.f32 %v810_v6, %v809_v44  ;;  %v617_v56 = vmul.f32 %v1580_v15, %v1580_v15  ;;  %v816_v4 = vsel %vm279_vm0, %v616_v47, 0.0 }
  0xc5   : > { %v475_v50 = vsel %vm279_vm0, %v1772_v46, 0.0 }
  0xc6   : > { %v462_v13 = vadd.f32 %v461_v55, %v460_v3  ;;  %v1780_v55 = vld [vmem:[%s1059_s15 + $0x318] sm:$0xff]  ;;  %v813_v61 = vadd.f32 %v812_v49, %v811_v53  ;;  %v618_v3 = vmul.f32 %v1588_v18, %v1588_v18  ;;  %v818_v16 = vsel %vm279_vm0, %v617_v56, 0.0 }
  0xc7   : > { %v477_v12 = vsel %vm279_vm0, %v1780_v55, 0.0 }
  0xc8   : > { %v464_v23 = vadd.f32 %v463_v62, %v462_v13  ;;  %v1788_v62 = vld [vmem:[%s1059_s15 + $0x320] sm:$0xff]  ;;  %v815_v8 = vadd.f32 %v814_v58, %v813_v61  ;;  %v619_v13 = vmul.f32 %v1596_v21, %v1596_v21  ;;  %v820_v25 = vsel %vm279_vm0, %v618_v3, 0.0 }
  0xc9   : > { %v479_v15 = vsel %vm279_vm0, %v1788_v62, 0.0 }
  0xca   : > { %v466_v32 = vadd.f32 %v465_v11, %v464_v23  ;;  %v1796_v11 = vld [vmem:[%s1059_s15 + $0x328] sm:$0xff]  ;;  %v817_v20 = vadd.f32 %v816_v4, %v815_v8  ;;  %v620_v23 = vmul.f32 %v1604_v24, %v1604_v24  ;;  %v822_v35 = vsel %vm279_vm0, %v619_v13, 0.0 }
  0xcb   : > { %v481_v18 = vsel %vm279_vm0, %v1796_v11, 0.0 }
  0xcc   : > { %v468_v37 = vadd.f32 %v467_v22, %v466_v32  ;;  %v1804_v22 = vld [vmem:[%s1059_s15 + $0x330] sm:$0xff]  ;;  %v819_v29 = vadd.f32 %v818_v16, %v817_v20  ;;  %v621_v32 = vmul.f32 %v1612_v27, %v1612_v27  ;;  %v824_v38 = vsel %vm279_vm0, %v620_v23, 0.0 }
  0xcd   : > { %v483_v21 = vsel %vm279_vm0, %v1804_v22, 0.0 }
  0xce   : > { %v470_v9 = vadd.f32 %v469_v31, %v468_v37  ;;  %v1812_v31 = vld [vmem:[%s1059_s15 + $0x338] sm:$0xff]  ;;  %v821_v1 = vadd.f32 %v820_v25, %v819_v29  ;;  %v622_v37 = vmul.f32 %v1620_v30, %v1620_v30  ;;  %v826_v44 = vsel %vm279_vm0, %v621_v32, 0.0 }
  0xcf   : > { %v485_v24 = vsel %vm279_vm0, %v1812_v31, 0.0 }
  0xd0   : > { %v472_v52 = vadd.f32 %v471_v2, %v470_v9  ;;  %v1820_v2 = vld [vmem:[%s1059_s15 + $0x340] sm:$0xff]  ;;  %v823_v6 = vadd.f32 %v822_v35, %v821_v1  ;;  %v623_v9 = vmul.f32 %v1628_v33, %v1628_v33  ;;  %v828_v53 = vsel %vm279_vm0, %v622_v37, 0.0 }
  0xd1   : > { %v487_v27 = vsel %vm279_vm0, %v1820_v2, 0.0 }
  0xd2   : > { %v474_v59 = vadd.f32 %v473_v43, %v472_v52  ;;  %v1828_v43 = vld [vmem:[%s1059_s15 + $0x348] sm:$0xff]  ;;  %v825_v49 = vadd.f32 %v824_v38, %v823_v6  ;;  %v624_v52 = vmul.f32 %v1636_v36, %v1636_v36  ;;  %v830_v61 = vsel %vm279_vm0, %v623_v9, 0.0 }
  0xd3   : > { %v489_v30 = vsel %vm279_vm0, %v1828_v43, 0.0 }
  0xd4   : > { %v476_v7 = vadd.f32 %v475_v50, %v474_v59  ;;  %v1836_v50 = vld [vmem:[%s1059_s15 + $0x350] sm:$0xff]  ;;  %v827_v58 = vadd.f32 %v826_v44, %v825_v49  ;;  %v625_v59 = vmul.f32 %v1644_v39, %v1644_v39  ;;  %v832_v8 = vsel %vm279_vm0, %v624_v52, 0.0 }
  0xd5   : > { %v491_v33 = vsel %vm279_vm0, %v1836_v50, 0.0 }
  0xd6   : > { %v478_v17 = vadd.f32 %v477_v12, %v476_v7  ;;  %v1844_v12 = vld [vmem:[%s1059_s15 + $0x358] sm:$0xff]  ;;  %v829_v4 = vadd.f32 %v828_v53, %v827_v58  ;;  %v626_v7 = vmul.f32 %v1652_v42, %v1652_v42  ;;  %v834_v20 = vsel %vm279_vm0, %v625_v59, 0.0 }
  0xd7   : > { %v493_v36 = vsel %vm279_vm0, %v1844_v12, 0.0 }
  0xd8   : > { %v480_v26 = vadd.f32 %v479_v15, %v478_v17  ;;  %v1852_v15 = vld [vmem:[%s1059_s15 + $0x360] sm:$0xff]  ;;  %v831_v16 = vadd.f32 %v830_v61, %v829_v4  ;;  %v627_v17 = vmul.f32 %v1660_v45, %v1660_v45  ;;  %v836_v29 = vsel %vm279_vm0, %v626_v7, 0.0 }
  0xd9   : > { %v495_v39 = vsel %vm279_vm0, %v1852_v15, 0.0 }
  0xda   : > { %v482_v0 = vadd.f32 %v481_v18, %v480_v26  ;;  %v1860_v18 = vld [vmem:[%s1059_s15 + $0x368] sm:$0xff]  ;;  %v833_v25 = vadd.f32 %v832_v8, %v831_v16  ;;  %v628_v26 = vmul.f32 %v1668_v48, %v1668_v48  ;;  %v838_v1 = vsel %vm279_vm0, %v627_v17, 0.0 }
  0xdb   : > { %v497_v42 = vsel %vm279_vm0, %v1860_v18, 0.0 }
  0xdc   : > { %v484_v41 = vadd.f32 %v483_v21, %v482_v0  ;;  %v1868_v21 = vld [vmem:[%s1059_s15 + $0x370] sm:$0xff]  ;;  %v835_v35 = vadd.f32 %v834_v20, %v833_v25  ;;  %v629_v0 = vmul.f32 %v1676_v51, %v1676_v51  ;;  %v840_v6 = vsel %vm279_vm0, %v628_v26, 0.0 }
  0xdd   : > { %v499_v45 = vsel %vm279_vm0, %v1868_v21, 0.0 }
  0xde   : > { %v486_v47 = vadd.f32 %v485_v24, %v484_v41  ;;  %v1876_v24 = vld [vmem:[%s1059_s15 + $0x378] sm:$0xff]  ;;  %v837_v38 = vadd.f32 %v836_v29, %v835_v35  ;;  %v630_v41 = vmul.f32 %v1684_v54, %v1684_v54  ;;  %v842_v49 = vsel %vm279_vm0, %v629_v0, 0.0 }
  0xdf   : > { %v501_v48 = vsel %vm279_vm0, %v1876_v24, 0.0 }
  0xe0   : > { %v488_v56 = vadd.f32 %v487_v27, %v486_v47  ;;  %v1884_v27 = vld [vmem:[%s1059_s15 + $0x380] sm:$0xff]  ;;  %v839_v44 = vadd.f32 %v838_v1, %v837_v38  ;;  %v631_v47 = vmul.f32 %v1692_v57, %v1692_v57  ;;  %v844_v58 = vsel %vm279_vm0, %v630_v41, 0.0 }
  0xe1   : > { %v503_v51 = vsel %vm279_vm0, %v1884_v27, 0.0 }
  0xe2   : > { %v490_v3 = vadd.f32 %v489_v30, %v488_v56  ;;  %v1892_v30 = vld [vmem:[%s1059_s15 + $0x388] sm:$0xff]  ;;  %v841_v53 = vadd.f32 %v840_v6, %v839_v44  ;;  %v632_v56 = vmul.f32 %v1700_v60, %v1700_v60  ;;  %v846_v4 = vsel %vm279_vm0, %v631_v47, 0.0 }
  0xe3   : > { %v505_v54 = vsel %vm279_vm0, %v1892_v30, 0.0 }
  0xe4   : > { %v492_v13 = vadd.f32 %v491_v33, %v490_v3  ;;  %v1900_v33 = vld [vmem:[%s1059_s15 + $0x390] sm:$0xff]  ;;  %v843_v61 = vadd.f32 %v842_v49, %v841_v53  ;;  %v633_v3 = vmul.f32 %v1708_v63, %v1708_v63  ;;  %v848_v16 = vsel %vm279_vm0, %v632_v56, 0.0 }
  0xe5   : > { %v507_v57 = vsel %vm279_vm0, %v1900_v33, 0.0 }
  0xe6   : > { %v494_v23 = vadd.f32 %v493_v36, %v492_v13  ;;  %v1908_v36 = vld [vmem:[%s1059_s15 + $0x398] sm:$0xff]  ;;  %v845_v8 = vadd.f32 %v844_v58, %v843_v61  ;;  %v634_v13 = vmul.f32 %v1716_v5, %v1716_v5  ;;  %v850_v25 = vsel %vm279_vm0, %v633_v3, 0.0 }
  0xe7   : > { %v509_v60 = vsel %vm279_vm0, %v1908_v36, 0.0 }
  0xe8   : > { %v496_v32 = vadd.f32 %v495_v39, %v494_v23  ;;  %v1916_v39 = vld [vmem:[%s1059_s15 + $0x3a0] sm:$0xff]  ;;  %v847_v20 = vadd.f32 %v846_v4, %v845_v8  ;;  %v635_v23 = vmul.f32 %v1724_v10, %v1724_v10  ;;  %v852_v35 = vsel %vm279_vm0, %v634_v13, 0.0 }
  0xe9   : > { %v511_v63 = vsel %vm279_vm0, %v1916_v39, 0.0 }
  0xea   : > { %v498_v37 = vadd.f32 %v497_v42, %v496_v32  ;;  %v1924_v42 = vld [vmem:[%s1059_s15 + $0x3a8] sm:$0xff]  ;;  %v849_v29 = vadd.f32 %v848_v16, %v847_v20  ;;  %v636_v32 = vmul.f32 %v1732_v14, %v1732_v14  ;;  %v854_v38 = vsel %vm279_vm0, %v635_v23, 0.0 }
  0xeb   : > { %v513_v5 = vsel %vm279_vm0, %v1924_v42, 0.0 }
  0xec   : > { %v500_v9 = vadd.f32 %v499_v45, %v498_v37  ;;  %v1932_v45 = vld [vmem:[%s1059_s15 + $0x3b0] sm:$0xff]  ;;  %v851_v1 = vadd.f32 %v850_v25, %v849_v29  ;;  %v637_v37 = vmul.f32 %v1740_v19, %v1740_v19  ;;  %v856_v44 = vsel %vm279_vm0, %v636_v32, 0.0 }
  0xed   : > { %v515_v10 = vsel %vm279_vm0, %v1932_v45, 0.0 }
  0xee   : > { %v502_v52 = vadd.f32 %v501_v48, %v500_v9  ;;  %v1940_v48 = vld [vmem:[%s1059_s15 + $0x3b8] sm:$0xff]  ;;  %v853_v6 = vadd.f32 %v852_v35, %v851_v1  ;;  %v638_v9 = vmul.f32 %v1748_v28, %v1748_v28  ;;  %v858_v53 = vsel %vm279_vm0, %v637_v37, 0.0 }
  0xef   : > { %v517_v14 = vsel %vm279_vm0, %v1940_v48, 0.0 }
  0xf0   : > { %v504_v59 = vadd.f32 %v503_v51, %v502_v52  ;;  %v1948_v51 = vld [vmem:[%s1059_s15 + $0x3c0] sm:$0xff]  ;;  %v855_v49 = vadd.f32 %v854_v38, %v853_v6  ;;  %v639_v52 = vmul.f32 %v1756_v34, %v1756_v34  ;;  %v860_v61 = vsel %vm279_vm0, %v638_v9, 0.0 }
  0xf1   : > { %v519_v19 = vsel %vm279_vm0, %v1948_v51, 0.0 }
  0xf2   : > { %v506_v7 = vadd.f32 %v505_v54, %v504_v59  ;;  %v1956_v54 = vld [vmem:[%s1059_s15 + $0x3c8] sm:$0xff]  ;;  %v857_v58 = vadd.f32 %v856_v44, %v855_v49  ;;  %v640_v59 = vmul.f32 %v1764_v40, %v1764_v40  ;;  %v862_v8 = vsel %vm279_vm0, %v639_v52, 0.0 }
  0xf3   : > { %v521_v28 = vsel %vm279_vm0, %v1956_v54, 0.0 }
  0xf4   : > { %v508_v17 = vadd.f32 %v507_v57, %v506_v7  ;;  %v1964_v57 = vld [vmem:[%s1059_s15 + $0x3d0] sm:$0xff]  ;;  %v859_v4 = vadd.f32 %v858_v53, %v857_v58  ;;  %v641_v7 = vmul.f32 %v1772_v46, %v1772_v46  ;;  %v864_v20 = vsel %vm279_vm0, %v640_v59, 0.0 }
  0xf5   : > { %v523_v34 = vsel %vm279_vm0, %v1964_v57, 0.0 }
  0xf6   : > { %v510_v26 = vadd.f32 %v509_v60, %v508_v17  ;;  %v1972_v60 = vld [vmem:[%s1059_s15 + $0x3d8] sm:$0xff]  ;;  %v861_v16 = vadd.f32 %v860_v61, %v859_v4  ;;  %v642_v17 = vmul.f32 %v1780_v55, %v1780_v55  ;;  %v866_v29 = vsel %vm279_vm0, %v641_v7, 0.0 }
  0xf7   : > { %v525_v40 = vsel %vm279_vm0, %v1972_v60, 0.0  ;;  %v650_v7 = vmul.f32 %v1844_v12, %v1844_v12 }
  0xf8   : > { %v512_v0 = vadd.f32 %v511_v63, %v510_v26  ;;  %v1980_v63 = vld [vmem:[%s1059_s15 + $0x3e0] sm:$0xff]  ;;  %v863_v25 = vadd.f32 %v862_v8, %v861_v16  ;;  %v643_v26 = vmul.f32 %v1788_v62, %v1788_v62  ;;  %v868_v1 = vsel %vm279_vm0, %v642_v17, 0.0 }
  0xf9   : > { %v527_v46 = vsel %vm279_vm0, %v1980_v63, 0.0 }
  0xfa   : > { %v514_v41 = vadd.f32 %v513_v5, %v512_v0  ;;  %v1988_v5 = vld [vmem:[%s1059_s15 + $0x3e8] sm:$0xff]  ;;  %v865_v35 = vadd.f32 %v864_v20, %v863_v25  ;;  %v644_v0 = vmul.f32 %v1796_v11, %v1796_v11  ;;  %v870_v6 = vsel %vm279_vm0, %v643_v26, 0.0 }
  0xfb   : > { %v529_v55 = vsel %vm279_vm0, %v1988_v5, 0.0  ;;  %v652_v20 = vmul.f32 %v1860_v18, %v1860_v18 }
  0xfc   : > { %v516_v47 = vadd.f32 %v515_v10, %v514_v41  ;;  %v1996_v10 = vld [vmem:[%s1059_s15 + $0x3f0] sm:$0xff]  ;;  %v867_v38 = vadd.f32 %v866_v29, %v865_v35  ;;  %v645_v41 = vmul.f32 %v1804_v22, %v1804_v22  ;;  %v872_v49 = vsel %vm279_vm0, %v644_v0, 0.0 }
  0xfd   : > { %v531_v62 = vsel %vm279_vm0, %v1996_v10, 0.0  ;;  %v647_v22 = vmul.f32 %v1820_v2, %v1820_v2  ;;  %v888_v18 = vsel %vm279_vm0, %v652_v20, 0.0 }
  0xfe   : > { %v518_v56 = vadd.f32 %v517_v14, %v516_v47  ;;  %v2004_v14 = vld [vmem:[%s1059_s15 + $0x3f8] sm:$0xff]  ;;  %v869_v44 = vadd.f32 %v868_v1, %v867_v38  ;;  %v646_v47 = vmul.f32 %v1812_v31, %v1812_v31  ;;  %v874_v53 = vsel %vm279_vm0, %v645_v41, 0.0 }
  0xff   : > { %v533_v11 = vsel %vm279_vm0, %v2004_v14, 0.0  ;;  %v649_v31 = vmul.f32 %v1836_v50, %v1836_v50  ;;  %v878_v4 = vsel %vm279_vm0, %v647_v22, 0.0  ;;  %v662_v22 = vmul.f32 %v1940_v48, %v1940_v48 }
 0x100   : > { %v520_v3 = vadd.f32 %v519_v19, %v518_v56  ;;  %v871_v52 = vadd.f32 %v870_v6, %v869_v44  ;;  %v876_v59 = vsel %vm279_vm0, %v646_v47, 0.0  ;;  %v658_v6 = vmul.f32 %v1908_v36, %v1908_v36 }
 0x101   : > { %v659_v44 = vmul.f32 %v1916_v39, %v1916_v39  ;;  %v660_v47 = vmul.f32 %v1924_v42, %v1924_v42 }
 0x102   : > { %v522_v13 = vadd.f32 %v521_v28, %v520_v3  ;;  %v873_v58 = vadd.f32 %v872_v49, %v871_v52  ;;  %v648_v28 = vmul.f32 %v1828_v43, %v1828_v43  ;;  %v651_v43 = vmul.f32 %v1852_v15, %v1852_v15 }
 0x103   : > { %v902_v36 = vsel %vm279_vm0, %v659_v44, 0.0  ;;  %v904_v39 = vsel %vm279_vm0, %v660_v47, 0.0 }
 0x104   : > { %v524_v23 = vadd.f32 %v523_v34, %v522_v13  ;;  %v875_v3 = vadd.f32 %v874_v53, %v873_v58  ;;  %v880_v8 = vsel %vm279_vm0, %v648_v28, 0.0  ;;  %v886_v15 = vsel %vm279_vm0, %v651_v43, 0.0 }
 0x105   : > { %v664_v28 = vmul.f32 %v1956_v54, %v1956_v54  ;;  %v670_v43 = vmul.f32 %v2004_v14, %v2004_v14 }
 0x106   : > { %v526_v32 = vadd.f32 %v525_v40, %v524_v23  ;;  %v877_v2 = vadd.f32 %v876_v59, %v875_v3  ;;  %v882_v40 = vsel %vm279_vm0, %v649_v31, 0.0  ;;  %v884_v23 = vsel %vm279_vm0, %v650_v7, 0.0 }
 0x107   : > { %v666_v31 = vmul.f32 %v1972_v60, %v1972_v60  ;;  %v668_v7 = vmul.f32 %v1988_v5, %v1988_v5  ;;  %v924_v5 = vsel %vm279_vm0, %v670_v43, 0.0 }
 0x108   : > { %v528_v37 = vadd.f32 %v527_v46, %v526_v32  ;;  %v879_v16 = vadd.f32 %v878_v4, %v877_v2  ;;  %v653_v46 = vmul.f32 %v1868_v21, %v1868_v21  ;;  %v654_v32 = vmul.f32 %v1876_v24, %v1876_v24 }
 0x109   : > { %v656_v21 = vmul.f32 %v1892_v30, %v1892_v30  ;;  %v657_v24 = vmul.f32 %v1900_v33, %v1900_v33  ;;  %v900_v33 = vsel %vm279_vm0, %v658_v6, 0.0 }
 0x10a   : > { %v530_v9 = vadd.f32 %v529_v55, %v528_v37  ;;  %v881_v17 = vadd.f32 %v880_v8, %v879_v16  ;;  %v655_v55 = vmul.f32 %v1884_v27, %v1884_v27  ;;  %v890_v0 = vsel %vm279_vm0, %v653_v46, 0.0 }
 0x10b   : > { %v892_v37 = vsel %vm279_vm0, %v654_v32, 0.0  ;;  %v896_v27 = vsel %vm279_vm0, %v656_v21, 0.0  ;;  %v898_v30 = vsel %vm279_vm0, %v657_v24, 0.0 }
 0x10c   : > { %v532_v19 = vadd.f32 %v531_v62, %v530_v9  ;;  %v883_v25 = vadd.f32 %v882_v40, %v881_v17  ;;  %v894_v62 = vsel %vm279_vm0, %v655_v55, 0.0 }
 0x10e   : > { %v534_v56 = vadd.f32 %v533_v11, %v532_v19  ;;  %v885_v29 = vadd.f32 %v884_v23, %v883_v25  ;;  %v661_v19 = vmul.f32 %v1932_v45, %v1932_v45  ;;  %v908_v45 = vsel %vm279_vm0, %v662_v22, 0.0 }
 0x110   : > { %v535_v61 = vrot.slane %v534_v56, 4  ;;  %v887_v35 = vadd.f32 %v886_v15, %v885_v29  ;;  %v906_v42 = vsel %vm279_vm0, %v661_v19, 0.0 }
 0x112   : > { %v536_v34 = vadd.f32 %v535_v61, %v534_v56  ;;  %v889_v1 = vadd.f32 %v888_v18, %v887_v35  ;;  %v663_v56 = vmul.f32 %v1948_v51, %v1948_v51  ;;  %v665_v61 = vmul.f32 %v1964_v57, %v1964_v57 }
 0x113   : > { %v912_v51 = vsel %vm279_vm0, %v664_v28, 0.0  ;;  %v916_v57 = vsel %vm279_vm0, %v666_v31, 0.0 }
 0x114   : > { %v537_v13 = vrot.slane %v536_v34, 2  ;;  %v891_v38 = vadd.f32 %v890_v0, %v889_v1  ;;  %v910_v48 = vsel %vm279_vm0, %v663_v56, 0.0  ;;  %v914_v54 = vsel %vm279_vm0, %v665_v61, 0.0 }
 0x116   : > { %v538_v50 = vadd.f32 %v537_v13, %v536_v34  ;;  %v893_v41 = vadd.f32 %v892_v37, %v891_v38  ;;  %v667_v34 = vmul.f32 %v1980_v63, %v1980_v63  ;;  %v669_v13 = vmul.f32 %v1996_v10, %v1996_v10 }
 0x117   : > { %v920_v63 = vsel %vm279_vm0, %v668_v7, 0.0 }
 0x118   : > { %v539_v12 = vrot.slane %v538_v50, 1  ;;  %v895_v9 = vadd.f32 %v894_v62, %v893_v41  ;;  %v918_v60 = vsel %vm279_vm0, %v667_v34, 0.0 }
 0x11a   : > { %v540_v26 = vadd.f32 %v539_v12, %v538_v50  ;;  %v897_v11 = vadd.f32 %v896_v27, %v895_v9  ;;  %v922_v50 = vsel %vm279_vm0, %v669_v13, 0.0 }
 0x11c   : > { %542 = vst.msk [vmem:[%s147_s18] sm:$0x1] %vm541_vm1, %v540_v26  ;;  %v899_v49 = vadd.f32 %v898_v30, %v897_v11 }
 0x11e   : > { %v901_v52 = vadd.f32 %v900_v33, %v899_v49 }
 0x120   : > { %v903_v53 = vadd.f32 %v902_v36, %v901_v52 }
 0x122   : > { %v905_v58 = vadd.f32 %v904_v39, %v903_v53 }
 0x124   : > { %v907_v59 = vadd.f32 %v906_v42, %v905_v58 }
 0x126   : > { %v909_v3 = vadd.f32 %v908_v45, %v907_v59 }
 0x128   : > { %v911_v4 = vadd.f32 %v910_v48, %v909_v3 }
 0x12a   : > { %v913_v2 = vadd.f32 %v912_v51, %v911_v4 }
 0x12c   : > { %v915_v8 = vadd.f32 %v914_v54, %v913_v2 }
 0x12e   : > { %v917_v16 = vadd.f32 %v916_v57, %v915_v8 }
 0x130   : > { %v919_v40 = vadd.f32 %v918_v60, %v917_v16 }
 0x132   : > { %v921_v17 = vadd.f32 %v920_v63, %v919_v40 }
 0x134   : > { %v923_v20 = vadd.f32 %v922_v50, %v921_v17 }
 0x136   : > { %v925_v23 = vadd.f32 %v924_v5, %v923_v20 }
 0x138   : > { %v926_v12 = vrot.slane %v925_v23, 4 }
 0x13a   : > { %v927_v25 = vadd.f32 %v926_v12, %v925_v23 }
 0x13c   : > { %v928_v10 = vrot.slane %v927_v25, 2 }
 0x13e   : > { %v929_v46 = vadd.f32 %v928_v10, %v927_v25 }
 0x140   : > { %v930_v15 = vrot.slane %v929_v46, 1 }
 0x142   : > { %v931_v14 = vadd.f32 %v930_v15, %v929_v46 }
 0x144   : > { %932 = vst.msk [vmem:[%s150_s21] sm:$0x1] %vm541_vm1, %v931_v14 }
 0x145 PF: > { %s13_s9 = sadd.s32 1, %s1028_s9  }
 0x146   : > { %p10_p5 = scmp.ge.s32.totalorder %s13_s9, 4  }
 0x148   :  { %12 = sbr.rel (!%p10_p5) target bundleno = 1 (0x1), region = 66 }

// kernel: downsample_bottleneck_forward.5
= control target key start
LH: loop header
LB: loop body
LE: loop exit
PB: predicated region body
PF: predicated region fallthrough
CT: control target
= control target key end

     0   :  { %s2995_s24 = smov 0   ;;  %s4730_s0 = inlined_call_operand.vmem [shape: f32[2048,16], index: 0, kind: input, shape index: {}]   ;;  %s4731_s1 = inlined_call_operand.vmem [shape: f32[1,16], index: 1, kind: input, shape index: {}]   ;;  %s4732_s2 = inlined_call_operand.vmem [shape: f32[1,16], index: 2, kind: input, shape index: {}]   ;;  %s4733_s3 = inlined_call_operand.vmem [shape: bf16[16,4], index: 3, kind: input, shape index: {}]   ;;  %s4734_s4 = inlined_call_operand.vmem [shape: f32[1,4], index: 4, kind: input, shape index: {}]   ;;  %s4735_s5 = inlined_call_operand.vmem [shape: f32[2048,4], index: 5, kind: output, shape index: {0}]   ;;  %s4736_s6 = inlined_call_operand.vmem [shape: f32[2,1,4], index: 6, kind: output, shape index: {1}]   ;;  %s4737_s7 = inlined_call_operand.vmem [shape: f32[2,1,4], index: 7, kind: output, shape index: {2}]  }
   0x1 LB: > { %s3001_s25 = sadd.s32 4294967295, %s2953_s24   ;;  %p2663_p0 = scmp.ge.s32.totalorder %s2953_s24, 1  ;;  %s2953_s24 = sphi %s2995_s24, %s18_s24  }
   0x2   : > { %p243_p1 = scmp.lt.s32.totalorder %s2953_s24, 3 }
   0x4   : > { %p244_p2 = pnand %p2663_p0, %p243_p1 }
   0x5   : > { %v2943_v0 = vld [vmem:[%s4733_s3] sm:$0xff] (!%p244_p2)   ;;  %s2664_s28 = sshll.u32 (!%p244_p2), %s3001_s25, 7  ;;  %vm1033_vm0 = vcmask (!%p244_p2), 130048   ;;  %vm1771_vm1 = vcmask (!%p244_p2), 31744   ;;  %p293_p4 = scmp.lt.s32.totalorder (!%p244_p2), %s3001_s25, 1  ;;  %vm2161_vm2 = vcmask (!%p244_p2), 24576  }
   0x6   : > { %247 = sbr.rel (%p244_p2) target bundleno = 515 (0x203), region = 40  ;;  %p282_p3 = scmp.lt.s32.totalorder (!%p244_p2), %s2664_s28, 255  ;;  %2803 = vmatprep.subr.bf16.mxu0 (!%p244_p2), %v2943_v0  ;;  %2933 = vmatprep.subr.bf16.mxu1 (!%p244_p2), %v2943_v0  ;;  %v3015_v1 = vld [vmem:[%s4731_s1] ss:$0 sm:$0xff] (!%p244_p2) }
   0x7   : > { %2804 = vmatpush3.bf16.msra.mxu0 (!%p244_p2), %v2943_v0  ;;  %2934 = vmatpush3.bf16.msra.mxu1 (!%p244_p2), %v2943_v0  ;;  %v3027_v2 = vld [vmem:[%s4732_s2] ss:$0 sm:$0xff] (!%p244_p2) }
   0xd   : > { %s4739_s28 = smov (!%p282_p3, %s2664_s28), 255  ;;  %s4741_s25 = smov (!%p293_p4, %s3001_s25), 1 }
   0xe   : > { %s2665_s29 = sshll.u32 %s4739_s28, 3  ;;  %s298_s9 = scalar_lea.vmem %s4737_s7, %s4741_s25 }
   0xf   : > { %s3022_s11 = scalar_lea.vmem %s4730_s0, %s2665_s29  ;;  %s3595_s22 = scalar_lea.vmem %s4735_s5, %s2665_s29 }
  0x10   : > { %v300_v3 = vld [vmem:[%s3022_s11] sm:$0xff]  ;;  %v301_v4 = vld [vmem:[%s3022_s11 + $0x8] sm:$0xff]  ;;  %v302_v5 = vld [vmem:[%s3022_s11 + $0x10] sm:$0xff]  ;;  %s295_s29 = scalar_lea.vmem %s4736_s6, %s4741_s25 }
  0x11   : > { %v435_v6 = vmul.f32 %v3015_v1, %v300_v3  ;;  %v436_v7 = vmul.f32 %v3015_v1, %v301_v4  ;;  %v303_v8 = vld [vmem:[%s3022_s11 + $0x18] sm:$0xff]  ;;  %v437_v9 = vmul.f32 %v3015_v1, %v302_v5  ;;  %v304_v10 = vld [vmem:[%s3022_s11 + $0x20] sm:$0xff]  ;;  %v305_v11 = vld [vmem:[%s3022_s11 + $0x28] sm:$0xff] }
  0x12   : > { %v438_v12 = vmul.f32 %v3015_v1, %v303_v8  ;;  %v439_v13 = vmul.f32 %v3015_v1, %v304_v10  ;;  %v440_v14 = vmul.f32 %v3015_v1, %v305_v11  ;;  %v306_v15 = vld [vmem:[%s3022_s11 + $0x30] sm:$0xff]  ;;  %v307_v16 = vld [vmem:[%s3022_s11 + $0x38] sm:$0xff]  ;;  %v308_v33 = vld [vmem:[%s3022_s11 + $0x40] sm:$0xff] }
  0x13   : > { %v570_v17 = vadd.f32 %v3027_v2, %v435_v6  ;;  %v571_v18 = vadd.f32 %v3027_v2, %v436_v7  ;;  %v572_v19 = vadd.f32 %v3027_v2, %v437_v9  ;;  %v441_v20 = vmul.f32 %v3015_v1, %v306_v15  ;;  %v309_v34 = vld [vmem:[%s3022_s11 + $0x48] sm:$0xff]  ;;  %v310_v39 = vld [vmem:[%s3022_s11 + $0x50] sm:$0xff]  ;;  %v311_v44 = vld [vmem:[%s3022_s11 + $0x58] sm:$0xff] }
  0x14   : > { %v573_v21 = vadd.f32 %v3027_v2, %v438_v12  ;;  %v574_v22 = vadd.f32 %v3027_v2, %v439_v13  ;;  %v575_v23 = vadd.f32 %v3027_v2, %v440_v14  ;;  %v442_v24 = vmul.f32 %v3015_v1, %v307_v16  ;;  %v312_v45 = vld [vmem:[%s3022_s11 + $0x60] sm:$0xff]  ;;  %v313_v49 = vld [vmem:[%s3022_s11 + $0x68] sm:$0xff]  ;;  %v314_v61 = vld [vmem:[%s3022_s11 + $0x70] sm:$0xff] }
  0x15   : > { %v698_v25 = vmax.f32 %v570_v17, 0.0  ;;  %v699_v26 = vmax.f32 %v571_v18, 0.0  ;;  %v700_v27 = vmax.f32 %v572_v19, 0.0  ;;  %v576_v28 = vadd.f32 %v3027_v2, %v441_v20  ;;  %v315_v62 = vld [vmem:[%s3022_s11 + $0x78] sm:$0xff]  ;;  %v316_v6 = vld [vmem:[%s3022_s11 + $0x80] sm:$0xff]  ;;  %v317_v11 = vld [vmem:[%s3022_s11 + $0x88] sm:$0xff] }
  0x16   : > { %v701_v29 = vmax.f32 %v573_v21, 0.0  ;;  %v702_v30 = vmax.f32 %v574_v22, 0.0  ;;  %v703_v31 = vmax.f32 %v575_v23, 0.0  ;;  %v577_v32 = vadd.f32 %v3027_v2, %v442_v24 }
  0x17   : > { %v826_v35 = vmin.f32 %v698_v25, 6.0  ;;  %v827_v36 = vmin.f32 %v699_v26, 6.0  ;;  %v828_v37 = vmin.f32 %v700_v27, 6.0  ;;  %v704_v38 = vmax.f32 %v576_v28, 0.0  ;;  %v318_v28 = vld [vmem:[%s3022_s11 + $0x90] sm:$0xff] }
  0x18   : > { %v829_v40 = vmin.f32 %v701_v29, 6.0  ;;  %v830_v41 = vmin.f32 %v702_v30, 6.0  ;;  %v831_v42 = vmin.f32 %v703_v31, 6.0  ;;  %v705_v43 = vmax.f32 %v577_v32, 0.0  ;;  %v319_v29 = vld [vmem:[%s3022_s11 + $0x98] sm:$0xff]  ;;  %v320_v30 = vld [vmem:[%s3022_s11 + $0xa0] sm:$0xff] }
  0x19   : > { %v954_v46 = vpack.c.bf16 %v827_v36, %v826_v35  ;;  %v443_v47 = vmul.f32 %v3015_v1, %v308_v33  ;;  %v444_v48 = vmul.f32 %v3015_v1, %v309_v34  ;;  %v445_v52 = vmul.f32 %v3015_v1, %v310_v39  ;;  %v321_v31 = vld [vmem:[%s3022_s11 + $0xa8] sm:$0xff] }
  0x1a   : > { %v955_v50 = vpack.c.bf16 %v829_v40, %v828_v37  ;;  %v956_v51 = vpack.c.bf16 %v831_v42, %v830_v41  ;;  %v446_v55 = vmul.f32 %v3015_v1, %v311_v44  ;;  %v447_v56 = vmul.f32 %v3015_v1, %v312_v45 }
  0x1b   : > { %2805 = vmatprep.mubr.msk.bf16.mxu0 %vm1033_vm0, %v954_v46  ;;  %v578_v53 = vadd.f32 %v3027_v2, %v443_v47  ;;  %v579_v54 = vadd.f32 %v3027_v2, %v444_v48  ;;  %v832_v57 = vmin.f32 %v704_v38, 6.0  ;;  %v833_v58 = vmin.f32 %v705_v43, 6.0  ;;  %v322_v47 = vld [vmem:[%s3022_s11 + $0xb0] sm:$0xff] }
  0x1c   : > { %2806 = vmatmul.mubr.msk.bf16.vlgmr.msra.gmra.mrb[0].mxu0 %vm1033_vm0, %v955_v50  ;;  %v580_v59 = vadd.f32 %v3027_v2, %v445_v52  ;;  %v448_v60 = vmul.f32 %v3015_v1, %v313_v49  ;;  %v581_v3 = vadd.f32 %v3027_v2, %v446_v55  ;;  %v582_v4 = vadd.f32 %v3027_v2, %v447_v56  ;;  %v324_v52 = vld [vmem:[%s3022_s11 + $0xc0] sm:$0xff]  ;;  %v326_v56 = vld [vmem:[%s3022_s11 + $0xd0] sm:$0xff] }
  0x1d   : > { %2809 = vmatprep.mubr.msk.bf16.mxu0 %vm1033_vm0, %v956_v51  ;;  %v706_v63 = vmax.f32 %v578_v53, 0.0  ;;  %v707_v0 = vmax.f32 %v579_v54, 0.0  ;;  %v449_v9 = vmul.f32 %v3015_v1, %v314_v61  ;;  %v450_v10 = vmul.f32 %v3015_v1, %v315_v62  ;;  %v323_v51 = vld [vmem:[%s3022_s11 + $0xb8] sm:$0xff]  ;;  %v325_v53 = vld [vmem:[%s3022_s11 + $0xc8] sm:$0xff] }
  0x1e   : > { %v583_v5 = vadd.f32 %v3027_v2, %v448_v60  ;;  %v957_v12 = vpack.c.bf16 %v833_v58, %v832_v57  ;;  %v708_v13 = vmax.f32 %v580_v59, 0.0  ;;  %v709_v14 = vmax.f32 %v581_v3, 0.0  ;;  %v327_v61 = vld [vmem:[%s3022_s11 + $0xd8] sm:$0xff] }
  0x1f   : > { %v834_v7 = vmin.f32 %v706_v63, 6.0  ;;  %v835_v8 = vmin.f32 %v707_v0, 6.0  ;;  %v710_v16 = vmax.f32 %v582_v4, 0.0  ;;  %v451_v18 = vmul.f32 %v3015_v1, %v316_v6  ;;  %v328_v6 = vld [vmem:[%s3022_s11 + $0xe0] sm:$0xff] }
  0x20   : > { %v711_v17 = vmax.f32 %v583_v5, 0.0  ;;  %v452_v19 = vmul.f32 %v3015_v1, %v317_v11  ;;  %v584_v20 = vadd.f32 %v3027_v2, %v449_v9  ;;  %v585_v21 = vadd.f32 %v3027_v2, %v450_v10  ;;  %v329_v11 = vld [vmem:[%s3022_s11 + $0xe8] sm:$0xff] }
  0x21   : > { %v958_v15 = vpack.c.bf16 %v835_v8, %v834_v7  ;;  %v836_v22 = vmin.f32 %v708_v13, 6.0  ;;  %v837_v23 = vmin.f32 %v709_v14, 6.0  ;;  %v838_v24 = vmin.f32 %v710_v16, 6.0 }
  0x22   : > { %v839_v25 = vmin.f32 %v711_v17, 6.0  ;;  %v586_v26 = vadd.f32 %v3027_v2, %v451_v18  ;;  %v587_v27 = vadd.f32 %v3027_v2, %v452_v19  ;;  %v712_v32 = vmax.f32 %v584_v20, 0.0 }
  0x23   : > { %v713_v33 = vmax.f32 %v585_v21, 0.0  ;;  %v959_v34 = vpack.c.bf16 %v837_v23, %v836_v22  ;;  %v453_v35 = vmul.f32 %v3015_v1, %v318_v28  ;;  %v454_v36 = vmul.f32 %v3015_v1, %v319_v29  ;;  %v332_v29 = vld [vmem:[%s3022_s11 + $0x100] sm:$0xff] }
  0x24   : > { %2810 = vmatmul.mubr.msk.bf16.gmra.mrb[4].mxu0 %vm1033_vm0, %v957_v12  ;;  %v455_v37 = vmul.f32 %v3015_v1, %v320_v30  ;;  %v960_v38 = vpack.c.bf16 %v839_v25, %v838_v24  ;;  %v714_v39 = vmax.f32 %v586_v26, 0.0  ;;  %v715_v40 = vmax.f32 %v587_v27, 0.0  ;;  %v330_v12 = vld [vmem:[%s3022_s11 + $0xf0] sm:$0xff]  ;;  %v331_v25 = vld [vmem:[%s3022_s11 + $0xf8] sm:$0xff] }
  0x25   : > { %2813 = vmatprep.mubr.msk.bf16.mxu0 %vm1033_vm0, %v958_v15  ;;  %v456_v41 = vmul.f32 %v3015_v1, %v321_v31  ;;  %v840_v42 = vmin.f32 %v712_v32, 6.0  ;;  %v841_v43 = vmin.f32 %v713_v33, 6.0  ;;  %v588_v44 = vadd.f32 %v3027_v2, %v453_v35 }
  0x26   : > { %v589_v45 = vadd.f32 %v3027_v2, %v454_v36  ;;  %v590_v46 = vadd.f32 %v3027_v2, %v455_v37  ;;  %v842_v48 = vmin.f32 %v714_v39, 6.0  ;;  %v843_v49 = vmin.f32 %v715_v40, 6.0 }
  0x27   : > { %v591_v50 = vadd.f32 %v3027_v2, %v456_v41  ;;  %v961_v54 = vpack.c.bf16 %v841_v43, %v840_v42  ;;  %v457_v55 = vmul.f32 %v3015_v1, %v322_v47  ;;  %v716_v57 = vmax.f32 %v588_v44, 0.0  ;;  %v333_v41 = vld [vmem:[%s3022_s11 + $0x108] sm:$0xff] }
  0x28   : > { %v717_v58 = vmax.f32 %v589_v45, 0.0  ;;  %v718_v59 = vmax.f32 %v590_v46, 0.0  ;;  %v458_v60 = vmul.f32 %v3015_v1, %v323_v51  ;;  %v962_v62 = vpack.c.bf16 %v843_v49, %v842_v48  ;;  %v334_v48 = vld [vmem:[%s3022_s11 + $0x110] sm:$0xff] }
  0x29   : > { %v719_v63 = vmax.f32 %v591_v50, 0.0  ;;  %v459_v0 = vmul.f32 %v3015_v1, %v324_v52  ;;  %v460_v3 = vmul.f32 %v3015_v1, %v325_v53  ;;  %v461_v4 = vmul.f32 %v3015_v1, %v326_v56  ;;  %v335_v53 = vld [vmem:[%s3022_s11 + $0x118] sm:$0xff] }
  0x2a   : > { %v462_v5 = vmul.f32 %v3015_v1, %v327_v61  ;;  %v844_v7 = vmin.f32 %v716_v57, 6.0  ;;  %v845_v8 = vmin.f32 %v717_v58, 6.0  ;;  %v592_v9 = vadd.f32 %v3027_v2, %v457_v55  ;;  %v337_v55 = vld [vmem:[%s3022_s11 + $0x128] sm:$0xff]  ;;  %v338_v58 = vld [vmem:[%s3022_s11 + $0x130] sm:$0xff] }
  0x2b   : > { %v593_v10 = vadd.f32 %v3027_v2, %v458_v60  ;;  %v846_v13 = vmin.f32 %v718_v59, 6.0  ;;  %v847_v14 = vmin.f32 %v719_v63, 6.0  ;;  %v594_v15 = vadd.f32 %v3027_v2, %v459_v0  ;;  %v339_v59 = vld [vmem:[%s3022_s11 + $0x138] sm:$0xff]  ;;  %v340_v60 = vld [vmem:[%s3022_s11 + $0x140] sm:$0xff] }
  0x2c   : > { %2814 = vmatmul.mubr.msk.bf16.gmra.mrb[8].mxu0 %vm1033_vm0, %v959_v34  ;;  %v595_v16 = vadd.f32 %v3027_v2, %v460_v3  ;;  %v596_v17 = vadd.f32 %v3027_v2, %v461_v4  ;;  %v463_v18 = vmul.f32 %v3015_v1, %v328_v6  ;;  %v597_v19 = vadd.f32 %v3027_v2, %v462_v5  ;;  %v341_v3 = vld [vmem:[%s3022_s11 + $0x148] sm:$0xff]  ;;  %v342_v4 = vld [vmem:[%s3022_s11 + $0x150] sm:$0xff]  ;;  %v343_v5 = vld [vmem:[%s3022_s11 + $0x158] sm:$0xff] }
  0x2d   : > { %2817 = vmatprep.mubr.msk.bf16.mxu0 %vm1033_vm0, %v960_v38  ;;  %v464_v20 = vmul.f32 %v3015_v1, %v329_v11  ;;  %v465_v21 = vmul.f32 %v3015_v1, %v330_v12  ;;  %v963_v22 = vpack.c.bf16 %v845_v8, %v844_v7  ;;  %v720_v23 = vmax.f32 %v592_v9, 0.0  ;;  %v345_v11 = vld [vmem:[%s3022_s11 + $0x168] sm:$0xff] }
  0x2e   : > { %v721_v24 = vmax.f32 %v593_v10, 0.0  ;;  %v964_v26 = vpack.c.bf16 %v847_v14, %v846_v13  ;;  %v722_v27 = vmax.f32 %v594_v15, 0.0  ;;  %v723_v28 = vmax.f32 %v595_v16, 0.0  ;;  %v344_v10 = vld [vmem:[%s3022_s11 + $0x160] sm:$0xff] }
  0x2f   : > { %v724_v30 = vmax.f32 %v596_v17, 0.0  ;;  %v598_v31 = vadd.f32 %v3027_v2, %v463_v18  ;;  %v725_v32 = vmax.f32 %v597_v19, 0.0  ;;  %v599_v33 = vadd.f32 %v3027_v2, %v464_v20 }
  0x30   : > { %v466_v34 = vmul.f32 %v3015_v1, %v331_v25  ;;  %v600_v35 = vadd.f32 %v3027_v2, %v465_v21  ;;  %v848_v36 = vmin.f32 %v720_v23, 6.0  ;;  %v849_v37 = vmin.f32 %v721_v24, 6.0 }
  0x31   : > { %v467_v38 = vmul.f32 %v3015_v1, %v332_v29  ;;  %v850_v39 = vmin.f32 %v722_v27, 6.0  ;;  %v851_v40 = vmin.f32 %v723_v28, 6.0  ;;  %v3138_v42 = vmin.f32 %v724_v30, 6.0  ;;  %v346_v28 = vld [vmem:[%s3022_s11 + $0x170] sm:$0xff] }
  0x32   : > { %v726_v43 = vmax.f32 %v598_v31, 0.0  ;;  %v3140_v44 = vmin.f32 %v725_v32, 6.0  ;;  %v727_v45 = vmax.f32 %v599_v33, 0.0  ;;  %v601_v46 = vadd.f32 %v3027_v2, %v466_v34  ;;  %v347_v33 = vld [vmem:[%s3022_s11 + $0x178] sm:$0xff] }
  0x33   : > { %v728_v47 = vmax.f32 %v600_v35, 0.0  ;;  %v965_v49 = vpack.c.bf16 %v849_v37, %v848_v36  ;;  %v468_v50 = vmul.f32 %v3015_v1, %v333_v41  ;;  %v602_v51 = vadd.f32 %v3027_v2, %v467_v38 }
  0x34   : > { %2818 = vmatmul.mubr.msk.bf16.gmra.mrb[12].mxu0 %vm1033_vm0, %v961_v54  ;;  %v966_v52 = vpack.c.bf16 %v851_v40, %v850_v39  ;;  %v336_v54 = vld [vmem:[%s3022_s11 + $0x120] sm:$0xff]  ;;  %v854_v56 = vmin.f32 %v726_v43, 6.0  ;;  %v469_v57 = vmul.f32 %v3015_v1, %v334_v48  ;;  %v967_v61 = vpack.c.bf16 %v3140_v44, %v3138_v42 }
  0x35   : > { %2821 = vmatprep.mubr.msk.bf16.mxu0 %vm1033_vm0, %v962_v62  ;;  %v855_v62 = vmin.f32 %v727_v45, 6.0  ;;  %v729_v63 = vmax.f32 %v601_v46, 0.0  ;;  %v3155_v0 = vmin.f32 %v728_v47, 6.0  ;;  %v603_v6 = vadd.f32 %v3027_v2, %v468_v50  ;;  %v348_v46 = vld [vmem:[%s3022_s11 + $0x180] sm:$0xff] }
  0x36   : > { %v730_v7 = vmax.f32 %v602_v51, 0.0  ;;  %v470_v8 = vmul.f32 %v3015_v1, %v335_v53  ;;  %v471_v9 = vmul.f32 %v3015_v1, %v336_v54  ;;  %v472_v12 = vmul.f32 %v3015_v1, %v337_v55 }
  0x37   : > { %v473_v13 = vmul.f32 %v3015_v1, %v338_v58  ;;  %v474_v14 = vmul.f32 %v3015_v1, %v339_v59  ;;  %v475_v15 = vmul.f32 %v3015_v1, %v340_v60  ;;  %v604_v16 = vadd.f32 %v3027_v2, %v469_v57  ;;  %v349_v58 = vld [vmem:[%s3022_s11 + $0x188] sm:$0xff] }
  0x38   : > { %v476_v17 = vmul.f32 %v3015_v1, %v341_v3  ;;  %v477_v18 = vmul.f32 %v3015_v1, %v342_v4  ;;  %v478_v19 = vmul.f32 %v3015_v1, %v343_v5  ;;  %v968_v20 = vpack.c.bf16 %v855_v62, %v854_v56 }
  0x39   : > { %v857_v21 = vmin.f32 %v729_v63, 6.0  ;;  %v480_v23 = vmul.f32 %v3015_v1, %v345_v11  ;;  %v731_v24 = vmax.f32 %v603_v6, 0.0  ;;  %v858_v25 = vmin.f32 %v730_v7, 6.0  ;;  %v350_v6 = vld [vmem:[%s3022_s11 + $0x190] sm:$0xff]  ;;  %v351_v11 = vld [vmem:[%s3022_s11 + $0x198] sm:$0xff] }
  0x3a   : > { %v606_v27 = vadd.f32 %v3027_v2, %v471_v9  ;;  %v607_v29 = vadd.f32 %v3027_v2, %v472_v12  ;;  %v608_v30 = vadd.f32 %v3027_v2, %v473_v13  ;;  %v609_v31 = vadd.f32 %v3027_v2, %v474_v14 }
  0x3b   : > { %v610_v32 = vadd.f32 %v3027_v2, %v475_v15  ;;  %v732_v34 = vmax.f32 %v604_v16, 0.0  ;;  %v611_v35 = vadd.f32 %v3027_v2, %v476_v17  ;;  %v612_v36 = vadd.f32 %v3027_v2, %v477_v18  ;;  %v364_v16 = vld [vmem:[%s3022_s11 + $0x200] sm:$0xff] }
  0x3c   : > { %2822 = vmatmul.mubr.msk.bf16.gmra.mrb[16].mxu0 %vm1033_vm0, %v963_v22  ;;  %v479_v22 = vmul.f32 %v3015_v1, %v344_v10  ;;  %v613_v37 = vadd.f32 %v3027_v2, %v478_v19  ;;  %v969_v38 = vpack.c.bf16 %v857_v21, %v3155_v0  ;;  %v615_v40 = vadd.f32 %v3027_v2, %v480_v23  ;;  %v352_v19 = vld [vmem:[%s3022_s11 + $0x1a0] sm:$0xff] }
  0x3d   : > { %2825 = vmatprep.mubr.msk.bf16.mxu0 %vm1033_vm0, %v964_v26  ;;  %v605_v26 = vadd.f32 %v3027_v2, %v470_v8  ;;  %v481_v41 = vmul.f32 %v3015_v1, %v346_v28  ;;  %v859_v42 = vmin.f32 %v731_v24, 6.0  ;;  %v734_v44 = vmax.f32 %v606_v27, 0.0  ;;  %v365_v24 = vld [vmem:[%s3022_s11 + $0x208] sm:$0xff] }
  0x3e   : > { %v614_v39 = vadd.f32 %v3027_v2, %v479_v22  ;;  %v482_v45 = vmul.f32 %v3015_v1, %v347_v33  ;;  %v735_v47 = vmax.f32 %v607_v29, 0.0  ;;  %v736_v48 = vmax.f32 %v608_v30, 0.0  ;;  %v353_v28 = vld [vmem:[%s3022_s11 + $0x1a8] sm:$0xff]  ;;  %v366_v30 = vld [vmem:[%s3022_s11 + $0x210] sm:$0xff] }
  0x3f   : > { %v733_v43 = vmax.f32 %v605_v26, 0.0  ;;  %v738_v50 = vmax.f32 %v610_v32, 0.0  ;;  %v3196_v51 = vmin.f32 %v732_v34, 6.0  ;;  %v740_v53 = vmax.f32 %v612_v36, 0.0  ;;  %v368_v36 = vld [vmem:[%s3022_s11 + $0x220] sm:$0xff] }
  0x40   : > { %v741_v54 = vmax.f32 %v613_v37, 0.0  ;;  %v742_v55 = vmax.f32 %v614_v39, 0.0  ;;  %v743_v56 = vmax.f32 %v615_v40, 0.0  ;;  %v616_v57 = vadd.f32 %v3027_v2, %v481_v41  ;;  %v369_v41 = vld [vmem:[%s3022_s11 + $0x228] sm:$0xff] }
  0x41   : > { %v483_v59 = vmul.f32 %v3015_v1, %v348_v46  ;;  %v970_v60 = vpack.c.bf16 %v859_v42, %v858_v25  ;;  %v3201_v62 = vmin.f32 %v734_v44, 6.0  ;;  %v617_v63 = vadd.f32 %v3027_v2, %v482_v45  ;;  %v370_v46 = vld [vmem:[%s3022_s11 + $0x230] sm:$0xff] }
  0x42   : > { %v3204_v0 = vmin.f32 %v735_v47, 6.0  ;;  %v3206_v3 = vmin.f32 %v736_v48, 6.0  ;;  %v3210_v5 = vmin.f32 %v738_v50, 6.0  ;;  %v3215_v8 = vmin.f32 %v740_v53, 6.0 }
  0x43   : > { %v3217_v9 = vmin.f32 %v741_v54, 6.0  ;;  %v484_v10 = vmul.f32 %v3015_v1, %v349_v58  ;;  %v3221_v12 = vmin.f32 %v742_v55, 6.0  ;;  %v3223_v13 = vmin.f32 %v743_v56, 6.0  ;;  %v371_v55 = vld [vmem:[%s3022_s11 + $0x238] sm:$0xff] }
  0x44   : > { %2826 = vmatmul.mubr.msk.bf16.gmra.mrb[20].mxu0 %vm1033_vm0, %v965_v49  ;;  %v737_v49 = vmax.f32 %v609_v31, 0.0  ;;  %v744_v14 = vmax.f32 %v616_v57, 0.0  ;;  %v618_v15 = vadd.f32 %v3027_v2, %v483_v59  ;;  %v745_v17 = vmax.f32 %v617_v63, 0.0  ;;  %v367_v31 = vld [vmem:[%s3022_s11 + $0x218] sm:$0xff] }
  0x45   : > { %2829 = vmatprep.mubr.msk.bf16.mxu0 %vm1033_vm0, %v966_v52  ;;  %v739_v52 = vmax.f32 %v611_v35, 0.0  ;;  %v485_v18 = vmul.f32 %v3015_v1, %v350_v6  ;;  %v972_v21 = vpack.c.bf16 %v3204_v0, %v3201_v62  ;;  %v486_v23 = vmul.f32 %v3015_v1, %v351_v11 }
  0x46   : > { %v3208_v4 = vmin.f32 %v737_v49, 6.0  ;;  %v975_v26 = vpack.c.bf16 %v3217_v9, %v3215_v8  ;;  %v3243_v27 = vadd.f32 %v3027_v2, %v484_v10  ;;  %v499_v29 = vmul.f32 %v3015_v1, %v364_v16 }
  0x47   : > { %v3213_v7 = vmin.f32 %v739_v52, 6.0  ;;  %v976_v32 = vpack.c.bf16 %v3223_v13, %v3221_v12  ;;  %v3251_v33 = vmin.f32 %v744_v14, 6.0  ;;  %v746_v34 = vmax.f32 %v618_v15, 0.0  ;;  %v373_v15 = vld [vmem:[%s3022_s11 + $0x248] sm:$0xff] }
  0x48   : > { %v973_v22 = vpack.c.bf16 %v3208_v4, %v3206_v3  ;;  %v487_v35 = vmul.f32 %v3015_v1, %v352_v19  ;;  %v3255_v37 = vmin.f32 %v745_v17, 6.0  ;;  %v500_v39 = vmul.f32 %v3015_v1, %v365_v24 }
  0x49   : > { %v974_v25 = vpack.c.bf16 %v3213_v7, %v3210_v5  ;;  %v634_v40 = vadd.f32 %v3027_v2, %v499_v29  ;;  %v3264_v42 = vadd.f32 %v3027_v2, %v486_v23  ;;  %v501_v44 = vmul.f32 %v3015_v1, %v366_v30  ;;  %v376_v30 = vld [vmem:[%s3022_s11 + $0x260] sm:$0xff] }
  0x4a   : > { %v502_v45 = vmul.f32 %v3015_v1, %v367_v31  ;;  %v747_v47 = vmax.f32 %v3243_v27, 0.0  ;;  %v635_v48 = vadd.f32 %v3027_v2, %v500_v39  ;;  %v503_v50 = vmul.f32 %v3015_v1, %v368_v36  ;;  %v377_v39 = vld [vmem:[%s3022_s11 + $0x268] sm:$0xff] }
  0x4b   : > { %v762_v49 = vmax.f32 %v634_v40, 0.0  ;;  %v636_v52 = vadd.f32 %v3027_v2, %v501_v44  ;;  %v504_v54 = vmul.f32 %v3015_v1, %v369_v41  ;;  %v505_v59 = vmul.f32 %v3015_v1, %v370_v46  ;;  %v354_v40 = vld [vmem:[%s3022_s11 + $0x1b0] sm:$0xff] }
  0x4c   : > { %2830 = vmatmul.mubr.msk.bf16.gmra.mrb[24].mxu0 %vm1033_vm0, %v967_v61  ;;  %v861_v61 = vmin.f32 %v733_v43, 6.0  ;;  %v3267_v43 = vmul.f32 %v3015_v1, %v353_v28  ;;  %v637_v53 = vadd.f32 %v3027_v2, %v502_v45  ;;  %v763_v56 = vmax.f32 %v635_v48, 0.0 }
  0x4d   : > { %2833 = vmatprep.mubr.msk.bf16.mxu0 %vm1033_vm0, %v968_v20  ;;  %v890_v57 = vmin.f32 %v762_v49, 6.0  ;;  %v638_v58 = vadd.f32 %v3027_v2, %v503_v50  ;;  %v764_v62 = vmax.f32 %v636_v52, 0.0  ;;  %v639_v0 = vadd.f32 %v3027_v2, %v504_v54 }
  0x4e   : > { %v971_v20 = vpack.c.bf16 %v861_v61, %v3196_v51  ;;  %v3275_v51 = vmin.f32 %v746_v34, 6.0  ;;  %v3287_v61 = vadd.f32 %v3027_v2, %v487_v35  ;;  %v765_v63 = vmax.f32 %v637_v53, 0.0  ;;  %v378_v53 = vld [vmem:[%s3022_s11 + $0x270] sm:$0xff] }
  0x4f   : > { %v891_v6 = vmin.f32 %v763_v56, 6.0  ;;  %v766_v10 = vmax.f32 %v638_v58, 0.0  ;;  %v506_v11 = vmul.f32 %v3015_v1, %v371_v55  ;;  %v640_v14 = vadd.f32 %v3027_v2, %v505_v59  ;;  %v379_v58 = vld [vmem:[%s3022_s11 + $0x278] sm:$0xff] }
  0x50   : > { %v892_v16 = vmin.f32 %v764_v62, 6.0  ;;  %v893_v17 = vmin.f32 %v765_v63, 6.0  ;;  %v508_v35 = vmul.f32 %v3015_v1, %v373_v15  ;;  %v511_v52 = vmul.f32 %v3015_v1, %v376_v30  ;;  %v355_v63 = vld [vmem:[%s3022_s11 + $0x1b8] sm:$0xff] }
  0x51   : > { %v986_v23 = vpack.c.bf16 %v891_v6, %v890_v57  ;;  %v894_v24 = vmin.f32 %v766_v10, 6.0  ;;  %v641_v28 = vadd.f32 %v3027_v2, %v506_v11  ;;  %v768_v29 = vmax.f32 %v640_v14, 0.0  ;;  %v381_v14 = vld [vmem:[%s3022_s11 + $0x288] sm:$0xff] }
  0x52   : > { %v987_v31 = vpack.c.bf16 %v893_v17, %v892_v16  ;;  %v643_v49 = vadd.f32 %v3027_v2, %v508_v35  ;;  %v512_v57 = vmul.f32 %v3015_v1, %v377_v39  ;;  %v489_v59 = vmul.f32 %v3015_v1, %v354_v40  ;;  %v383_v39 = vld [vmem:[%s3022_s11 + $0x298] sm:$0xff]  ;;  %v384_v40 = vld [vmem:[%s3022_s11 + $0x2a0] sm:$0xff] }
  0x53   : > { %2869 = vmatprep.mubr.msk.bf16.mxu1 %vm1033_vm0, %v986_v23  ;;  %v769_v41 = vmax.f32 %v641_v28, 0.0  ;;  %v896_v44 = vmin.f32 %v768_v29, 6.0  ;;  %v977_v62 = vpack.c.bf16 %v3255_v37, %v3251_v33  ;;  %v513_v5 = vmul.f32 %v3015_v1, %v378_v53  ;;  %v356_v28 = vld [vmem:[%s3022_s11 + $0x1c0] sm:$0xff] }
  0x54   : > { %2834 = vmatmul.mubr.msk.bf16.gmra.mrb[28].mxu0 %vm1033_vm0, %v969_v38  ;;  %v3258_v38 = vadd.f32 %v3027_v2, %v485_v18  ;;  %v767_v18 = vmax.f32 %v639_v0, 0.0  ;;  %2870 = vmatmul.mubr.msk.bf16.vlgmr.msra.gmra.mrb[0].mxu1 %vm1033_vm0, %v987_v31  ;;  %v771_v3 = vmax.f32 %v643_v49, 0.0  ;;  %v647_v6 = vadd.f32 %v3027_v2, %v512_v57 }
  0x55   : > { %2837 = vmatprep.mubr.msk.bf16.mxu0 %vm1033_vm0, %v970_v60  ;;  %v372_v60 = vld [vmem:[%s3022_s11 + $0x240] sm:$0xff]  ;;  %v897_v54 = vmin.f32 %v769_v41, 6.0  ;;  %v514_v11 = vmul.f32 %v3015_v1, %v379_v58  ;;  %v648_v29 = vadd.f32 %v3027_v2, %v513_v5  ;;  %v516_v30 = vmul.f32 %v3015_v1, %v381_v14 }
  0x56   : > { %v507_v19 = vmul.f32 %v3015_v1, %v372_v60  ;;  %v895_v34 = vmin.f32 %v767_v18, 6.0  ;;  %v380_v60 = vld [vmem:[%s3022_s11 + $0x280] sm:$0xff]  ;;  %v899_v7 = vmin.f32 %v771_v3, 6.0  ;;  %v748_v15 = vmax.f32 %v3258_v38, 0.0 }
  0x57   : > { %v989_v0 = vpack.c.bf16 %v897_v54, %v896_v44  ;;  %v775_v17 = vmax.f32 %v647_v6, 0.0  ;;  %v515_v18 = vmul.f32 %v3015_v1, %v380_v60  ;;  %v649_v38 = vadd.f32 %v3027_v2, %v514_v11  ;;  %v385_v44 = vld [vmem:[%s3022_s11 + $0x2a8] sm:$0xff]  ;;  %v358_v60 = vld [vmem:[%s3022_s11 + $0x1d0] sm:$0xff] }
  0x58   : > { %v642_v36 = vadd.f32 %v3027_v2, %v507_v19  ;;  %v988_v48 = vpack.c.bf16 %v895_v34, %v894_v24  ;;  %v749_v19 = vmax.f32 %v3264_v42, 0.0  ;;  %v624_v24 = vadd.f32 %v3027_v2, %v489_v59  ;;  %v386_v11 = vld [vmem:[%s3022_s11 + $0x2b0] sm:$0xff] }
  0x59   : > { %v875_v42 = vmin.f32 %v747_v47, 6.0  ;;  %v650_v27 = vadd.f32 %v3027_v2, %v515_v18  ;;  %v651_v47 = vadd.f32 %v3027_v2, %v516_v30  ;;  %v3361_v8 = vmin.f32 %v748_v15, 6.0  ;;  %v387_v18 = vld [vmem:[%s3022_s11 + $0x2b8] sm:$0xff]  ;;  %v362_v30 = vld [vmem:[%s3022_s11 + $0x1f0] sm:$0xff] }
  0x5a   : > { %v770_v50 = vmax.f32 %v642_v36, 0.0  ;;  %2873 = vmatprep.mubr.msk.bf16.mxu1 %vm1033_vm0, %v988_v48  ;;  %v903_v36 = vmin.f32 %v775_v17, 6.0  ;;  %v3363_v9 = vmin.f32 %v749_v19, 6.0  ;;  %v491_v41 = vmul.f32 %v3015_v1, %v356_v28  ;;  %v357_v48 = vld [vmem:[%s3022_s11 + $0x1c8] sm:$0xff] }
  0x5b   : > { %v776_v49 = vmax.f32 %v648_v29, 0.0  ;;  %v518_v13 = vmul.f32 %v3015_v1, %v383_v39  ;;  %v778_v54 = vmax.f32 %v650_v27, 0.0  ;;  %v978_v57 = vpack.c.bf16 %v875_v42, %v3275_v51 }
  0x5c   : > { %2838 = vmatmul.mubr.msk.bf16.gmra.mrb[32].mxu0 %vm1033_vm0, %v971_v20  ;;  %v374_v20 = vld [vmem:[%s3022_s11 + $0x250] sm:$0xff]  ;;  %v898_v4 = vmin.f32 %v770_v50, 6.0  ;;  %2874 = vmatmul.mubr.msk.bf16.gmra.mrb[4].mxu1 %vm1033_vm0, %v989_v0  ;;  %v777_v50 = vmax.f32 %v649_v38, 0.0  ;;  %v492_v3 = vmul.f32 %v3015_v1, %v357_v48  ;;  %v493_v37 = vmul.f32 %v3015_v1, %v358_v60 }
  0x5d   : > { %2841 = vmatprep.mubr.msk.bf16.mxu0 %vm1033_vm0, %v972_v21  ;;  %v375_v21 = vld [vmem:[%s3022_s11 + $0x258] sm:$0xff]  ;;  %v509_v45 = vmul.f32 %v3015_v1, %v374_v20  ;;  %v623_v20 = vadd.f32 %v3027_v2, %v3267_v43  ;;  %v750_v43 = vmax.f32 %v3287_v61, 0.0  ;;  %v382_v61 = vld [vmem:[%s3022_s11 + $0x290] sm:$0xff]  ;;  %v904_v0 = vmin.f32 %v776_v49, 6.0 }
  0x5e   : > { %v510_v46 = vmul.f32 %v3015_v1, %v375_v21  ;;  %v490_v21 = vmul.f32 %v3015_v1, %v355_v63  ;;  %v990_v23 = vpack.c.bf16 %v899_v7, %v898_v4  ;;  %v517_v12 = vmul.f32 %v3015_v1, %v382_v61  ;;  %v359_v63 = vld [vmem:[%s3022_s11 + $0x1d8] sm:$0xff]  ;;  %v360_v7 = vld [vmem:[%s3022_s11 + $0x1e0] sm:$0xff] }
  0x5f   : > { %v644_v55 = vadd.f32 %v3027_v2, %v509_v45  ;;  %v3374_v58 = vmin.f32 %v750_v43, 6.0  ;;  %v979_v4 = vpack.c.bf16 %v3363_v9, %v3361_v8  ;;  %v905_v6 = vmin.f32 %v777_v50, 6.0 }
  0x60   : > { %v645_v56 = vadd.f32 %v3027_v2, %v510_v46  ;;  %2877 = vmatprep.mubr.msk.bf16.mxu1 %vm1033_vm0, %v990_v23  ;;  %v625_v45 = vadd.f32 %v3027_v2, %v490_v21  ;;  %v752_v46 = vmax.f32 %v624_v24, 0.0  ;;  %v652_v51 = vadd.f32 %v3027_v2, %v517_v12  ;;  %v389_v21 = vld [vmem:[%s3022_s11 + $0x2c8] sm:$0xff]  ;;  %v391_v12 = vld [vmem:[%s3022_s11 + $0x2d8] sm:$0xff] }
  0x61   : > { %v906_v15 = vmin.f32 %v778_v54, 6.0  ;;  %v627_v33 = vadd.f32 %v3027_v2, %v492_v3  ;;  %v361_v24 = vld [vmem:[%s3022_s11 + $0x1e8] sm:$0xff]  ;;  %v495_v28 = vmul.f32 %v3015_v1, %v360_v7  ;;  %v993_v29 = vpack.c.bf16 %v905_v6, %v904_v0 }
  0x62   : > { %v773_v10 = vmax.f32 %v645_v56, 0.0  ;;  %v520_v56 = vmul.f32 %v3015_v1, %v385_v44  ;;  %v753_v5 = vmax.f32 %v625_v45, 0.0  ;;  %v3394_v14 = vmin.f32 %v752_v46, 6.0  ;;  %v363_v45 = vld [vmem:[%s3022_s11 + $0x1f8] sm:$0xff]  ;;  %v393_v3 = vld [vmem:[%s3022_s11 + $0x2e8] sm:$0xff] }
  0x63   : > { %v521_v38 = vmul.f32 %v3015_v1, %v386_v11  ;;  %v780_v42 = vmax.f32 %v652_v51, 0.0  ;;  %v755_v39 = vmax.f32 %v627_v33, 0.0  ;;  %v496_v8 = vmul.f32 %v3015_v1, %v361_v24  ;;  %v394_v24 = vld [vmem:[%s3022_s11 + $0x2f0] sm:$0xff] }
  0x64   : > { %2842 = vmatmul.mubr.msk.bf16.gmra.mrb[36].mxu0 %vm1033_vm0, %v973_v22  ;;  %v646_v22 = vadd.f32 %v3027_v2, %v511_v52  ;;  %v901_v34 = vmin.f32 %v773_v10, 6.0  ;;  %v655_v17 = vadd.f32 %v3027_v2, %v520_v56  ;;  %v881_v61 = vmin.f32 %v753_v5, 6.0 }
  0x65   : > { %2845 = vmatprep.mubr.msk.bf16.mxu0 %vm1033_vm0, %v974_v25  ;;  %v772_v25 = vmax.f32 %v644_v55, 0.0  ;;  %v779_v55 = vmax.f32 %v651_v47, 0.0  ;;  %v524_v47 = vmul.f32 %v3015_v1, %v389_v21  ;;  %v497_v44 = vmul.f32 %v3015_v1, %v362_v30  ;;  %v395_v30 = vld [vmem:[%s3022_s11 + $0x2f8] sm:$0xff] }
  0x66   : > { %v774_v16 = vmax.f32 %v646_v22, 0.0  ;;  %v626_v22 = vadd.f32 %v3027_v2, %v491_v41  ;;  %v630_v41 = vadd.f32 %v3027_v2, %v495_v28  ;;  %v908_v46 = vmin.f32 %v780_v42, 6.0 }
  0x67   : > { %v900_v31 = vmin.f32 %v772_v25, 6.0  ;;  %v653_v25 = vadd.f32 %v3027_v2, %v518_v13  ;;  %v656_v49 = vadd.f32 %v3027_v2, %v521_v38  ;;  %v659_v54 = vadd.f32 %v3027_v2, %v524_v47 }
  0x68   : > { %v902_v35 = vmin.f32 %v774_v16, 6.0  ;;  %v907_v16 = vmin.f32 %v779_v55, 6.0  ;;  %v754_v23 = vmax.f32 %v626_v22, 0.0  ;;  %v392_v55 = vld [vmem:[%s3022_s11 + $0x2e0] sm:$0xff]  ;;  %v981_v56 = vpack.c.bf16 %v881_v61, %v3394_v14 }
  0x69   : > { %v991_v52 = vpack.c.bf16 %v901_v34, %v900_v31  ;;  %v781_v43 = vmax.f32 %v653_v25, 0.0  ;;  %v522_v34 = vmul.f32 %v3015_v1, %v387_v18  ;;  %v784_v5 = vmax.f32 %v656_v49, 0.0 }
  0x6a   : > { %v992_v53 = vpack.c.bf16 %v903_v36, %v902_v35  ;;  %v994_v35 = vpack.c.bf16 %v907_v16, %v906_v15  ;;  %v783_v36 = vmax.f32 %v655_v17, 0.0  ;;  %v882_v9 = vmin.f32 %v754_v23, 6.0  ;;  %v3447_v16 = vld [vmem:[%s4732_s2] ss:$0 sm:$0xff] }
  0x6b   : > { %2878 = vmatmul.mubr.msk.bf16.gmra.mrb[8].mxu1 %vm1033_vm0, %v991_v52  ;;  %v909_v48 = vmin.f32 %v781_v43, 6.0  ;;  %v657_v50 = vadd.f32 %v3027_v2, %v522_v34  ;;  %v390_v52 = vld [vmem:[%s3022_s11 + $0x2d0] sm:$0xff]  ;;  %v632_v17 = vadd.f32 %v3447_v16, %v497_v44  ;;  %v396_v34 = vld [vmem:[%s3022_s11 + $0x300] sm:$0xff] }
  0x6c   : > { %2846 = vmatmul.mubr.msk.bf16.gmra.mrb[40].mxu0 %vm1033_vm0, %v975_v26  ;;  %v751_v26 = vmax.f32 %v623_v20, 0.0  ;;  %2881 = vmatprep.mubr.msk.bf16.mxu1 %vm1033_vm0, %v992_v53  ;;  %v388_v20 = vld [vmem:[%s3022_s11 + $0x2c0] sm:$0xff]  ;;  %v525_v60 = vmul.f32 %v3015_v1, %v390_v52 }
  0x6d   : > { %2849 = vmatprep.mubr.msk.bf16.mxu0 %vm1033_vm0, %v976_v32  ;;  %v519_v32 = vmul.f32 %v3015_v1, %v384_v40  ;;  %v523_v27 = vmul.f32 %v3015_v1, %v388_v20  ;;  %v628_v40 = vadd.f32 %v3027_v2, %v493_v37  ;;  %v995_v6 = vpack.c.bf16 %v909_v48, %v908_v46 }
  0x6e   : > { %v3376_v59 = vmin.f32 %v751_v26, 6.0  ;;  %v785_v7 = vmax.f32 %v657_v50, 0.0  ;;  %v660_v33 = vadd.f32 %v3447_v16, %v525_v60  ;;  %v912_v20 = vmin.f32 %v784_v5, 6.0 }
  0x6f   : > { %v654_v10 = vadd.f32 %v3027_v2, %v519_v32  ;;  %v911_v32 = vmin.f32 %v783_v36, 6.0  ;;  %v658_v53 = vadd.f32 %v3027_v2, %v523_v27 }
  0x70   : > { %v980_v19 = vpack.c.bf16 %v3376_v59, %v3374_v58  ;;  %v756_v58 = vmax.f32 %v628_v40, 0.0  ;;  %v631_v59 = vadd.f32 %v3027_v2, %v496_v8  ;;  %v913_v21 = vmin.f32 %v785_v7, 6.0 }
  0x71   : > { %v782_v31 = vmax.f32 %v654_v10, 0.0  ;;  %v787_v10 = vmax.f32 %v659_v54, 0.0  ;;  %v788_v27 = vmax.f32 %v660_v33, 0.0 }
  0x72   : > { %v759_v15 = vmax.f32 %v631_v59, 0.0  ;;  %v884_v18 = vmin.f32 %v756_v58, 6.0  ;;  %v997_v40 = vpack.c.bf16 %v913_v21, %v912_v20  ;;  %v400_v58 = vld [vmem:[%s3022_s11 + $0x320] sm:$0xff]  ;;  %v401_v59 = vld [vmem:[%s3022_s11 + $0x328] sm:$0xff] }
  0x73   : > { %2882 = vmatmul.mubr.msk.bf16.gmra.mrb[12].mxu1 %vm1033_vm0, %v993_v29  ;;  %v910_v13 = vmin.f32 %v782_v31, 6.0  ;;  %v915_v29 = vmin.f32 %v787_v10, 6.0  ;;  %v760_v31 = vmax.f32 %v632_v17, 0.0  ;;  %v916_v50 = vmin.f32 %v788_v27, 6.0  ;;  %v402_v17 = vld [vmem:[%s3022_s11 + $0x330] sm:$0xff]  ;;  %v405_v20 = vld [vmem:[%s3022_s11 + $0x348] sm:$0xff] }
  0x74   : > { %2850 = vmatmul.mubr.msk.bf16.gmra.mrb[44].mxu0 %vm1033_vm0, %v977_v62  ;;  %v494_v62 = vmul.f32 %v3015_v1, %v359_v63  ;;  %2885 = vmatprep.mubr.msk.bf16.mxu1 %vm1033_vm0, %v994_v35  ;;  %v3439_v63 = vld [vmem:[%s4731_s1] ss:$0 sm:$0xff]  ;;  %v887_v43 = vmin.f32 %v759_v15, 6.0  ;;  %v397_v35 = vld [vmem:[%s3022_s11 + $0x308] sm:$0xff] }
  0x75   : > { %2853 = vmatprep.mubr.msk.bf16.mxu0 %vm1033_vm0, %v978_v57  ;;  %v883_v57 = vmin.f32 %v755_v39, 6.0  ;;  %v526_v0 = vmul.f32 %v3439_v63, %v391_v12  ;;  %v527_v51 = vmul.f32 %v3439_v63, %v392_v55  ;;  %v996_v25 = vpack.c.bf16 %v911_v32, %v910_v13 }
  0x76   : > { %v629_v26 = vadd.f32 %v3027_v2, %v494_v62  ;;  %v786_v2 = vmax.f32 %v658_v53, 0.0  ;;  %v528_v11 = vmul.f32 %v3439_v63, %v393_v3  ;;  %v529_v61 = vmul.f32 %v3439_v63, %v394_v24 }
  0x77   : > { %v982_v14 = vpack.c.bf16 %v883_v57, %v882_v9  ;;  %v661_v37 = vadd.f32 %v3447_v16, %v526_v0  ;;  %v662_v23 = vadd.f32 %v3447_v16, %v527_v51  ;;  %v530_v9 = vmul.f32 %v3439_v63, %v395_v30  ;;  %v399_v57 = vld [vmem:[%s3022_s11 + $0x318] sm:$0xff] }
  0x78   : > { %v757_v22 = vmax.f32 %v629_v26, 0.0  ;;  %v914_v28 = vmin.f32 %v786_v2, 6.0  ;;  %v663_v38 = vadd.f32 %v3447_v16, %v528_v11  ;;  %v531_v44 = vmul.f32 %v3439_v63, %v396_v34 }
  0x79   : > { %v789_v47 = vmax.f32 %v661_v37, 0.0  ;;  %v790_v8 = vmax.f32 %v662_v23, 0.0  ;;  %v888_v48 = vmin.f32 %v760_v31, 6.0  ;;  %v664_v12 = vadd.f32 %v3447_v16, %v529_v61 }
  0x7a   : > { %v885_v62 = vmin.f32 %v757_v22, 6.0  ;;  %v998_v26 = vpack.c.bf16 %v915_v29, %v914_v28  ;;  %v665_v13 = vadd.f32 %v3447_v16, %v530_v9  ;;  %v666_v54 = vadd.f32 %v3447_v16, %v531_v44  ;;  %v407_v9 = vld [vmem:[%s3022_s11 + $0x358] sm:$0xff] }
  0x7b   : > { %2886 = vmatmul.mubr.msk.bf16.gmra.mrb[16].mxu1 %vm1033_vm0, %v995_v6  ;;  %v917_v52 = vmin.f32 %v789_v47, 6.0  ;;  %v918_v32 = vmin.f32 %v790_v8, 6.0  ;;  %v534_v6 = vmul.f32 %v3439_v63, %v399_v57  ;;  %v535_v5 = vmul.f32 %v3439_v63, %v400_v58  ;;  %v406_v8 = vld [vmem:[%s3022_s11 + $0x350] sm:$0xff] }
  0x7c   : > { %2854 = vmatmul.mubr.msk.bf16.gmra.mrb[48].mxu0 %vm1033_vm0, %v979_v4  ;;  %v498_v4 = vmul.f32 %v3015_v1, %v363_v45  ;;  %v758_v1 = vmax.f32 %v630_v41, 0.0  ;;  %2889 = vmatprep.mubr.msk.bf16.mxu1 %vm1033_vm0, %v996_v25  ;;  %v983_v39 = vpack.c.bf16 %v885_v62, %v884_v18  ;;  %v791_v41 = vmax.f32 %v663_v38, 0.0  ;;  %v403_v18 = vld [vmem:[%s3022_s11 + $0x338] sm:$0xff]  ;;  %v404_v62 = vld [vmem:[%s3022_s11 + $0x340] sm:$0xff]  ;;  %v410_v58 = vld [vmem:[%s3022_s11 + $0x370] sm:$0xff] }
  0x7d   : > { %2857 = vmatprep.mubr.msk.bf16.mxu0 %vm1033_vm0, %v980_v19  ;;  %v532_v45 = vmul.f32 %v3439_v63, %v397_v35  ;;  %v999_v22 = vpack.c.bf16 %v917_v52, %v916_v50  ;;  %v793_v60 = vmax.f32 %v665_v13, 0.0  ;;  %v794_v51 = vmax.f32 %v666_v54, 0.0 }
  0x7e   : > { %v633_v19 = vadd.f32 %v3447_v16, %v498_v4  ;;  %v886_v42 = vmin.f32 %v758_v1, 6.0  ;;  %v919_v53 = vmin.f32 %v791_v41, 6.0  ;;  %v792_v4 = vmax.f32 %v664_v12, 0.0  ;;  %v409_v41 = vld [vmem:[%s3022_s11 + $0x368] sm:$0xff] }
  0x7f   : > { %v667_v55 = vadd.f32 %v3447_v16, %v532_v45  ;;  %v536_v2 = vmul.f32 %v3439_v63, %v401_v59  ;;  %v921_v11 = vmin.f32 %v793_v60, 6.0  ;;  %v669_v1 = vadd.f32 %v3447_v16, %v534_v6  ;;  %v412_v60 = vld [vmem:[%s3022_s11 + $0x380] sm:$0xff] }
  0x80   : > { %v761_v36 = vmax.f32 %v633_v19, 0.0  ;;  %v984_v46 = vpack.c.bf16 %v887_v43, %v886_v42  ;;  %v1000_v7 = vpack.c.bf16 %v919_v53, %v918_v32  ;;  %v920_v10 = vmin.f32 %v792_v4, 6.0  ;;  %v411_v4 = vld [vmem:[%s3022_s11 + $0x378] sm:$0xff] }
  0x81   : > { %v795_v25 = vmax.f32 %v667_v55, 0.0  ;;  %v670_v15 = vadd.f32 %v3447_v16, %v535_v5  ;;  %v922_v19 = vmin.f32 %v794_v51, 6.0  ;;  %v671_v37 = vadd.f32 %v3447_v16, %v536_v2 }
  0x82   : > { %v889_v49 = vmin.f32 %v761_v36, 6.0  ;;  %v537_v21 = vmul.f32 %v3439_v63, %v402_v17  ;;  %v538_v23 = vmul.f32 %v3439_v63, %v403_v18  ;;  %v1001_v24 = vpack.c.bf16 %v921_v11, %v920_v10 }
  0x83   : > { %2890 = vmatmul.mubr.msk.bf16.gmra.mrb[20].mxu1 %vm1033_vm0, %v997_v40  ;;  %v923_v33 = vmin.f32 %v795_v25, 6.0  ;;  %v797_v29 = vmax.f32 %v669_v1, 0.0  ;;  %v798_v38 = vmax.f32 %v670_v15, 0.0  ;;  %v799_v42 = vmax.f32 %v671_v37, 0.0  ;;  %v415_v37 = vld [vmem:[%s3022_s11 + $0x398] sm:$0xff] }
  0x84   : > { %2858 = vmatmul.mubr.msk.bf16.gmra.mrb[52].mxu0 %vm1033_vm0, %v981_v56  ;;  %2893 = vmatprep.mubr.msk.bf16.mxu1 %vm1033_vm0, %v998_v26  ;;  %v398_v56 = vld [vmem:[%s3022_s11 + $0x310] sm:$0xff]  ;;  %v985_v3 = vpack.c.bf16 %v889_v49, %v888_v48  ;;  %v539_v43 = vmul.f32 %v3439_v63, %v404_v62  ;;  %v540_v31 = vmul.f32 %v3439_v63, %v405_v20  ;;  %v408_v26 = vld [vmem:[%s3022_s11 + $0x360] sm:$0xff] }
  0x85   : > { %2861 = vmatprep.mubr.msk.bf16.mxu0 %vm1033_vm0, %v982_v14  ;;  %v533_v0 = vmul.f32 %v3439_v63, %v398_v56  ;;  %v1002_v30 = vpack.c.bf16 %v923_v33, %v922_v19  ;;  %v672_v34 = vadd.f32 %v3447_v16, %v537_v21  ;;  %v673_v35 = vadd.f32 %v3447_v16, %v538_v23  ;;  %v414_v33 = vld [vmem:[%s3022_s11 + $0x390] sm:$0xff] }
  0x86   : > { %v925_v27 = vmin.f32 %v797_v29, 6.0  ;;  %v926_v47 = vmin.f32 %v798_v38, 6.0  ;;  %v927_v61 = vmin.f32 %v799_v42, 6.0  ;;  %v675_v40 = vadd.f32 %v3447_v16, %v540_v31 }
  0x87   : > { %v668_v14 = vadd.f32 %v3447_v16, %v533_v0  ;;  %v800_v44 = vmax.f32 %v672_v34, 0.0  ;;  %v801_v45 = vmax.f32 %v673_v35, 0.0  ;;  %v541_v48 = vmul.f32 %v3439_v63, %v406_v8  ;;  %v413_v0 = vld [vmem:[%s3022_s11 + $0x388] sm:$0xff] }
  0x88   : > { %v542_v49 = vmul.f32 %v3439_v63, %v407_v9  ;;  %v543_v50 = vmul.f32 %v3439_v63, %v408_v26  ;;  %v1004_v52 = vpack.c.bf16 %v927_v61, %v926_v47  ;;  %v803_v13 = vmax.f32 %v675_v40, 0.0  ;;  %v418_v26 = vld [vmem:[%s3022_s11 + $0x3b0] sm:$0xff] }
  0x89   : > { %v796_v28 = vmax.f32 %v668_v14, 0.0  ;;  %v544_v32 = vmul.f32 %v3439_v63, %v409_v41  ;;  %v928_v53 = vmin.f32 %v800_v44, 6.0  ;;  %v929_v54 = vmin.f32 %v801_v45, 6.0  ;;  %v419_v45 = vld [vmem:[%s3022_s11 + $0x3b8] sm:$0xff] }
  0x8a   : > { %v676_v55 = vadd.f32 %v3447_v16, %v541_v48  ;;  %v677_v56 = vadd.f32 %v3447_v16, %v542_v49  ;;  %v678_v57 = vadd.f32 %v3447_v16, %v543_v50  ;;  %v545_v5 = vmul.f32 %v3439_v63, %v410_v58  ;;  %v421_v48 = vld [vmem:[%s3022_s11 + $0x3c8] sm:$0xff] }
  0x8b   : > { %2894 = vmatmul.mubr.msk.bf16.gmra.mrb[24].mxu1 %vm1033_vm0, %v999_v22  ;;  %v924_v36 = vmin.f32 %v796_v28, 6.0  ;;  %v679_v22 = vadd.f32 %v3447_v16, %v544_v32  ;;  %v1005_v6 = vpack.c.bf16 %v929_v54, %v928_v53  ;;  %v546_v2 = vmul.f32 %v3439_v63, %v411_v4  ;;  %v417_v28 = vld [vmem:[%s3022_s11 + $0x3a8] sm:$0xff] }
  0x8c   : > { %2862 = vmatmul.mubr.msk.bf16.gmra.mrb[56].mxu0 %vm1033_vm0, %v983_v39  ;;  %2897 = vmatprep.mubr.msk.bf16.mxu1 %vm1033_vm0, %v1000_v7  ;;  %v674_v39 = vadd.f32 %v3447_v16, %v539_v43  ;;  %v804_v7 = vmax.f32 %v676_v55, 0.0  ;;  %v805_v51 = vmax.f32 %v677_v56, 0.0  ;;  %v806_v25 = vmax.f32 %v678_v57, 0.0 }
  0x8d   : > { %2865 = vmatprep.mubr.msk.bf16.mxu0 %vm1033_vm0, %v984_v46  ;;  %v1003_v46 = vpack.c.bf16 %v925_v27, %v924_v36  ;;  %v807_v11 = vmax.f32 %v679_v22, 0.0  ;;  %v547_v14 = vmul.f32 %v3439_v63, %v412_v60  ;;  %v548_v1 = vmul.f32 %v3439_v63, %v413_v0 }
  0x8e   : > { %v802_v12 = vmax.f32 %v674_v39, 0.0  ;;  %v680_v15 = vadd.f32 %v3447_v16, %v545_v5  ;;  %v932_v17 = vmin.f32 %v804_v7, 6.0  ;;  %v933_v18 = vmin.f32 %v805_v51, 6.0  ;;  %v423_v5 = vld [vmem:[%s3022_s11 + $0x3d8] sm:$0xff]  ;;  %v424_v7 = vld [vmem:[%s3022_s11 + $0x3e0] sm:$0xff]  ;;  %v425_v51 = vld [vmem:[%s3022_s11 + $0x3e8] sm:$0xff] }
  0x8f   : > { %v681_v19 = vadd.f32 %v3447_v16, %v546_v2  ;;  %v934_v62 = vmin.f32 %v806_v25, 6.0  ;;  %v935_v20 = vmin.f32 %v807_v11, 6.0  ;;  %v682_v21 = vadd.f32 %v3447_v16, %v547_v14 }
  0x90   : > { %v930_v59 = vmin.f32 %v802_v12, 6.0  ;;  %v683_v23 = vadd.f32 %v3447_v16, %v548_v1  ;;  %v808_v29 = vmax.f32 %v680_v15, 0.0  ;;  %v549_v38 = vmul.f32 %v3439_v63, %v414_v33 }
  0x91   : > { %v1007_v42 = vpack.c.bf16 %v933_v18, %v932_v17  ;;  %v809_v43 = vmax.f32 %v681_v19, 0.0  ;;  %v552_v34 = vmul.f32 %v3439_v63, %v417_v28  ;;  %v1008_v35 = vpack.c.bf16 %v935_v20, %v934_v62 }
  0x92   : > { %v810_v36 = vmax.f32 %v682_v21, 0.0  ;;  %v811_v27 = vmax.f32 %v683_v23, 0.0  ;;  %v684_v47 = vadd.f32 %v3447_v16, %v549_v38  ;;  %v936_v39 = vmin.f32 %v808_v29, 6.0  ;;  %v426_v21 = vld [vmem:[%s3022_s11 + $0x3f0] sm:$0xff]  ;;  %v427_v38 = vld [vmem:[%s3022_s11 + $0x3f8] sm:$0xff] }
  0x93   : > { %2898 = vmatmul.mubr.msk.bf16.gmra.mrb[28].mxu1 %vm1033_vm0, %v1001_v24  ;;  %v416_v24 = vld [vmem:[%s3022_s11 + $0x3a0] sm:$0xff]  ;;  %v937_v40 = vmin.f32 %v809_v43, 6.0  ;;  %v687_v9 = vadd.f32 %v3447_v16, %v552_v34  ;;  %v554_v53 = vmul.f32 %v3439_v63, %v419_v45  ;;  %v556_v56 = vmul.f32 %v3439_v63, %v421_v48 }
  0x94   : > { %2866 = vmatmul.mubr.msk.bf16.gmra.mrb[60].mxu0 %vm1033_vm0, %v985_v3  ;;  %2901 = vmatprep.mubr.msk.bf16.mxu1 %vm1033_vm0, %v1002_v30  ;;  %v931_v3 = vmin.f32 %v803_v13, 6.0  ;;  %v550_v30 = vmul.f32 %v3439_v63, %v415_v37  ;;  %v551_v31 = vmul.f32 %v3439_v63, %v416_v24  ;;  %v938_v41 = vmin.f32 %v810_v36, 6.0 }
  0x95   : > { %v939_v44 = vmin.f32 %v811_v27, 6.0  ;;  %v812_v49 = vmax.f32 %v684_v47, 0.0  ;;  %v1009_v12 = vpack.c.bf16 %v937_v40, %v936_v39  ;;  %v815_v32 = vmax.f32 %v687_v9, 0.0 }
  0x96   : > { %v1006_v10 = vpack.c.bf16 %v931_v3, %v930_v59  ;;  %v685_v61 = vadd.f32 %v3447_v16, %v550_v30  ;;  %v686_v8 = vadd.f32 %v3447_v16, %v551_v31  ;;  %v689_v4 = vadd.f32 %v3447_v16, %v554_v53 }
  0x97   : > { %v1010_v54 = vpack.c.bf16 %v939_v44, %v938_v41  ;;  %v940_v57 = vmin.f32 %v812_v49, 6.0  ;;  %v943_v22 = vmin.f32 %v815_v32, 6.0  ;;  %v691_v0 = vadd.f32 %v3447_v16, %v556_v56 }
  0x98   : > { %v813_v50 = vmax.f32 %v685_v61, 0.0  ;;  %v814_v13 = vmax.f32 %v686_v8, 0.0  ;;  %v817_v11 = vmax.f32 %v689_v4, 0.0  ;;  %v558_v1 = vmul.f32 %v3439_v63, %v423_v5 }
  0x99   : > { %v819_v17 = vmax.f32 %v691_v0, 0.0  ;;  %v559_v18 = vmul.f32 %v3439_v63, %v424_v7  ;;  %v560_v19 = vmul.f32 %v3439_v63, %v425_v51  ;;  %v561_v30 = vmul.f32 %v3439_v63, %v426_v21 }
  0x9a   : > { %v941_v58 = vmin.f32 %v813_v50, 6.0  ;;  %v942_v3 = vmin.f32 %v814_v13, 6.0  ;;  %v945_v37 = vmin.f32 %v817_v11, 6.0  ;;  %v693_v20 = vadd.f32 %v3447_v16, %v558_v1 }
  0x9b   : > { %2902 = vmatmul.mubr.msk.bf16.gmra.mrb[32].mxu1 %vm1033_vm0, %v1003_v46  ;;  %v420_v46 = vld [vmem:[%s3022_s11 + $0x3c0] sm:$0xff]  ;;  %v947_v24 = vmin.f32 %v819_v17, 6.0  ;;  %v694_v28 = vadd.f32 %v3447_v16, %v559_v18  ;;  %v695_v29 = vadd.f32 %v3447_v16, %v560_v19  ;;  %v562_v34 = vmul.f32 %v3439_v63, %v427_v38 }
  0x9c   : > { %2905 = vmatprep.mubr.msk.bf16.mxu1 %vm1033_vm0, %v1004_v52  ;;  %v553_v52 = vmul.f32 %v3439_v63, %v418_v26  ;;  %v555_v55 = vmul.f32 %v3439_v63, %v420_v46  ;;  %v1011_v25 = vpack.c.bf16 %v941_v58, %v940_v57  ;;  %v821_v31 = vmax.f32 %v693_v20, 0.0 }
  0x9d   : > { %v822_v36 = vmax.f32 %v694_v28, 0.0  ;;  %v823_v27 = vmax.f32 %v695_v29, 0.0  ;;  %v696_v39 = vadd.f32 %v3447_v16, %v561_v30  ;;  %v697_v40 = vadd.f32 %v3447_v16, %v562_v34 }
  0x9e   : > { %v688_v59 = vadd.f32 %v3447_v16, %v553_v52  ;;  %v690_v60 = vadd.f32 %v3447_v16, %v555_v55  ;;  %v949_v61 = vmin.f32 %v821_v31, 6.0 }
  0x9f   : > { %v950_v8 = vmin.f32 %v822_v36, 6.0  ;;  %v951_v9 = vmin.f32 %v823_v27, 6.0  ;;  %v824_v41 = vmax.f32 %v696_v39, 0.0  ;;  %v825_v44 = vmax.f32 %v697_v40, 0.0 }
  0xa0   : > { %v816_v2 = vmax.f32 %v688_v59, 0.0  ;;  %v818_v15 = vmax.f32 %v690_v60, 0.0 }
  0xa1   : > { %v952_v45 = vmin.f32 %v824_v41, 6.0  ;;  %v953_v46 = vmin.f32 %v825_v44, 6.0 }
  0xa2   : > { %v944_v33 = vmin.f32 %v816_v2, 6.0  ;;  %v946_v23 = vmin.f32 %v818_v15, 6.0 }
  0xa3   : > { %2906 = vmatmul.mubr.msk.bf16.gmra.mrb[36].mxu1 %vm1033_vm0, %v1005_v6  ;;  %v422_v6 = vld [vmem:[%s3022_s11 + $0x3d0] sm:$0xff]  ;;  %v1017_v48 = vpack.c.bf16 %v953_v46, %v952_v45 }
  0xa4   : > { %2909 = vmatprep.mubr.msk.bf16.mxu1 %vm1033_vm0, %v1006_v10  ;;  %v1012_v10 = vpack.c.bf16 %v943_v22, %v942_v3  ;;  %v557_v14 = vmul.f32 %v3439_v63, %v422_v6  ;;  %v1016_v63 = vpack.c.bf16 %v951_v9, %v950_v8 }
  0xa6   : > { %v692_v62 = vadd.f32 %v3447_v16, %v557_v14  ;;  %v3588_v16 = vld [vmem:[%s4734_s4] ss:$0 sm:$0xff] }
  0xa8   : > { %v820_v43 = vmax.f32 %v692_v62, 0.0 }
  0xaa   : > { %v948_v47 = vmin.f32 %v820_v43, 6.0 }
  0xab   : > { %2910 = vmatmul.mubr.msk.bf16.gmra.mrb[40].mxu1 %vm1033_vm0, %v1007_v42  ;;  %v1013_v42 = vpack.c.bf16 %v945_v37, %v944_v33 }
  0xac   : > { %2913 = vmatprep.mubr.msk.bf16.mxu1 %vm1033_vm0, %v1008_v35  ;;  %v1014_v35 = vpack.c.bf16 %v947_v24, %v946_v23  ;;  %v1015_v26 = vpack.c.bf16 %v949_v61, %v948_v47 }
  0xb3   : > { %2914 = vmatmul.mubr.msk.bf16.gmra.mrb[44].mxu1 %vm1033_vm0, %v1009_v12 }
  0xb4   : > { %2917 = vmatprep.mubr.msk.bf16.mxu1 %vm1033_vm0, %v1010_v54 }
  0xbb   : > { %2918 = vmatmul.mubr.msk.bf16.gmra.mrb[48].mxu1 %vm1033_vm0, %v1011_v25 }
  0xbc   : > { %2921 = vmatprep.mubr.msk.bf16.mxu1 %vm1033_vm0, %v1012_v10 }
  0xc3   : > { %2922 = vmatmul.mubr.msk.bf16.gmra.mrb[52].mxu1 %vm1033_vm0, %v1013_v42 }
  0xc4   : > { %2925 = vmatprep.mubr.msk.bf16.mxu1 %vm1033_vm0, %v1014_v35 }
  0xcb   : > { %2926 = vmatmul.mubr.msk.bf16.gmra.mrb[56].mxu1 %vm1033_vm0, %v1015_v26 }
  0xcc   : > { %2929 = vmatprep.mubr.msk.bf16.mxu1 %vm1033_vm0, %v1016_v63 }
  0xd3   : > { %2930 = vmatmul.mubr.msk.bf16.gmra.mrb[60].mxu1 %vm1033_vm0, %v1017_v48 }
  0xef   : > { %v2807_v49 = vpop.f32.mrb[0].mxu0 }
  0xf0   : > { %v1269_v50 = vadd.f32 %v2807_v49, %v3588_v16  ;;  %v1260_v52 = vpop.f32.mrb[1].mxu0 }
  0xf1   : > { %v1261_v12 = vadd.f32 %v3588_v16, %v1260_v52  ;;  %v2808_v13 = vpop.f32.mrb[2].mxu0 }
  0xf2   : > { %1774 = vst.msk [vmem:[%s3595_s22 + $0x10] sm:$0xff] %vm1771_vm1, %v1269_v50  ;;  %v1272_v32 = vadd.f32 %v2808_v13, %v3588_v16  ;;  %v1263_v53 = vpop.f32.mrb[3].mxu0  ;;  %v2165_v56 = vmul.f32 %v1269_v50, %v1269_v50  ;;  %v1903_v4 = vsel %vm1771_vm1, %v1269_v50, 0.0 }
  0xf3   : > { %1772 = vst.msk [vmem:[%s3595_s22] sm:$0xff] %vm1771_vm1, %v1261_v12  ;;  %v2163_v54 = vmul.f32 %v1261_v12, %v1261_v12  ;;  %v1264_v55 = vadd.f32 %v3588_v16, %v1263_v53  ;;  %v1900_v57 = vsel %vm1771_vm1, %v1261_v12, 0.0 }
  0xf4   : > { %1775 = vst.msk [vmem:[%s3595_s22 + $0x18] sm:$0xff] %vm1771_vm1, %v1272_v32  ;;  %v2166_v3 = vmul.f32 %v1272_v32, %v1272_v32  ;;  %v2294_v2 = vsel %vm1771_vm1, %v2165_v56, 0.0  ;;  %v1905_v10 = vsel %vm1771_vm1, %v1272_v32, 0.0 }
  0xf5   : > { %1773 = vst.msk [vmem:[%s3595_s22 + $0x8] sm:$0xff] %vm1771_vm1, %v1264_v55  ;;  %v1901_v58 = vsel %vm1771_vm1, %v1264_v55, 0.0  ;;  %v2164_v59 = vmul.f32 %v1264_v55, %v1264_v55  ;;  %v2291_v60 = vsel %vm1771_vm1, %v2163_v54, 0.0 }
  0xf6   : > { %v1902_v22 = vadd.f32 %v1901_v58, %v1900_v57  ;;  %v2296_v1 = vsel %vm1771_vm1, %v2166_v3, 0.0 }
  0xf7   : > { %v2292_v0 = vsel %vm1771_vm1, %v2164_v59, 0.0  ;;  %v2811_v6 = vpop.f32.mrb[4].mxu0 }
  0xf8   : > { %v1904_v5 = vadd.f32 %v1903_v4, %v1902_v22  ;;  %v2293_v7 = vadd.f32 %v2292_v0, %v2291_v60  ;;  %v1285_v51 = vadd.f32 %v2811_v6, %v3588_v16  ;;  %v1276_v25 = vpop.f32.mrb[5].mxu0 }
  0xf9   : > { %v1277_v11 = vadd.f32 %v3588_v16, %v1276_v25  ;;  %v2812_v14 = vpop.f32.mrb[6].mxu0 }
  0xfa   : > { %v1906_v15 = vadd.f32 %v1905_v10, %v1904_v5  ;;  %v2295_v17 = vadd.f32 %v2294_v2, %v2293_v7  ;;  %1778 = vst.msk [vmem:[%s3595_s22 + $0x30] sm:$0xff] %vm1771_vm1, %v1285_v51  ;;  %v1279_v18 = vpop.f32.mrb[7].mxu0  ;;  %v1288_v37 = vadd.f32 %v2812_v14, %v3588_v16  ;;  %v2169_v28 = vmul.f32 %v1285_v51, %v1285_v51 }
  0xfb   : > { %1776 = vst.msk [vmem:[%s3595_s22 + $0x20] sm:$0xff] %vm1771_vm1, %v1277_v11  ;;  %v1907_v19 = vsel %vm1771_vm1, %v1277_v11, 0.0  ;;  %v2167_v33 = vmul.f32 %v1277_v11, %v1277_v11  ;;  %v1280_v62 = vadd.f32 %v3588_v16, %v1279_v18  ;;  %v1911_v42 = vsel %vm1771_vm1, %v1285_v51, 0.0 }
  0xfc   : > { %v2297_v20 = vadd.f32 %v2296_v1, %v2295_v17  ;;  %v1908_v21 = vadd.f32 %v1907_v19, %v1906_v15  ;;  %1779 = vst.msk [vmem:[%s3595_s22 + $0x38] sm:$0xff] %vm1771_vm1, %v1288_v37  ;;  %v2170_v31 = vmul.f32 %v1288_v37, %v1288_v37  ;;  %v1913_v47 = vsel %vm1771_vm1, %v1288_v37, 0.0 }
  0xfd   : > { %v2298_v23 = vsel %vm1771_vm1, %v2167_v33, 0.0  ;;  %1777 = vst.msk [vmem:[%s3595_s22 + $0x28] sm:$0xff] %vm1771_vm1, %v1280_v62  ;;  %v1909_v24 = vsel %vm1771_vm1, %v1280_v62, 0.0  ;;  %v2168_v30 = vmul.f32 %v1280_v62, %v1280_v62  ;;  %v2302_v8 = vsel %vm1771_vm1, %v2169_v28, 0.0 }
  0xfe   : > { %v2299_v29 = vadd.f32 %v2298_v23, %v2297_v20  ;;  %v1910_v38 = vadd.f32 %v1909_v24, %v1908_v21  ;;  %v2304_v48 = vsel %vm1771_vm1, %v2170_v31, 0.0 }
  0xff   : > { %v2815_v43 = vpop.f32.mrb[8].mxu0  ;;  %v2300_v35 = vsel %vm1771_vm1, %v2168_v30, 0.0 }
 0x100   : > { %v1912_v34 = vadd.f32 %v1911_v42, %v1910_v38  ;;  %v1301_v36 = vadd.f32 %v2815_v43, %v3588_v16  ;;  %v1292_v27 = vpop.f32.mrb[9].mxu0  ;;  %v2301_v61 = vadd.f32 %v2300_v35, %v2299_v29 }
 0x101   : > { %v1293_v39 = vadd.f32 %v3588_v16, %v1292_v27  ;;  %v2816_v40 = vpop.f32.mrb[10].mxu0 }
 0x102   : > { %v1914_v9 = vadd.f32 %v1913_v47, %v1912_v34  ;;  %1782 = vst.msk [vmem:[%s3595_s22 + $0x50] sm:$0xff] %vm1771_vm1, %v1301_v36  ;;  %v1304_v26 = vadd.f32 %v2816_v40, %v3588_v16  ;;  %v1295_v41 = vpop.f32.mrb[11].mxu0  ;;  %v2303_v44 = vadd.f32 %v2302_v8, %v2301_v61  ;;  %v2173_v32 = vmul.f32 %v1301_v36, %v1301_v36 }
 0x103   : > { %1780 = vst.msk [vmem:[%s3595_s22 + $0x40] sm:$0xff] %vm1771_vm1, %v1293_v39  ;;  %v1915_v63 = vsel %vm1771_vm1, %v1293_v39, 0.0  ;;  %v2171_v45 = vmul.f32 %v1293_v39, %v1293_v39  ;;  %v1296_v46 = vadd.f32 %v3588_v16, %v1295_v41  ;;  %v1919_v54 = vsel %vm1771_vm1, %v1301_v36, 0.0 }
 0x104   : > { %v1916_v49 = vadd.f32 %v1915_v63, %v1914_v9  ;;  %1783 = vst.msk [vmem:[%s3595_s22 + $0x58] sm:$0xff] %vm1771_vm1, %v1304_v26  ;;  %v2305_v50 = vadd.f32 %v2304_v48, %v2303_v44  ;;  %v2174_v58 = vmul.f32 %v1304_v26, %v1304_v26  ;;  %v1921_v4 = vsel %vm1771_vm1, %v1304_v26, 0.0 }
 0x105   : > { %v2306_v52 = vsel %vm1771_vm1, %v2171_v45, 0.0  ;;  %1781 = vst.msk [vmem:[%s3595_s22 + $0x48] sm:$0xff] %vm1771_vm1, %v1296_v46  ;;  %v1917_v12 = vsel %vm1771_vm1, %v1296_v46, 0.0  ;;  %v2172_v13 = vmul.f32 %v1296_v46, %v1296_v46  ;;  %v2310_v5 = vsel %vm1771_vm1, %v2173_v32, 0.0 }
 0x106   : > { %v1918_v53 = vadd.f32 %v1917_v12, %v1916_v49  ;;  %v2307_v55 = vadd.f32 %v2306_v52, %v2305_v50  ;;  %v2312_v1 = vsel %vm1771_vm1, %v2174_v58, 0.0 }
 0x107   : > { %v2308_v56 = vsel %vm1771_vm1, %v2172_v13, 0.0  ;;  %v2819_v57 = vpop.f32.mrb[12].mxu0 }
 0x108   : > { %v1920_v59 = vadd.f32 %v1919_v54, %v1918_v53  ;;  %v1317_v3 = vadd.f32 %v2819_v57, %v3588_v16  ;;  %v1308_v22 = vpop.f32.mrb[13].mxu0  ;;  %v2309_v60 = vadd.f32 %v2308_v56, %v2307_v55 }
 0x109   : > { %v1309_v0 = vadd.f32 %v3588_v16, %v1308_v22  ;;  %v2820_v6 = vpop.f32.mrb[14].mxu0 }
 0x10a   : > { %v1922_v7 = vadd.f32 %v1921_v4, %v1920_v59  ;;  %1786 = vst.msk [vmem:[%s3595_s22 + $0x70] sm:$0xff] %vm1771_vm1, %v1317_v3  ;;  %v1320_v51 = vadd.f32 %v2820_v6, %v3588_v16  ;;  %v1311_v25 = vpop.f32.mrb[15].mxu0  ;;  %v2311_v2 = vadd.f32 %v2310_v5, %v2309_v60  ;;  %v2177_v37 = vmul.f32 %v1317_v3, %v1317_v3 }
 0x10b   : > { %1784 = vst.msk [vmem:[%s3595_s22 + $0x60] sm:$0xff] %vm1771_vm1, %v1309_v0  ;;  %v1923_v10 = vsel %vm1771_vm1, %v1309_v0, 0.0  ;;  %v2175_v11 = vmul.f32 %v1309_v0, %v1309_v0  ;;  %v1312_v14 = vadd.f32 %v3588_v16, %v1311_v25  ;;  %v1927_v20 = vsel %vm1771_vm1, %v1317_v3, 0.0 }
 0x10c   : > { %v1924_v15 = vadd.f32 %v1923_v10, %v1922_v7  ;;  %1787 = vst.msk [vmem:[%s3595_s22 + $0x78] sm:$0xff] %vm1771_vm1, %v1320_v51  ;;  %v2313_v17 = vadd.f32 %v2312_v1, %v2311_v2  ;;  %v2178_v28 = vmul.f32 %v1320_v51, %v1320_v51  ;;  %v1929_v42 = vsel %vm1771_vm1, %v1320_v51, 0.0 }
 0x10d   : > { %v2314_v18 = vsel %vm1771_vm1, %v2175_v11, 0.0  ;;  %1785 = vst.msk [vmem:[%s3595_s22 + $0x68] sm:$0xff] %vm1771_vm1, %v1312_v14  ;;  %v1925_v19 = vsel %vm1771_vm1, %v1312_v14, 0.0  ;;  %v2176_v33 = vmul.f32 %v1312_v14, %v1312_v14  ;;  %v2318_v35 = vsel %vm1771_vm1, %v2177_v37, 0.0 }
 0x10e   : > { %v1926_v62 = vadd.f32 %v1925_v19, %v1924_v15  ;;  %v2315_v21 = vadd.f32 %v2314_v18, %v2313_v17  ;;  %v2320_v9 = vsel %vm1771_vm1, %v2178_v28, 0.0 }
 0x10f   : > { %v2316_v23 = vsel %vm1771_vm1, %v2176_v33, 0.0  ;;  %v2823_v24 = vpop.f32.mrb[16].mxu0 }
 0x110   : > { %v1928_v29 = vadd.f32 %v1927_v20, %v1926_v62  ;;  %v1333_v38 = vadd.f32 %v2823_v24, %v3588_v16  ;;  %v1324_v30 = vpop.f32.mrb[17].mxu0  ;;  %v2317_v43 = vadd.f32 %v2316_v23, %v2315_v21 }
 0x111   : > { %v1325_v31 = vadd.f32 %v3588_v16, %v1324_v30  ;;  %v2824_v34 = vpop.f32.mrb[18].mxu0 }
 0x112   : > { %v1930_v36 = vadd.f32 %v1929_v42, %v1928_v29  ;;  %1790 = vst.msk [vmem:[%s3595_s22 + $0x90] sm:$0xff] %vm1771_vm1, %v1333_v38  ;;  %v1336_v27 = vadd.f32 %v2824_v34, %v3588_v16  ;;  %v1327_v47 = vpop.f32.mrb[19].mxu0  ;;  %v2319_v61 = vadd.f32 %v2318_v35, %v2317_v43  ;;  %v2181_v46 = vmul.f32 %v1333_v38, %v1333_v38 }
 0x113   : > { %1788 = vst.msk [vmem:[%s3595_s22 + $0x80] sm:$0xff] %vm1771_vm1, %v1325_v31  ;;  %v1931_v39 = vsel %vm1771_vm1, %v1325_v31, 0.0  ;;  %v2179_v40 = vmul.f32 %v1325_v31, %v1325_v31  ;;  %v1328_v8 = vadd.f32 %v3588_v16, %v1327_v47  ;;  %v1935_v49 = vsel %vm1771_vm1, %v1333_v38, 0.0 }
 0x114   : > { %v1932_v26 = vadd.f32 %v1931_v39, %v1930_v36  ;;  %1791 = vst.msk [vmem:[%s3595_s22 + $0x98] sm:$0xff] %vm1771_vm1, %v1336_v27  ;;  %v2321_v41 = vadd.f32 %v2320_v9, %v2319_v61  ;;  %v2182_v13 = vmul.f32 %v1336_v27, %v1336_v27  ;;  %v1937_v55 = vsel %vm1771_vm1, %v1336_v27, 0.0 }
 0x115   : > { %v2322_v44 = vsel %vm1771_vm1, %v2179_v40, 0.0  ;;  %1789 = vst.msk [vmem:[%s3595_s22 + $0x88] sm:$0xff] %vm1771_vm1, %v1328_v8  ;;  %v1933_v63 = vsel %vm1771_vm1, %v1328_v8, 0.0  ;;  %v2180_v45 = vmul.f32 %v1328_v8, %v1328_v8  ;;  %v2326_v59 = vsel %vm1771_vm1, %v2181_v46, 0.0 }
 0x116   : > { %v1934_v48 = vadd.f32 %v1933_v63, %v1932_v26  ;;  %v2323_v50 = vadd.f32 %v2322_v44, %v2321_v41  ;;  %v2328_v7 = vsel %vm1771_vm1, %v2182_v13, 0.0 }
 0x117   : > { %v2324_v52 = vsel %vm1771_vm1, %v2180_v45, 0.0  ;;  %v2827_v12 = vpop.f32.mrb[20].mxu0 }
 0x118   : > { %v1936_v32 = vadd.f32 %v1935_v49, %v1934_v48  ;;  %v1349_v53 = vadd.f32 %v2827_v12, %v3588_v16  ;;  %v1340_v54 = vpop.f32.mrb[21].mxu0  ;;  %v2325_v56 = vadd.f32 %v2324_v52, %v2323_v50 }
 0x119   : > { %v1341_v57 = vadd.f32 %v3588_v16, %v1340_v54  ;;  %v2828_v58 = vpop.f32.mrb[22].mxu0 }
 0x11a   : > { %v1938_v3 = vadd.f32 %v1937_v55, %v1936_v32  ;;  %1794 = vst.msk [vmem:[%s3595_s22 + $0xb0] sm:$0xff] %vm1771_vm1, %v1349_v53  ;;  %v1352_v22 = vadd.f32 %v2828_v58, %v3588_v16  ;;  %v1343_v4 = vpop.f32.mrb[23].mxu0  ;;  %v2327_v60 = vadd.f32 %v2326_v59, %v2325_v56  ;;  %v2185_v14 = vmul.f32 %v1349_v53, %v1349_v53 }
 0x11b   : > { %1792 = vst.msk [vmem:[%s3595_s22 + $0xa0] sm:$0xff] %vm1771_vm1, %v1341_v57  ;;  %v1939_v0 = vsel %vm1771_vm1, %v1341_v57, 0.0  ;;  %v2183_v6 = vmul.f32 %v1341_v57, %v1341_v57  ;;  %v1344_v5 = vadd.f32 %v3588_v16, %v1343_v4  ;;  %v1943_v15 = vsel %vm1771_vm1, %v1349_v53, 0.0 }
 0x11c   : > { %v1940_v51 = vadd.f32 %v1939_v0, %v1938_v3  ;;  %1795 = vst.msk [vmem:[%s3595_s22 + $0xb8] sm:$0xff] %vm1771_vm1, %v1352_v22  ;;  %v2329_v25 = vadd.f32 %v2328_v7, %v2327_v60  ;;  %v2186_v33 = vmul.f32 %v1352_v22, %v1352_v22  ;;  %v1945_v21 = vsel %vm1771_vm1, %v1352_v22, 0.0 }
 0x11d   : > { %v2330_v2 = vsel %vm1771_vm1, %v2183_v6, 0.0  ;;  %1793 = vst.msk [vmem:[%s3595_s22 + $0xa8] sm:$0xff] %vm1771_vm1, %v1344_v5  ;;  %v1941_v10 = vsel %vm1771_vm1, %v1344_v5, 0.0  ;;  %v2184_v11 = vmul.f32 %v1344_v5, %v1344_v5  ;;  %v2334_v29 = vsel %vm1771_vm1, %v2185_v14, 0.0 }
 0x11e   : > { %v1942_v1 = vadd.f32 %v1941_v10, %v1940_v51  ;;  %v2331_v17 = vadd.f32 %v2330_v2, %v2329_v25  ;;  %v2336_v36 = vsel %vm1771_vm1, %v2186_v33, 0.0 }
 0x11f   : > { %v2332_v18 = vsel %vm1771_vm1, %v2184_v11, 0.0  ;;  %v2831_v19 = vpop.f32.mrb[24].mxu0 }
 0x120   : > { %v1944_v37 = vadd.f32 %v1943_v15, %v1942_v1  ;;  %v1365_v62 = vadd.f32 %v2831_v19, %v3588_v16  ;;  %v1356_v20 = vpop.f32.mrb[25].mxu0  ;;  %v2333_v23 = vadd.f32 %v2332_v18, %v2331_v17 }
 0x121   : > { %v1357_v24 = vadd.f32 %v3588_v16, %v1356_v20  ;;  %v2832_v28 = vpop.f32.mrb[26].mxu0 }
 0x122   : > { %v1946_v38 = vadd.f32 %v1945_v21, %v1944_v37  ;;  %1798 = vst.msk [vmem:[%s3595_s22 + $0xd0] sm:$0xff] %vm1771_vm1, %v1365_v62  ;;  %v1368_v30 = vadd.f32 %v2832_v28, %v3588_v16  ;;  %v1359_v42 = vpop.f32.mrb[27].mxu0  ;;  %v2335_v43 = vadd.f32 %v2334_v29, %v2333_v23  ;;  %v2189_v8 = vmul.f32 %v1365_v62, %v1365_v62 }
 0x123   : > { %1796 = vst.msk [vmem:[%s3595_s22 + $0xc0] sm:$0xff] %vm1771_vm1, %v1357_v24  ;;  %v1947_v31 = vsel %vm1771_vm1, %v1357_v24, 0.0  ;;  %v2187_v34 = vmul.f32 %v1357_v24, %v1357_v24  ;;  %v1360_v35 = vadd.f32 %v3588_v16, %v1359_v42  ;;  %v1951_v26 = vsel %vm1771_vm1, %v1365_v62, 0.0 }
 0x124   : > { %v1948_v27 = vadd.f32 %v1947_v31, %v1946_v38  ;;  %1799 = vst.msk [vmem:[%s3595_s22 + $0xd8] sm:$0xff] %vm1771_vm1, %v1368_v30  ;;  %v2337_v47 = vadd.f32 %v2336_v36, %v2335_v43  ;;  %v2190_v45 = vmul.f32 %v1368_v30, %v1368_v30  ;;  %v1953_v50 = vsel %vm1771_vm1, %v1368_v30, 0.0 }
 0x125   : > { %v2338_v61 = vsel %vm1771_vm1, %v2187_v34, 0.0  ;;  %1797 = vst.msk [vmem:[%s3595_s22 + $0xc8] sm:$0xff] %vm1771_vm1, %v1360_v35  ;;  %v1949_v39 = vsel %vm1771_vm1, %v1360_v35, 0.0  ;;  %v2188_v40 = vmul.f32 %v1360_v35, %v1360_v35  ;;  %v2342_v32 = vsel %vm1771_vm1, %v2189_v8, 0.0 }
 0x126   : > { %v1950_v9 = vadd.f32 %v1949_v39, %v1948_v27  ;;  %v2339_v41 = vadd.f32 %v2338_v61, %v2337_v47  ;;  %v2344_v3 = vsel %vm1771_vm1, %v2190_v45, 0.0 }
 0x127   : > { %v2340_v44 = vsel %vm1771_vm1, %v2188_v40, 0.0  ;;  %v2835_v63 = vpop.f32.mrb[28].mxu0  ;;  %v2871_v27 = vpop.f32.mrb[0].mxu1 }
 0x128   : > { %v1952_v46 = vadd.f32 %v1951_v26, %v1950_v9  ;;  %v1381_v48 = vadd.f32 %v2835_v63, %v3588_v16  ;;  %v1372_v49 = vpop.f32.mrb[29].mxu0  ;;  %v2341_v52 = vadd.f32 %v2340_v44, %v2339_v41  ;;  %v3775_v8 = vadd.f32 %v2871_v27, %v3588_v16  ;;  %v1516_v9 = vpop.f32.mrb[1].mxu1 }
 0x129   : > { %v1373_v12 = vadd.f32 %v3588_v16, %v1372_v49  ;;  %v2836_v13 = vpop.f32.mrb[30].mxu0  ;;  %v3779_v45 = vadd.f32 %v3588_v16, %v1516_v9 }
 0x12a   : > { %v1954_v53 = vadd.f32 %v1953_v50, %v1952_v46  ;;  %1802 = vst.msk [vmem:[%s3595_s22 + $0xf0] sm:$0xff] %vm1771_vm1, %v1381_v48  ;;  %v1384_v54 = vadd.f32 %v2836_v13, %v3588_v16  ;;  %v1375_v55 = vpop.f32.mrb[31].mxu0  ;;  %v2343_v56 = vadd.f32 %v2342_v32, %v2341_v52  ;;  %v2193_v5 = vmul.f32 %v1381_v48, %v1381_v48  ;;  %v2872_v46 = vpop.f32.mrb[2].mxu1 }
 0x12b   : > { %1800 = vst.msk [vmem:[%s3595_s22 + $0xe0] sm:$0xff] %vm1771_vm1, %v1373_v12  ;;  %v1955_v57 = vsel %vm1771_vm1, %v1373_v12, 0.0  ;;  %v2191_v58 = vmul.f32 %v1373_v12, %v1373_v12  ;;  %v1376_v59 = vadd.f32 %v3588_v16, %v1375_v55  ;;  %v1959_v51 = vsel %vm1771_vm1, %v1381_v48, 0.0  ;;  %1838 = vst.msk [vmem:[%s3595_s22 + $0x210] sm:$0xff] %vm1771_vm1, %v3775_v8  ;;  %v1519_v12 = vpop.f32.mrb[3].mxu1 }
 0x12c   : > { %v1956_v22 = vadd.f32 %v1955_v57, %v1954_v53  ;;  %1803 = vst.msk [vmem:[%s3595_s22 + $0xf8] sm:$0xff] %vm1771_vm1, %v1384_v54  ;;  %v2345_v4 = vadd.f32 %v2344_v3, %v2343_v56  ;;  %v2194_v11 = vmul.f32 %v1384_v54, %v1384_v54  ;;  %v1961_v17 = vsel %vm1771_vm1, %v1384_v54, 0.0  ;;  %1836 = vst.msk [vmem:[%s3595_s22 + $0x200] sm:$0xff] %vm1771_vm1, %v3779_v45 }
 0x12d   : > { %v2346_v60 = vsel %vm1771_vm1, %v2191_v58, 0.0  ;;  %1801 = vst.msk [vmem:[%s3595_s22 + $0xe8] sm:$0xff] %vm1771_vm1, %v1376_v59  ;;  %v1957_v0 = vsel %vm1771_vm1, %v1376_v59, 0.0  ;;  %v2192_v6 = vmul.f32 %v1376_v59, %v1376_v59  ;;  %v2350_v37 = vsel %vm1771_vm1, %v2193_v5, 0.0 }
 0x12e   : > { %v1958_v7 = vadd.f32 %v1957_v0, %v1956_v22  ;;  %v2347_v25 = vadd.f32 %v2346_v60, %v2345_v4  ;;  %v2352_v38 = vsel %vm1771_vm1, %v2194_v11, 0.0 }
 0x12f   : > { %v2348_v2 = vsel %vm1771_vm1, %v2192_v6, 0.0  ;;  %v2839_v10 = vpop.f32.mrb[32].mxu0 }
 0x130   : > { %v1960_v14 = vadd.f32 %v1959_v51, %v1958_v7  ;;  %v1397_v1 = vadd.f32 %v2839_v10, %v3588_v16  ;;  %v1388_v15 = vpop.f32.mrb[33].mxu0  ;;  %v2349_v18 = vadd.f32 %v2348_v2, %v2347_v25  ;;  %v2875_v51 = vpop.f32.mrb[4].mxu1 }
 0x131   : > { %v1389_v19 = vadd.f32 %v3588_v16, %v1388_v15  ;;  %v2840_v33 = vpop.f32.mrb[34].mxu0 }
 0x132   : > { %v1962_v62 = vadd.f32 %v1961_v17, %v1960_v14  ;;  %1806 = vst.msk [vmem:[%s3595_s22 + $0x110] sm:$0xff] %vm1771_vm1, %v1397_v1  ;;  %v1400_v20 = vadd.f32 %v2840_v33, %v3588_v16  ;;  %v1391_v21 = vpop.f32.mrb[35].mxu0  ;;  %v2351_v23 = vadd.f32 %v2350_v37, %v2349_v18  ;;  %v2197_v35 = vmul.f32 %v1397_v1, %v1397_v1 }
 0x133   : > { %1804 = vst.msk [vmem:[%s3595_s22 + $0x100] sm:$0xff] %vm1771_vm1, %v1389_v19  ;;  %v1963_v24 = vsel %vm1771_vm1, %v1389_v19, 0.0  ;;  %v2195_v28 = vmul.f32 %v1389_v19, %v1389_v19  ;;  %v1392_v29 = vadd.f32 %v3588_v16, %v1391_v21  ;;  %v1967_v47 = vsel %vm1771_vm1, %v1397_v1, 0.0  ;;  %v1532_v1 = vpop.f32.mrb[5].mxu1 }
 0x134   : > { %v1964_v30 = vadd.f32 %v1963_v24, %v1962_v62  ;;  %1807 = vst.msk [vmem:[%s3595_s22 + $0x118] sm:$0xff] %vm1771_vm1, %v1400_v20  ;;  %v2353_v42 = vadd.f32 %v2352_v38, %v2351_v23  ;;  %v2198_v26 = vmul.f32 %v1400_v20, %v1400_v20  ;;  %v1969_v48 = vsel %vm1771_vm1, %v1400_v20, 0.0  ;;  %v3816_v37 = vpop.f32.mrb[6].mxu1 }
 0x135   : > { %v2354_v43 = vsel %vm1771_vm1, %v2195_v28, 0.0  ;;  %1805 = vst.msk [vmem:[%s3595_s22 + $0x108] sm:$0xff] %vm1771_vm1, %v1392_v29  ;;  %v1965_v31 = vsel %vm1771_vm1, %v1392_v29, 0.0  ;;  %v2196_v34 = vmul.f32 %v1392_v29, %v1392_v29  ;;  %v2358_v13 = vsel %vm1771_vm1, %v2197_v35, 0.0  ;;  %v3823_v24 = vpop.f32.mrb[7].mxu1 }
 0x136   : > { %v1966_v36 = vadd.f32 %v1965_v31, %v1964_v30  ;;  %v2355_v61 = vadd.f32 %v2354_v43, %v2353_v42  ;;  %v2360_v59 = vsel %vm1771_vm1, %v2198_v26, 0.0  ;;  %v3807_v14 = vadd.f32 %v2872_v46, %v3588_v16 }
 0x137   : > { %v2356_v39 = vsel %vm1771_vm1, %v2196_v34, 0.0  ;;  %v2843_v40 = vpop.f32.mrb[36].mxu0  ;;  %v3811_v19 = vadd.f32 %v3588_v16, %v1519_v12  ;;  %v3814_v33 = vadd.f32 %v2875_v51, %v3588_v16 }
 0x138   : > { %v1968_v41 = vadd.f32 %v1967_v47, %v1966_v36  ;;  %v1413_v44 = vadd.f32 %v2843_v40, %v3588_v16  ;;  %v1404_v63 = vpop.f32.mrb[37].mxu0  ;;  %v2357_v49 = vadd.f32 %v2356_v39, %v2355_v61  ;;  %1839 = vst.msk [vmem:[%s3595_s22 + $0x218] sm:$0xff] %vm1771_vm1, %v3807_v14 }
 0x139   : > { %v1405_v50 = vadd.f32 %v3588_v16, %v1404_v63  ;;  %v2844_v52 = vpop.f32.mrb[38].mxu0  ;;  %1837 = vst.msk [vmem:[%s3595_s22 + $0x208] sm:$0xff] %vm1771_vm1, %v3811_v19  ;;  %1842 = vst.msk [vmem:[%s3595_s22 + $0x230] sm:$0xff] %vm1771_vm1, %v3814_v33 }
 0x13a   : > { %v1970_v32 = vadd.f32 %v1969_v48, %v1968_v41  ;;  %1810 = vst.msk [vmem:[%s3595_s22 + $0x130] sm:$0xff] %vm1771_vm1, %v1413_v44  ;;  %v1416_v53 = vadd.f32 %v2844_v52, %v3588_v16  ;;  %v1407_v54 = vpop.f32.mrb[39].mxu0  ;;  %v2359_v55 = vadd.f32 %v2358_v13, %v2357_v49  ;;  %v1975_v6 = vsel %vm1771_vm1, %v1413_v44, 0.0 }
 0x13b   : > { %1808 = vst.msk [vmem:[%s3595_s22 + $0x120] sm:$0xff] %vm1771_vm1, %v1405_v50  ;;  %v1971_v56 = vsel %vm1771_vm1, %v1405_v50, 0.0  ;;  %v2199_v57 = vmul.f32 %v1405_v50, %v1405_v50  ;;  %v1408_v58 = vadd.f32 %v3588_v16, %v1407_v54  ;;  %v2201_v5 = vmul.f32 %v1413_v44, %v1413_v44 }
 0x13c   : > { %v1972_v3 = vadd.f32 %v1971_v56, %v1970_v32  ;;  %1811 = vst.msk [vmem:[%s3595_s22 + $0x138] sm:$0xff] %vm1771_vm1, %v1416_v53  ;;  %v2361_v22 = vadd.f32 %v2360_v59, %v2359_v55  ;;  %v2202_v2 = vmul.f32 %v1416_v53, %v1416_v53  ;;  %v1977_v62 = vsel %vm1771_vm1, %v1416_v53, 0.0 }
 0x13d   : > { %v2362_v4 = vsel %vm1771_vm1, %v2199_v57, 0.0  ;;  %1809 = vst.msk [vmem:[%s3595_s22 + $0x128] sm:$0xff] %vm1771_vm1, %v1408_v58  ;;  %v1973_v60 = vsel %vm1771_vm1, %v1408_v58, 0.0  ;;  %v2200_v0 = vmul.f32 %v1408_v58, %v1408_v58  ;;  %v2366_v28 = vsel %vm1771_vm1, %v2201_v5, 0.0 }
 0x13e   : > { %v1974_v7 = vadd.f32 %v1973_v60, %v1972_v3  ;;  %v2363_v25 = vadd.f32 %v2362_v4, %v2361_v22  ;;  %v2368_v35 = vsel %vm1771_vm1, %v2202_v2, 0.0  ;;  %v2879_v26 = vpop.f32.mrb[8].mxu1  ;;  %v3856_v56 = vadd.f32 %v3588_v16, %v1532_v1 }
 0x13f   : > { %v2364_v10 = vsel %vm1771_vm1, %v2200_v0, 0.0  ;;  %v2847_v11 = vpop.f32.mrb[40].mxu0  ;;  %v3848_v48 = vpop.f32.mrb[9].mxu1 }
 0x140   : > { %v1976_v15 = vadd.f32 %v1975_v6, %v1974_v7  ;;  %v1429_v17 = vadd.f32 %v2847_v11, %v3588_v16  ;;  %v1420_v18 = vpop.f32.mrb[41].mxu0  ;;  %v2365_v20 = vadd.f32 %v2364_v10, %v2363_v25  ;;  %v3851_v13 = vpop.f32.mrb[10].mxu1  ;;  %1840 = vst.msk [vmem:[%s3595_s22 + $0x220] sm:$0xff] %vm1771_vm1, %v3856_v56 }
 0x141   : > { %v1421_v21 = vadd.f32 %v3588_v16, %v1420_v18  ;;  %v2848_v23 = vpop.f32.mrb[42].mxu0  ;;  %v3858_v57 = vpop.f32.mrb[11].mxu1 }
 0x142   : > { %v1978_v29 = vadd.f32 %v1977_v62, %v1976_v15  ;;  %1814 = vst.msk [vmem:[%s3595_s22 + $0x150] sm:$0xff] %vm1771_vm1, %v1429_v17  ;;  %v1432_v38 = vadd.f32 %v2848_v23, %v3588_v16  ;;  %v1423_v30 = vpop.f32.mrb[43].mxu0  ;;  %v2367_v42 = vadd.f32 %v2366_v28, %v2365_v20  ;;  %v2205_v40 = vmul.f32 %v1429_v17, %v1429_v17 }
 0x143   : > { %1812 = vst.msk [vmem:[%s3595_s22 + $0x140] sm:$0xff] %vm1771_vm1, %v1421_v21  ;;  %v1979_v43 = vsel %vm1771_vm1, %v1421_v21, 0.0  ;;  %v2203_v31 = vmul.f32 %v1421_v21, %v1421_v21  ;;  %v1424_v34 = vadd.f32 %v3588_v16, %v1423_v30  ;;  %v1983_v41 = vsel %vm1771_vm1, %v1429_v17, 0.0 }
 0x144   : > { %v1980_v36 = vadd.f32 %v1979_v43, %v1978_v29  ;;  %1815 = vst.msk [vmem:[%s3595_s22 + $0x158] sm:$0xff] %vm1771_vm1, %v1432_v38  ;;  %v2369_v27 = vadd.f32 %v2368_v35, %v2367_v42  ;;  %v2206_v49 = vmul.f32 %v1432_v38, %v1432_v38  ;;  %v1985_v32 = vsel %vm1771_vm1, %v1432_v38, 0.0 }
 0x145   : > { %v2370_v47 = vsel %vm1771_vm1, %v2203_v31, 0.0  ;;  %1813 = vst.msk [vmem:[%s3595_s22 + $0x148] sm:$0xff] %vm1771_vm1, %v1424_v34  ;;  %v1981_v61 = vsel %vm1771_vm1, %v1424_v34, 0.0  ;;  %v2204_v39 = vmul.f32 %v1424_v34, %v1424_v34  ;;  %v2374_v58 = vsel %vm1771_vm1, %v2205_v40, 0.0 }
 0x146   : > { %v1982_v9 = vadd.f32 %v1981_v61, %v1980_v36  ;;  %v2371_v44 = vadd.f32 %v2370_v47, %v2369_v27  ;;  %v2376_v5 = vsel %vm1771_vm1, %v2206_v49, 0.0  ;;  %v3879_v17 = vpop.f32.mrb[12].mxu1  ;;  %v3884_v23 = vadd.f32 %v3816_v37, %v3588_v16 }
 0x147   : > { %v2372_v63 = vsel %vm1771_vm1, %v2204_v39, 0.0  ;;  %v2851_v46 = vpop.f32.mrb[44].mxu0  ;;  %v3886_v28 = vpop.f32.mrb[13].mxu1  ;;  %v3891_v42 = vadd.f32 %v3588_v16, %v3823_v24  ;;  %v3894_v43 = vadd.f32 %v2879_v26, %v3588_v16 }
 0x148   : > { %v1984_v50 = vadd.f32 %v1983_v41, %v1982_v9  ;;  %v1445_v52 = vadd.f32 %v2851_v46, %v3588_v16  ;;  %v1436_v12 = vpop.f32.mrb[45].mxu0  ;;  %v2373_v53 = vadd.f32 %v2372_v63, %v2371_v44  ;;  %v3896_v31 = vpop.f32.mrb[14].mxu1  ;;  %1843 = vst.msk [vmem:[%s3595_s22 + $0x238] sm:$0xff] %vm1771_vm1, %v3884_v23 }
 0x149   : > { %v1437_v54 = vadd.f32 %v3588_v16, %v1436_v12  ;;  %v2852_v55 = vpop.f32.mrb[46].mxu0  ;;  %v3903_v27 = vpop.f32.mrb[15].mxu1  ;;  %1841 = vst.msk [vmem:[%s3595_s22 + $0x228] sm:$0xff] %vm1771_vm1, %v3891_v42  ;;  %1846 = vst.msk [vmem:[%s3595_s22 + $0x250] sm:$0xff] %vm1771_vm1, %v3894_v43 }
 0x14a   : > { %v1986_v59 = vadd.f32 %v1985_v32, %v1984_v50  ;;  %1818 = vst.msk [vmem:[%s3595_s22 + $0x170] sm:$0xff] %vm1771_vm1, %v1445_v52  ;;  %v1448_v3 = vadd.f32 %v2852_v55, %v3588_v16  ;;  %v1439_v22 = vpop.f32.mrb[47].mxu0  ;;  %v2375_v4 = vadd.f32 %v2374_v58, %v2373_v53  ;;  %v1991_v11 = vsel %vm1771_vm1, %v1445_v52, 0.0 }
 0x14b   : > { %1816 = vst.msk [vmem:[%s3595_s22 + $0x160] sm:$0xff] %vm1771_vm1, %v1437_v54  ;;  %v1987_v60 = vsel %vm1771_vm1, %v1437_v54, 0.0  ;;  %v2207_v0 = vmul.f32 %v1437_v54, %v1437_v54  ;;  %v1440_v6 = vadd.f32 %v3588_v16, %v1439_v22  ;;  %v2209_v1 = vmul.f32 %v1445_v52, %v1445_v52 }
 0x14c   : > { %v1988_v7 = vadd.f32 %v1987_v60, %v1986_v59  ;;  %1819 = vst.msk [vmem:[%s3595_s22 + $0x178] sm:$0xff] %vm1771_vm1, %v1448_v3  ;;  %v2377_v51 = vadd.f32 %v2376_v5, %v2375_v4  ;;  %v2210_v62 = vmul.f32 %v1448_v3, %v1448_v3  ;;  %v1993_v37 = vsel %vm1771_vm1, %v1448_v3, 0.0 }
 0x14d   : > { %v2378_v25 = vsel %vm1771_vm1, %v2207_v0, 0.0  ;;  %1817 = vst.msk [vmem:[%s3595_s22 + $0x168] sm:$0xff] %vm1771_vm1, %v1440_v6  ;;  %v1989_v2 = vsel %vm1771_vm1, %v1440_v6, 0.0  ;;  %v2208_v10 = vmul.f32 %v1440_v6, %v1440_v6  ;;  %v2382_v24 = vsel %vm1771_vm1, %v2209_v1, 0.0 }
 0x14e   : > { %v1990_v15 = vadd.f32 %v1989_v2, %v1988_v7  ;;  %v2379_v18 = vadd.f32 %v2378_v25, %v2377_v51  ;;  %v2384_v44 = vsel %vm1771_vm1, %v2210_v62, 0.0  ;;  %v3926_v53 = vpop.f32.mrb[16].mxu1  ;;  %v3939_v2 = vadd.f32 %v3588_v16, %v3848_v48 }
 0x14f   : > { %v2380_v20 = vsel %vm1771_vm1, %v2208_v10, 0.0  ;;  %v2855_v21 = vpop.f32.mrb[48].mxu0  ;;  %v3930_v3 = vpop.f32.mrb[17].mxu1 }
 0x150   : > { %v1992_v29 = vadd.f32 %v1991_v11, %v1990_v15  ;;  %v1461_v38 = vadd.f32 %v2855_v21, %v3588_v16  ;;  %v1452_v30 = vpop.f32.mrb[49].mxu0  ;;  %v2381_v34 = vadd.f32 %v2380_v20, %v2379_v18  ;;  %v3933_v6 = vpop.f32.mrb[18].mxu1  ;;  %1844 = vst.msk [vmem:[%s3595_s22 + $0x240] sm:$0xff] %vm1771_vm1, %v3939_v2 }
 0x151   : > { %v1453_v35 = vadd.f32 %v3588_v16, %v1452_v30  ;;  %v2856_v36 = vpop.f32.mrb[50].mxu0  ;;  %v3941_v10 = vpop.f32.mrb[19].mxu1 }
 0x152   : > { %v1994_v47 = vadd.f32 %v1993_v37, %v1992_v29  ;;  %1822 = vst.msk [vmem:[%s3595_s22 + $0x190] sm:$0xff] %vm1771_vm1, %v1461_v38  ;;  %v1464_v61 = vadd.f32 %v2856_v36, %v3588_v16  ;;  %v1455_v39 = vpop.f32.mrb[51].mxu0  ;;  %v2383_v40 = vadd.f32 %v2382_v24, %v2381_v34  ;;  %v2213_v12 = vmul.f32 %v1461_v38, %v1461_v38 }
 0x153   : > { %1820 = vst.msk [vmem:[%s3595_s22 + $0x180] sm:$0xff] %vm1771_vm1, %v1453_v35  ;;  %v1995_v9 = vsel %vm1771_vm1, %v1453_v35, 0.0  ;;  %v2211_v26 = vmul.f32 %v1453_v35, %v1453_v35  ;;  %v1456_v41 = vadd.f32 %v3588_v16, %v1455_v39  ;;  %v1999_v54 = vsel %vm1771_vm1, %v1461_v38, 0.0 }
 0x154   : > { %v1996_v63 = vadd.f32 %v1995_v9, %v1994_v47  ;;  %1823 = vst.msk [vmem:[%s3595_s22 + $0x198] sm:$0xff] %vm1771_vm1, %v1464_v61  ;;  %v2385_v46 = vadd.f32 %v2384_v44, %v2383_v40  ;;  %v2214_v22 = vmul.f32 %v1464_v61, %v1464_v61  ;;  %v2001_v5 = vsel %vm1771_vm1, %v1464_v61, 0.0 }
 0x155   : > { %v2386_v49 = vsel %vm1771_vm1, %v2211_v26, 0.0  ;;  %1821 = vst.msk [vmem:[%s3595_s22 + $0x188] sm:$0xff] %vm1771_vm1, %v1456_v41  ;;  %v1997_v50 = vsel %vm1771_vm1, %v1456_v41, 0.0  ;;  %v2212_v52 = vmul.f32 %v1456_v41, %v1456_v41  ;;  %v2390_v11 = vsel %vm1771_vm1, %v2213_v12, 0.0 }
 0x156   : > { %v1998_v32 = vadd.f32 %v1997_v50, %v1996_v63  ;;  %v2387_v55 = vadd.f32 %v2386_v49, %v2385_v46  ;;  %v2392_v29 = vsel %vm1771_vm1, %v2214_v22, 0.0  ;;  %v3962_v61 = vpop.f32.mrb[20].mxu1  ;;  %v3967_v41 = vadd.f32 %v3851_v13, %v3588_v16 }
 0x157   : > { %v2388_v58 = vsel %vm1771_vm1, %v2212_v52, 0.0  ;;  %v2859_v59 = vpop.f32.mrb[52].mxu0  ;;  %v3969_v44 = vpop.f32.mrb[21].mxu1  ;;  %v3974_v50 = vadd.f32 %v3588_v16, %v3858_v57  ;;  %v3978_v52 = vadd.f32 %v3879_v17, %v3588_v16 }
 0x158   : > { %v2000_v4 = vadd.f32 %v1999_v54, %v1998_v32  ;;  %v1477_v60 = vadd.f32 %v2859_v59, %v3588_v16  ;;  %v1468_v0 = vpop.f32.mrb[53].mxu0  ;;  %v2389_v7 = vadd.f32 %v2388_v58, %v2387_v55  ;;  %v3980_v13 = vpop.f32.mrb[22].mxu1  ;;  %1847 = vst.msk [vmem:[%s3595_s22 + $0x258] sm:$0xff] %vm1771_vm1, %v3967_v41 }
 0x159   : > { %v1469_v51 = vadd.f32 %v3588_v16, %v1468_v0  ;;  %v2860_v25 = vpop.f32.mrb[54].mxu0  ;;  %v3987_v58 = vpop.f32.mrb[23].mxu1  ;;  %1845 = vst.msk [vmem:[%s3595_s22 + $0x248] sm:$0xff] %vm1771_vm1, %v3974_v50  ;;  %1850 = vst.msk [vmem:[%s3595_s22 + $0x270] sm:$0xff] %vm1771_vm1, %v3978_v52 }
 0x15a   : > { %v2002_v1 = vadd.f32 %v2001_v5, %v2000_v4  ;;  %1826 = vst.msk [vmem:[%s3595_s22 + $0x1b0] sm:$0xff] %vm1771_vm1, %v1477_v60  ;;  %v1480_v15 = vadd.f32 %v2860_v25, %v3588_v16  ;;  %v1471_v18 = vpop.f32.mrb[55].mxu0  ;;  %v2391_v62 = vadd.f32 %v2390_v11, %v2389_v7  ;;  %v2007_v36 = vsel %vm1771_vm1, %v1477_v60, 0.0 }
 0x15b   : > { %1824 = vst.msk [vmem:[%s3595_s22 + $0x1a0] sm:$0xff] %vm1771_vm1, %v1469_v51  ;;  %v2003_v20 = vsel %vm1771_vm1, %v1469_v51, 0.0  ;;  %v2215_v21 = vmul.f32 %v1469_v51, %v1469_v51  ;;  %v1472_v48 = vadd.f32 %v3588_v16, %v1471_v18  ;;  %v2217_v24 = vmul.f32 %v1477_v60, %v1477_v60 }
 0x15c   : > { %v2004_v38 = vadd.f32 %v2003_v20, %v2002_v1  ;;  %1827 = vst.msk [vmem:[%s3595_s22 + $0x1b8] sm:$0xff] %vm1771_vm1, %v1480_v15  ;;  %v2393_v30 = vadd.f32 %v2392_v29, %v2391_v62  ;;  %v2218_v40 = vmul.f32 %v1480_v15, %v1480_v15  ;;  %v2009_v12 = vsel %vm1771_vm1, %v1480_v15, 0.0 }
 0x15d   : > { %v2394_v37 = vsel %vm1771_vm1, %v2215_v21, 0.0  ;;  %1825 = vst.msk [vmem:[%s3595_s22 + $0x1a8] sm:$0xff] %vm1771_vm1, %v1472_v48  ;;  %v2005_v34 = vsel %vm1771_vm1, %v1472_v48, 0.0  ;;  %v2216_v35 = vmul.f32 %v1472_v48, %v1472_v48  ;;  %v2398_v57 = vsel %vm1771_vm1, %v2217_v24, 0.0 }
 0x15e   : > { %v2006_v47 = vadd.f32 %v2005_v34, %v2004_v38  ;;  %v2395_v39 = vadd.f32 %v2394_v37, %v2393_v30  ;;  %v2400_v7 = vsel %vm1771_vm1, %v2218_v40, 0.0  ;;  %v4010_v20 = vpop.f32.mrb[24].mxu1  ;;  %v4019_v34 = vld [vmem:[%s4734_s4] ss:$0 sm:$0xff] }
 0x15f   : > { %v2396_v9 = vsel %vm1771_vm1, %v2216_v35, 0.0  ;;  %v2863_v26 = vpop.f32.mrb[56].mxu0  ;;  %v4014_v38 = vpop.f32.mrb[25].mxu1 }
 0x160   : > { %v2008_v63 = vadd.f32 %v2007_v36, %v2006_v47  ;;  %v1493_v46 = vadd.f32 %v2863_v26, %v3588_v16  ;;  %v1484_v49 = vpop.f32.mrb[57].mxu0  ;;  %v2397_v32 = vadd.f32 %v2396_v9, %v2395_v39  ;;  %v4022_v24 = vpop.f32.mrb[26].mxu1  ;;  %v4028_v26 = vadd.f32 %v4019_v34, %v3886_v28 }
 0x161   : > { %v1485_v54 = vadd.f32 %v3588_v16, %v1484_v49  ;;  %v2864_v55 = vpop.f32.mrb[58].mxu0 }
 0x162   : > { %v2010_v59 = vadd.f32 %v2009_v12, %v2008_v63  ;;  %1830 = vst.msk [vmem:[%s3595_s22 + $0x1d0] sm:$0xff] %vm1771_vm1, %v1493_v46  ;;  %v1496_v17 = vadd.f32 %v2864_v55, %v3588_v16  ;;  %v1487_v22 = vpop.f32.mrb[59].mxu0  ;;  %v2399_v4 = vadd.f32 %v2398_v57, %v2397_v32  ;;  %v2221_v18 = vmul.f32 %v1493_v46, %v1493_v46  ;;  %v4030_v63 = vpop.f32.mrb[27].mxu1 }
 0x163   : > { %1828 = vst.msk [vmem:[%s3595_s22 + $0x1c0] sm:$0xff] %vm1771_vm1, %v1485_v54  ;;  %v2011_v60 = vsel %vm1771_vm1, %v1485_v54, 0.0  ;;  %v2219_v0 = vmul.f32 %v1485_v54, %v1485_v54  ;;  %v1488_v5 = vadd.f32 %v3588_v16, %v1487_v22  ;;  %v2015_v21 = vsel %vm1771_vm1, %v1493_v46, 0.0  ;;  %1848 = vst.msk [vmem:[%s3595_s22 + $0x260] sm:$0xff] %vm1771_vm1, %v4028_v26 }
 0x164   : > { %v2012_v51 = vadd.f32 %v2011_v60, %v2010_v59  ;;  %1831 = vst.msk [vmem:[%s3595_s22 + $0x1d8] sm:$0xff] %vm1771_vm1, %v1496_v17  ;;  %v2401_v25 = vadd.f32 %v2400_v7, %v2399_v4  ;;  %v2222_v30 = vmul.f32 %v1496_v17, %v1496_v17  ;;  %v2017_v47 = vsel %vm1771_vm1, %v1496_v17, 0.0 }
 0x165   : > { %v2402_v11 = vsel %vm1771_vm1, %v2219_v0, 0.0  ;;  %1829 = vst.msk [vmem:[%s3595_s22 + $0x1c8] sm:$0xff] %vm1771_vm1, %v1488_v5  ;;  %v2013_v1 = vsel %vm1771_vm1, %v1488_v5, 0.0  ;;  %v2220_v15 = vmul.f32 %v1488_v5, %v1488_v5  ;;  %v2406_v46 = vsel %vm1771_vm1, %v2221_v18, 0.0 }
 0x166   : > { %v2014_v62 = vadd.f32 %v2013_v1, %v2012_v51  ;;  %v2403_v16 = vadd.f32 %v2402_v11, %v2401_v25  ;;  %v2408_v59 = vsel %vm1771_vm1, %v2222_v30, 0.0  ;;  %v2227_v25 = vmul.f32 %v3779_v45, %v3779_v45  ;;  %v4053_v11 = vpop.f32.mrb[28].mxu1 }
 0x167   : > { %v2404_v48 = vsel %vm1771_vm1, %v2220_v15, 0.0  ;;  %v2867_v29 = vpop.f32.mrb[60].mxu0  ;;  %v4072_v30 = vadd.f32 %v4019_v34, %v3930_v3 }
 0x168   : > { %v2016_v37 = vadd.f32 %v2015_v21, %v2014_v62  ;;  %v1509_v35 = vadd.f32 %v4019_v34, %v2867_v29  ;;  %v1500_v36 = vpop.f32.mrb[61].mxu0  ;;  %v2405_v39 = vadd.f32 %v2404_v48, %v2403_v16  ;;  %v4058_v62 = vadd.f32 %v4019_v34, %v3896_v31  ;;  %v4060_v21 = vpop.f32.mrb[29].mxu1 }
 0x169   : > { %v1501_v40 = vadd.f32 %v4019_v34, %v1500_v36  ;;  %v2868_v9 = vpop.f32.mrb[62].mxu0  ;;  %v4064_v48 = vadd.f32 %v4019_v34, %v3903_v27  ;;  %v4068_v29 = vadd.f32 %v4019_v34, %v3926_v53  ;;  %v2027_v36 = vsel %vm1771_vm1, %v3779_v45, 0.0  ;;  %1852 = vst.msk [vmem:[%s3595_s22 + $0x280] sm:$0xff] %vm1771_vm1, %v4072_v30 }
 0x16a   : > { %v2018_v49 = vadd.f32 %v2017_v47, %v2016_v37  ;;  %1834 = vst.msk [vmem:[%s3595_s22 + $0x1f0] sm:$0xff] %vm1771_vm1, %v1509_v35  ;;  %v1512_v12 = vadd.f32 %v4019_v34, %v2868_v9  ;;  %v1503_v32 = vpop.f32.mrb[63].mxu0  ;;  %v2407_v54 = vadd.f32 %v2406_v46, %v2405_v39  ;;  %v2023_v5 = vsel %vm1771_vm1, %v1509_v35, 0.0  ;;  %v4074_v37 = vpop.f32.mrb[30].mxu1  ;;  %1851 = vst.msk [vmem:[%s3595_s22 + $0x278] sm:$0xff] %vm1771_vm1, %v4058_v62 }
 0x16b   : > { %1832 = vst.msk [vmem:[%s3595_s22 + $0x1e0] sm:$0xff] %vm1771_vm1, %v1501_v40  ;;  %v2019_v55 = vsel %vm1771_vm1, %v1501_v40, 0.0  ;;  %v2223_v57 = vmul.f32 %v1501_v40, %v1501_v40  ;;  %v1504_v28 = vadd.f32 %v4019_v34, %v1503_v32  ;;  %v2225_v7 = vmul.f32 %v1509_v35, %v1509_v35  ;;  %v4082_v27 = vpop.f32.mrb[31].mxu1  ;;  %1849 = vst.msk [vmem:[%s3595_s22 + $0x268] sm:$0xff] %vm1771_vm1, %v4064_v48 }
 0x16c   : > { %v2020_v17 = vadd.f32 %v2019_v55, %v2018_v49  ;;  %1835 = vst.msk [vmem:[%s3595_s22 + $0x1f8] sm:$0xff] %vm1771_vm1, %v1512_v12  ;;  %v2409_v22 = vadd.f32 %v2408_v59, %v2407_v54  ;;  %v2226_v15 = vmul.f32 %v1512_v12, %v1512_v12  ;;  %v2025_v31 = vsel %vm1771_vm1, %v1512_v12, 0.0  ;;  %1854 = vst.msk [vmem:[%s3595_s22 + $0x290] sm:$0xff] %vm1771_vm1, %v4068_v29 }
 0x16d   : > { %v2410_v4 = vsel %vm1771_vm1, %v2223_v57, 0.0  ;;  %1833 = vst.msk [vmem:[%s3595_s22 + $0x1e8] sm:$0xff] %vm1771_vm1, %v1504_v28  ;;  %v2021_v60 = vsel %vm1771_vm1, %v1504_v28, 0.0  ;;  %v2224_v0 = vmul.f32 %v1504_v28, %v1504_v28  ;;  %v2414_v53 = vsel %vm1771_vm1, %v2225_v7, 0.0 }
 0x16e   : > { %v2022_v51 = vadd.f32 %v2021_v60, %v2020_v17  ;;  %v2411_v1 = vadd.f32 %v2410_v4, %v2409_v22  ;;  %v2418_v45 = vsel %vm1771_vm1, %v2227_v25, 0.0  ;;  %v2416_v39 = vsel %vm1771_vm1, %v2226_v15, 0.0 }
 0x16f   : > { %v2412_v18 = vsel %vm1771_vm1, %v2224_v0, 0.0  ;;  %v2228_v9 = vmul.f32 %v3811_v19, %v3811_v19  ;;  %v4100_v46 = vadd.f32 %v4019_v34, %v3933_v6  ;;  %v2029_v12 = vsel %vm1771_vm1, %v3811_v19, 0.0  ;;  %v4117_v6 = vpop.f32.mrb[32].mxu1 }
 0x170   : > { %v2024_v16 = vadd.f32 %v2023_v5, %v2022_v51  ;;  %v2413_v35 = vadd.f32 %v2412_v18, %v2411_v1  ;;  %v4106_v32 = vadd.f32 %v4019_v34, %v3941_v10  ;;  %v4110_v54 = vadd.f32 %v4019_v34, %v3962_v61  ;;  %v4131_v59 = vpop.f32.mrb[33].mxu1 }
 0x171   : > { %v2229_v55 = vmul.f32 %v3775_v8, %v3775_v8  ;;  %1855 = vst.msk [vmem:[%s3595_s22 + $0x298] sm:$0xff] %vm1771_vm1, %v4100_v46  ;;  %v2031_v19 = vsel %vm1771_vm1, %v3775_v8, 0.0  ;;  %v2033_v10 = vsel %vm1771_vm1, %v3807_v14, 0.0  ;;  %v2230_v61 = vmul.f32 %v3807_v14, %v3807_v14  ;;  %v4140_v4 = vpop.f32.mrb[34].mxu1 }
 0x172   : > { %v2026_v47 = vadd.f32 %v2025_v31, %v2024_v16  ;;  %v2415_v3 = vadd.f32 %v2414_v53, %v2413_v35  ;;  %1853 = vst.msk [vmem:[%s3595_s22 + $0x288] sm:$0xff] %vm1771_vm1, %v4106_v32  ;;  %1858 = vst.msk [vmem:[%s3595_s22 + $0x2b0] sm:$0xff] %vm1771_vm1, %v4110_v54  ;;  %v2420_v8 = vsel %vm1771_vm1, %v2228_v9, 0.0  ;;  %v2231_v22 = vmul.f32 %v3856_v56, %v3856_v56  ;;  %v4152_v51 = vpop.f32.mrb[35].mxu1 }
 0x173   : > { %v4138_v14 = vadd.f32 %v4019_v34, %v3969_v44  ;;  %v2035_v0 = vsel %vm1771_vm1, %v3856_v56, 0.0  ;;  %v4146_v5 = vadd.f32 %v4019_v34, %v3980_v13  ;;  %v4150_v7 = vadd.f32 %v4019_v34, %v3987_v58 }
 0x174   : > { %v2028_v40 = vadd.f32 %v2027_v36, %v2026_v47  ;;  %v2417_v49 = vadd.f32 %v2416_v39, %v2415_v3  ;;  %v2422_v25 = vsel %vm1771_vm1, %v2229_v55, 0.0  ;;  %v2424_v1 = vsel %vm1771_vm1, %v2230_v61, 0.0 }
 0x175   : > { %1856 = vst.msk [vmem:[%s3595_s22 + $0x2a0] sm:$0xff] %vm1771_vm1, %v4138_v14  ;;  %1859 = vst.msk [vmem:[%s3595_s22 + $0x2b8] sm:$0xff] %vm1771_vm1, %v4146_v5  ;;  %v2426_v58 = vsel %vm1771_vm1, %v2231_v22, 0.0  ;;  %v2232_v15 = vmul.f32 %v3891_v42, %v3891_v42  ;;  %v4170_v18 = vadd.f32 %v4019_v34, %v4010_v20  ;;  %v2037_v31 = vsel %vm1771_vm1, %v3891_v42, 0.0 }
 0x176   : > { %v2030_v57 = vadd.f32 %v2029_v12, %v2028_v40  ;;  %v2419_v28 = vadd.f32 %v2418_v45, %v2417_v49  ;;  %1857 = vst.msk [vmem:[%s3595_s22 + $0x2a8] sm:$0xff] %vm1771_vm1, %v4150_v7  ;;  %v4176_v35 = vadd.f32 %v4019_v34, %v4014_v38  ;;  %v4180_v36 = vadd.f32 %v4019_v34, %v4022_v24  ;;  %v4187_v20 = vpop.f32.mrb[36].mxu1 }
 0x177   : > { %v2233_v53 = vmul.f32 %v3814_v33, %v3814_v33  ;;  %1862 = vst.msk [vmem:[%s3595_s22 + $0x2d0] sm:$0xff] %vm1771_vm1, %v4170_v18  ;;  %v2039_v42 = vsel %vm1771_vm1, %v3814_v33, 0.0  ;;  %v2041_v38 = vsel %vm1771_vm1, %v3884_v23, 0.0  ;;  %v2234_v24 = vmul.f32 %v3884_v23, %v3884_v23  ;;  %v1660_v45 = vpop.f32.mrb[37].mxu1 }
 0x178   : > { %v2032_v17 = vadd.f32 %v2031_v19, %v2030_v57  ;;  %v2421_v60 = vadd.f32 %v2420_v8, %v2419_v28  ;;  %1860 = vst.msk [vmem:[%s3595_s22 + $0x2c0] sm:$0xff] %vm1771_vm1, %v4176_v35  ;;  %1863 = vst.msk [vmem:[%s3595_s22 + $0x2d8] sm:$0xff] %vm1771_vm1, %v4180_v36  ;;  %v2428_v33 = vsel %vm1771_vm1, %v2232_v15, 0.0  ;;  %v2235_v40 = vmul.f32 %v3939_v2, %v3939_v2  ;;  %v2908_v23 = vpop.f32.mrb[38].mxu1 }
 0x179   : > { %v4206_v9 = vadd.f32 %v4019_v34, %v4030_v63  ;;  %v2043_v12 = vsel %vm1771_vm1, %v3939_v2, 0.0  ;;  %v4212_v55 = vadd.f32 %v4019_v34, %v4053_v11  ;;  %v4216_v57 = vadd.f32 %v4019_v34, %v4060_v21  ;;  %v4218_v19 = vpop.f32.mrb[39].mxu1 }
 0x17a   : > { %v2034_v44 = vadd.f32 %v2033_v10, %v2032_v17  ;;  %v2423_v56 = vadd.f32 %v2422_v25, %v2421_v60  ;;  %v2430_v28 = vsel %vm1771_vm1, %v2233_v53, 0.0  ;;  %v2432_v63 = vsel %vm1771_vm1, %v2234_v24, 0.0 }
 0x17b   : > { %1861 = vst.msk [vmem:[%s3595_s22 + $0x2c8] sm:$0xff] %vm1771_vm1, %v4206_v9  ;;  %1866 = vst.msk [vmem:[%s3595_s22 + $0x2f0] sm:$0xff] %vm1771_vm1, %v4212_v55  ;;  %v2434_v21 = vsel %vm1771_vm1, %v2235_v40, 0.0  ;;  %v2236_v61 = vmul.f32 %v3974_v50, %v3974_v50  ;;  %v4236_v17 = vadd.f32 %v4019_v34, %v4074_v37  ;;  %v2045_v22 = vsel %vm1771_vm1, %v3974_v50, 0.0 }
 0x17c   : > { %v2036_v13 = vadd.f32 %v2035_v0, %v2034_v44  ;;  %v2425_v16 = vadd.f32 %v2424_v1, %v2423_v56  ;;  %1864 = vst.msk [vmem:[%s3595_s22 + $0x2e0] sm:$0xff] %vm1771_vm1, %v4216_v57  ;;  %v4242_v60 = vadd.f32 %v4019_v34, %v4082_v27  ;;  %v4246_v0 = vadd.f32 %v4019_v34, %v4117_v6 }
 0x17d   : > { %v2237_v25 = vmul.f32 %v3894_v43, %v3894_v43  ;;  %1867 = vst.msk [vmem:[%s3595_s22 + $0x2f8] sm:$0xff] %vm1771_vm1, %v4236_v17  ;;  %v2047_v1 = vsel %vm1771_vm1, %v3894_v43, 0.0  ;;  %v2049_v27 = vsel %vm1771_vm1, %v3967_v41, 0.0  ;;  %v2238_v56 = vmul.f32 %v3967_v41, %v3967_v41 }
 0x17e   : > { %v2038_v47 = vadd.f32 %v2037_v31, %v2036_v13  ;;  %v2427_v3 = vadd.f32 %v2426_v58, %v2425_v16  ;;  %v2911_v37 = vpop.f32.mrb[40].mxu1  ;;  %1865 = vst.msk [vmem:[%s3595_s22 + $0x2e8] sm:$0xff] %vm1771_vm1, %v4242_v60  ;;  %1870 = vst.msk [vmem:[%s3595_s22 + $0x310] sm:$0xff] %vm1771_vm1, %v4246_v0  ;;  %v2436_v43 = vsel %vm1771_vm1, %v2236_v61, 0.0  ;;  %v2239_v58 = vmul.f32 %v4028_v26, %v4028_v26 }
 0x17f   : > { %v1676_v6 = vpop.f32.mrb[41].mxu1  ;;  %v4270_v15 = vadd.f32 %v4019_v34, %v4131_v59  ;;  %v2051_v31 = vsel %vm1771_vm1, %v4028_v26, 0.0  ;;  %v4276_v53 = vadd.f32 %v4019_v34, %v4140_v4  ;;  %v2440_v59 = vsel %vm1771_vm1, %v2238_v56, 0.0 }
 0x180   : > { %v2040_v39 = vadd.f32 %v2039_v42, %v2038_v47  ;;  %v2429_v49 = vadd.f32 %v2428_v33, %v2427_v3  ;;  %v2912_v41 = vpop.f32.mrb[42].mxu1  ;;  %v4280_v47 = vadd.f32 %v4019_v34, %v4152_v51  ;;  %v2438_v3 = vsel %vm1771_vm1, %v2237_v25, 0.0 }
 0x181   : > { %v1679_v42 = vpop.f32.mrb[43].mxu1  ;;  %1868 = vst.msk [vmem:[%s3595_s22 + $0x300] sm:$0xff] %vm1771_vm1, %v4270_v15  ;;  %1871 = vst.msk [vmem:[%s3595_s22 + $0x318] sm:$0xff] %vm1771_vm1, %v4276_v53  ;;  %v2442_v4 = vsel %vm1771_vm1, %v2239_v58, 0.0  ;;  %v2240_v51 = vmul.f32 %v4064_v48, %v4064_v48  ;;  %v2053_v40 = vsel %vm1771_vm1, %v4064_v48, 0.0  ;;  %v2057_v48 = vsel %vm1771_vm1, %v4058_v62, 0.0 }
 0x182   : > { %v2042_v10 = vadd.f32 %v2041_v38, %v2040_v39  ;;  %v2431_v2 = vadd.f32 %v2430_v28, %v2429_v49  ;;  %1869 = vst.msk [vmem:[%s3595_s22 + $0x308] sm:$0xff] %vm1771_vm1, %v4280_v47  ;;  %v4298_v39 = vadd.f32 %v4019_v34, %v4187_v20  ;;  %v4303_v49 = vadd.f32 %v4019_v34, %v1660_v45 }
 0x183   : > { %v2241_v28 = vmul.f32 %v3978_v52, %v3978_v52  ;;  %v2055_v20 = vsel %vm1771_vm1, %v3978_v52, 0.0  ;;  %v2242_v45 = vmul.f32 %v4058_v62, %v4058_v62  ;;  %v2444_v52 = vsel %vm1771_vm1, %v2240_v51, 0.0 }
 0x184   : > { %v2044_v11 = vadd.f32 %v2043_v12, %v2042_v10  ;;  %v2433_v8 = vadd.f32 %v2432_v63, %v2431_v2  ;;  %v4306_v12 = vadd.f32 %v4019_v34, %v2908_v23  ;;  %1874 = vst.msk [vmem:[%s3595_s22 + $0x330] sm:$0xff] %vm1771_vm1, %v4298_v39  ;;  %1872 = vst.msk [vmem:[%s3595_s22 + $0x320] sm:$0xff] %vm1771_vm1, %v4303_v49  ;;  %v2061_v58 = vsel %vm1771_vm1, %v4106_v32, 0.0 }
 0x185   : > { %v4330_v61 = vadd.f32 %v4019_v34, %v4218_v19  ;;  %v4335_v25 = vadd.f32 %v4019_v34, %v2911_v37  ;;  %v2448_v19 = vsel %vm1771_vm1, %v2242_v45, 0.0  ;;  %v2247_v51 = vmul.f32 %v4138_v14, %v4138_v14 }
 0x186   : > { %v2046_v44 = vadd.f32 %v2045_v22, %v2044_v11  ;;  %v2435_v50 = vadd.f32 %v2434_v21, %v2433_v8  ;;  %v2915_v63 = vpop.f32.mrb[44].mxu1  ;;  %1875 = vst.msk [vmem:[%s3595_s22 + $0x338] sm:$0xff] %vm1771_vm1, %v4306_v12  ;;  %v2243_v21 = vmul.f32 %v4072_v30, %v4072_v30  ;;  %v2059_v22 = vsel %vm1771_vm1, %v4072_v30, 0.0 }
 0x187   : > { %v1692_v23 = vpop.f32.mrb[45].mxu1  ;;  %1873 = vst.msk [vmem:[%s3595_s22 + $0x328] sm:$0xff] %vm1771_vm1, %v4330_v61  ;;  %1878 = vst.msk [vmem:[%s3595_s22 + $0x350] sm:$0xff] %vm1771_vm1, %v4335_v25 }
 0x188   : > { %v2048_v13 = vadd.f32 %v2047_v1, %v2046_v44  ;;  %v2437_v16 = vadd.f32 %v2436_v43, %v2435_v50  ;;  %v2916_v62 = vpop.f32.mrb[46].mxu1  ;;  %v4338_v44 = vadd.f32 %v4019_v34, %v1676_v6  ;;  %v2446_v50 = vsel %vm1771_vm1, %v2241_v28, 0.0 }
 0x189   : > { %v1695_v1 = vpop.f32.mrb[47].mxu1  ;;  %v2450_v37 = vsel %vm1771_vm1, %v2243_v21, 0.0  ;;  %v2244_v6 = vmul.f32 %v4106_v32, %v4106_v32  ;;  %v2065_v32 = vsel %vm1771_vm1, %v4100_v46, 0.0  ;;  %v2067_v28 = vsel %vm1771_vm1, %v4138_v14, 0.0 }
 0x18a   : > { %v2050_v38 = vadd.f32 %v2049_v27, %v2048_v13  ;;  %v2439_v24 = vadd.f32 %v2438_v3, %v2437_v16  ;;  %1876 = vst.msk [vmem:[%s3595_s22 + $0x340] sm:$0xff] %vm1771_vm1, %v4338_v44  ;;  %v4355_v13 = vadd.f32 %v4019_v34, %v2912_v41  ;;  %v4360_v16 = vadd.f32 %v4019_v34, %v1679_v42 }
 0x18b   : > { %v2245_v3 = vmul.f32 %v4068_v29, %v4068_v29  ;;  %v2063_v41 = vsel %vm1771_vm1, %v4068_v29, 0.0  ;;  %v2246_v42 = vmul.f32 %v4100_v46, %v4100_v46  ;;  %v2452_v29 = vsel %vm1771_vm1, %v2244_v6, 0.0 }
 0x18c   : > { %v2052_v26 = vadd.f32 %v2051_v31, %v2050_v38  ;;  %v2441_v33 = vadd.f32 %v2440_v59, %v2439_v24  ;;  %v4363_v31 = vadd.f32 %v4019_v34, %v2915_v63  ;;  %1879 = vst.msk [vmem:[%s3595_s22 + $0x358] sm:$0xff] %vm1771_vm1, %v4355_v13  ;;  %1877 = vst.msk [vmem:[%s3595_s22 + $0x348] sm:$0xff] %vm1771_vm1, %v4360_v16 }
 0x18d   : > { %v4394_v63 = vadd.f32 %v4019_v34, %v1695_v1  ;;  %v2456_v45 = vsel %vm1771_vm1, %v2246_v42, 0.0 }
 0x18e   : > { %v2054_v10 = vadd.f32 %v2053_v40, %v2052_v26  ;;  %v2443_v2 = vadd.f32 %v2442_v4, %v2441_v33  ;;  %v2919_v59 = vpop.f32.mrb[48].mxu1  ;;  %1882 = vst.msk [vmem:[%s3595_s22 + $0x370] sm:$0xff] %vm1771_vm1, %v4363_v31  ;;  %v4386_v33 = vadd.f32 %v4019_v34, %v1692_v23 }
 0x18f   : > { %v1708_v26 = vpop.f32.mrb[49].mxu1  ;;  %1881 = vst.msk [vmem:[%s3595_s22 + $0x368] sm:$0xff] %vm1771_vm1, %v4394_v63  ;;  %v4411_v21 = vadd.f32 %v4019_v34, %v2919_v59  ;;  %v2075_v59 = vsel %vm1771_vm1, %v4176_v35, 0.0 }
 0x190   : > { %v2056_v11 = vadd.f32 %v2055_v20, %v2054_v10  ;;  %v2445_v8 = vadd.f32 %v2444_v52, %v2443_v2  ;;  %v2920_v46 = vpop.f32.mrb[50].mxu1  ;;  %v4391_v10 = vadd.f32 %v4019_v34, %v2916_v62  ;;  %v2454_v2 = vsel %vm1771_vm1, %v2245_v3, 0.0  ;;  %1880 = vst.msk [vmem:[%s3595_s22 + $0x360] sm:$0xff] %vm1771_vm1, %v4386_v33 }
 0x191   : > { %v1711_v20 = vpop.f32.mrb[51].mxu1  ;;  %v2248_v52 = vmul.f32 %v4150_v7, %v4150_v7  ;;  %v4419_v1 = vadd.f32 %v4019_v34, %v2920_v46  ;;  %1886 = vst.msk [vmem:[%s3595_s22 + $0x390] sm:$0xff] %vm1771_vm1, %v4411_v21  ;;  %v2252_v46 = vmul.f32 %v4206_v9, %v4206_v9 }
 0x192   : > { %v2058_v27 = vadd.f32 %v2057_v48, %v2056_v11  ;;  %v2447_v56 = vadd.f32 %v2446_v50, %v2445_v8  ;;  %1883 = vst.msk [vmem:[%s3595_s22 + $0x378] sm:$0xff] %vm1771_vm1, %v4391_v10  ;;  %v2458_v11 = vsel %vm1771_vm1, %v2247_v51, 0.0  ;;  %v2069_v8 = vsel %vm1771_vm1, %v4150_v7, 0.0 }
 0x193   : > { %v2249_v50 = vmul.f32 %v4110_v54, %v4110_v54  ;;  %v2073_v7 = vsel %vm1771_vm1, %v4146_v5, 0.0  ;;  %1887 = vst.msk [vmem:[%s3595_s22 + $0x398] sm:$0xff] %vm1771_vm1, %v4419_v1  ;;  %v4442_v3 = vadd.f32 %v4019_v34, %v1711_v20  ;;  %v2077_v20 = vsel %vm1771_vm1, %v4206_v9, 0.0 }
 0x194   : > { %v2060_v30 = vadd.f32 %v2059_v22, %v2058_v27  ;;  %v2449_v43 = vadd.f32 %v2448_v19, %v2447_v56  ;;  %v4416_v22 = vadd.f32 %v4019_v34, %v1708_v26  ;;  %v2071_v56 = vsel %vm1771_vm1, %v4110_v54, 0.0 }
 0x195   : > { %v2460_v54 = vsel %vm1771_vm1, %v2248_v52, 0.0  ;;  %v2462_v42 = vsel %vm1771_vm1, %v2249_v50, 0.0  ;;  %1885 = vst.msk [vmem:[%s3595_s22 + $0x388] sm:$0xff] %vm1771_vm1, %v4442_v3  ;;  %v2254_v52 = vmul.f32 %v4180_v36, %v4180_v36  ;;  %v2468_v50 = vsel %vm1771_vm1, %v2252_v46, 0.0 }
 0x196   : > { %v2062_v38 = vadd.f32 %v2061_v58, %v2060_v30  ;;  %v2451_v24 = vadd.f32 %v2450_v37, %v2449_v43  ;;  %v2923_v19 = vpop.f32.mrb[52].mxu1  ;;  %v2250_v37 = vmul.f32 %v4146_v5, %v4146_v5  ;;  %1884 = vst.msk [vmem:[%s3595_s22 + $0x380] sm:$0xff] %vm1771_vm1, %v4416_v22  ;;  %v2251_v58 = vmul.f32 %v4176_v35, %v4176_v35 }
 0x197   : > { %v1724_v6 = vpop.f32.mrb[53].mxu1  ;;  %v2258_v46 = vmul.f32 %v4236_v17, %v4236_v17 }
 0x198   : > { %v2064_v4 = vadd.f32 %v2063_v41, %v2062_v38  ;;  %v2453_v40 = vadd.f32 %v2452_v29, %v2451_v24  ;;  %v2924_v5 = vpop.f32.mrb[54].mxu1  ;;  %v4447_v41 = vadd.f32 %v4019_v34, %v2923_v19  ;;  %v4450_v24 = vadd.f32 %v4019_v34, %v1724_v6 }
 0x199   : > { %v2466_v51 = vsel %vm1771_vm1, %v2251_v58, 0.0 }
 0x19a   : > { %v2066_v48 = vadd.f32 %v2065_v32, %v2064_v4  ;;  %v2455_v23 = vadd.f32 %v2454_v2, %v2453_v40  ;;  %v1727_v32 = vpop.f32.mrb[55].mxu1  ;;  %v2464_v4 = vsel %vm1771_vm1, %v2250_v37, 0.0  ;;  %1890 = vst.msk [vmem:[%s3595_s22 + $0x3b0] sm:$0xff] %vm1771_vm1, %v4447_v41  ;;  %1888 = vst.msk [vmem:[%s3595_s22 + $0x3a0] sm:$0xff] %vm1771_vm1, %v4450_v24  ;;  %v4467_v40 = vadd.f32 %v4019_v34, %v2924_v5 }
 0x19b   : > { %v4472_v2 = vadd.f32 %v4019_v34, %v1727_v32 }
 0x19c   : > { %v2068_v14 = vadd.f32 %v2067_v28, %v2066_v48  ;;  %v2457_v62 = vadd.f32 %v2456_v45, %v2455_v23  ;;  %v2253_v48 = vmul.f32 %v4170_v18, %v4170_v18  ;;  %1891 = vst.msk [vmem:[%s3595_s22 + $0x3b8] sm:$0xff] %vm1771_vm1, %v4467_v40 }
 0x19d   : > { %1889 = vst.msk [vmem:[%s3595_s22 + $0x3a8] sm:$0xff] %vm1771_vm1, %v4472_v2 }
 0x19e   : > { %v2070_v27 = vadd.f32 %v2069_v8, %v2068_v14  ;;  %v2459_v30 = vadd.f32 %v2458_v11, %v2457_v62  ;;  %v2927_v23 = vpop.f32.mrb[56].mxu1  ;;  %v2079_v14 = vsel %vm1771_vm1, %v4170_v18, 0.0  ;;  %v2470_v6 = vsel %vm1771_vm1, %v2253_v48, 0.0 }
 0x19f   : > { %v4487_v9 = vadd.f32 %v4019_v34, %v2927_v23  ;;  %v1740_v62 = vpop.f32.mrb[57].mxu1 }
 0x1a0   : > { %v2072_v43 = vadd.f32 %v2071_v56, %v2070_v27  ;;  %v2461_v38 = vadd.f32 %v2460_v54, %v2459_v30  ;;  %v2255_v27 = vmul.f32 %v4216_v57, %v4216_v57  ;;  %v4493_v18 = vadd.f32 %v4019_v34, %v1740_v62  ;;  %v2928_v19 = vpop.f32.mrb[58].mxu1 }
 0x1a1   : > { %v2081_v56 = vsel %vm1771_vm1, %v4180_v36, 0.0  ;;  %1894 = vst.msk [vmem:[%s3595_s22 + $0x3d0] sm:$0xff] %vm1771_vm1, %v4487_v9  ;;  %v1743_v37 = vpop.f32.mrb[59].mxu1  ;;  %v4507_v54 = vadd.f32 %v4019_v34, %v2928_v19 }
 0x1a2   : > { %v2074_v26 = vadd.f32 %v2073_v7, %v2072_v43  ;;  %v2463_v29 = vadd.f32 %v2462_v42, %v2461_v38  ;;  %v2083_v7 = vsel %vm1771_vm1, %v4216_v57, 0.0  ;;  %1892 = vst.msk [vmem:[%s3595_s22 + $0x3c0] sm:$0xff] %vm1771_vm1, %v4493_v18  ;;  %v4510_v36 = vadd.f32 %v4019_v34, %v1743_v37 }
 0x1a3   : > { %v2472_v57 = vsel %vm1771_vm1, %v2254_v52, 0.0  ;;  %v2474_v38 = vsel %vm1771_vm1, %v2255_v27, 0.0  ;;  %1895 = vst.msk [vmem:[%s3595_s22 + $0x3d8] sm:$0xff] %vm1771_vm1, %v4507_v54  ;;  %v2085_v42 = vsel %vm1771_vm1, %v4242_v60, 0.0  ;;  %v2091_v52 = vsel %vm1771_vm1, %v4270_v15, 0.0 }
 0x1a4   : > { %v2076_v35 = vadd.f32 %v2075_v59, %v2074_v26  ;;  %v2465_v28 = vadd.f32 %v2464_v4, %v2463_v29  ;;  %v2256_v59 = vmul.f32 %v4242_v60, %v4242_v60  ;;  %1893 = vst.msk [vmem:[%s3595_s22 + $0x3c8] sm:$0xff] %vm1771_vm1, %v4510_v36  ;;  %v2257_v26 = vmul.f32 %v4212_v55, %v4212_v55 }
 0x1a6   : > { %v2078_v45 = vadd.f32 %v2077_v20, %v2076_v35  ;;  %v2467_v11 = vadd.f32 %v2466_v51, %v2465_v28  ;;  %v2931_v29 = vpop.f32.mrb[60].mxu1  ;;  %v2087_v35 = vsel %vm1771_vm1, %v4212_v55, 0.0  ;;  %v2476_v48 = vsel %vm1771_vm1, %v2256_v59, 0.0 }
 0x1a7   : > { %v4531_v28 = vadd.f32 %v4019_v34, %v2931_v29  ;;  %v1756_v60 = vpop.f32.mrb[61].mxu1 }
 0x1a8   : > { %v2080_v8 = vadd.f32 %v2079_v14, %v2078_v45  ;;  %v2469_v30 = vadd.f32 %v2468_v50, %v2467_v11  ;;  %v2259_v45 = vmul.f32 %v4270_v15, %v4270_v15  ;;  %v4537_v23 = vadd.f32 %v4019_v34, %v1756_v60  ;;  %v2932_v55 = vpop.f32.mrb[62].mxu1 }
 0x1a9   : > { %v2089_v14 = vsel %vm1771_vm1, %v4236_v17, 0.0  ;;  %1898 = vst.msk [vmem:[%s3595_s22 + $0x3f0] sm:$0xff] %vm1771_vm1, %v4531_v28  ;;  %v4547_v62 = vadd.f32 %v4019_v34, %v2932_v55  ;;  %v2478_v50 = vsel %vm1771_vm1, %v2257_v26, 0.0  ;;  %v2480_v15 = vsel %vm1771_vm1, %v2258_v46, 0.0 }
 0x1aa   : > { %v2082_v43 = vadd.f32 %v2081_v56, %v2080_v8  ;;  %v2471_v58 = vadd.f32 %v2470_v6, %v2469_v30  ;;  %v1759_v8 = vpop.f32.mrb[63].mxu1  ;;  %1896 = vst.msk [vmem:[%s3595_s22 + $0x3e0] sm:$0xff] %vm1771_vm1, %v4537_v23  ;;  %v2482_v30 = vsel %vm1771_vm1, %v2259_v45, 0.0  ;;  %v2261_v6 = vmul.f32 %v4246_v0, %v4246_v0 }
 0x1ab   : > { %v4554_v17 = vadd.f32 %v4019_v34, %v1759_v8  ;;  %1899 = vst.msk [vmem:[%s3595_s22 + $0x3f8] sm:$0xff] %vm1771_vm1, %v4547_v62  ;;  %v2093_v34 = vsel %vm1771_vm1, %v4280_v47, 0.0  ;;  %v2099_v26 = vsel %vm1771_vm1, %v4303_v49, 0.0  ;;  %v2264_v60 = vmul.f32 %v4330_v61, %v4330_v61 }
 0x1ac   : > { %v2084_v5 = vadd.f32 %v2083_v7, %v2082_v43  ;;  %v2473_v32 = vadd.f32 %v2472_v57, %v2471_v58  ;;  %v2260_v7 = vmul.f32 %v4280_v47, %v4280_v47  ;;  %v2095_v58 = vsel %vm1771_vm1, %v4246_v0, 0.0 }
 0x1ad   : > { %1897 = vst.msk [vmem:[%s3595_s22 + $0x3e8] sm:$0xff] %vm1771_vm1, %v4554_v17  ;;  %v2097_v47 = vsel %vm1771_vm1, %v4276_v53, 0.0  ;;  %v2103_v45 = vsel %vm1771_vm1, %v4298_v39, 0.0  ;;  %v2267_v8 = vmul.f32 %v4338_v44, %v4338_v44 }
 0x1ae   : > { %v2086_v4 = vadd.f32 %v2085_v42, %v2084_v5  ;;  %v2475_v51 = vadd.f32 %v2474_v38, %v2473_v32  ;;  %v2262_v5 = vmul.f32 %v4276_v53, %v4276_v53  ;;  %v2484_v59 = vsel %vm1771_vm1, %v2260_v7, 0.0 }
 0x1af   : > { %v2263_v32 = vmul.f32 %v4303_v49, %v4303_v49  ;;  %v2101_v53 = vsel %vm1771_vm1, %v4330_v61, 0.0  ;;  %v2105_v61 = vsel %vm1771_vm1, %v4306_v12, 0.0  ;;  %v2498_v7 = vsel %vm1771_vm1, %v2267_v8, 0.0 }
 0x1b0   : > { %v2088_v20 = vadd.f32 %v2087_v35, %v2086_v4  ;;  %v2477_v11 = vadd.f32 %v2476_v48, %v2475_v51  ;;  %v2486_v4 = vsel %vm1771_vm1, %v2261_v6, 0.0  ;;  %v2488_v35 = vsel %vm1771_vm1, %v2262_v5, 0.0 }
 0x1b1   : > { %v2490_v46 = vsel %vm1771_vm1, %v2263_v32, 0.0  ;;  %v2265_v48 = vmul.f32 %v4298_v39, %v4298_v39  ;;  %v2269_v6 = vmul.f32 %v4335_v25, %v4335_v25 }
 0x1b2   : > { %v2090_v27 = vadd.f32 %v2089_v14, %v2088_v20  ;;  %v2479_v19 = vadd.f32 %v2478_v50, %v2477_v11  ;;  %v2266_v14 = vmul.f32 %v4306_v12, %v4306_v12  ;;  %v2109_v12 = vsel %vm1771_vm1, %v4360_v16, 0.0 }
 0x1b4   : > { %v2092_v56 = vadd.f32 %v2091_v52, %v2090_v27  ;;  %v2481_v37 = vadd.f32 %v2480_v15, %v2479_v19  ;;  %v2492_v52 = vsel %vm1771_vm1, %v2264_v60, 0.0  ;;  %v2107_v27 = vsel %vm1771_vm1, %v4338_v44, 0.0 }
 0x1b5   : > { %v2494_v19 = vsel %vm1771_vm1, %v2265_v48, 0.0  ;;  %v2119_v60 = vsel %vm1771_vm1, %v4363_v31, 0.0 }
 0x1b6   : > { %v2094_v43 = vadd.f32 %v2093_v34, %v2092_v56  ;;  %v2483_v57 = vadd.f32 %v2482_v30, %v2481_v37  ;;  %v2496_v56 = vsel %vm1771_vm1, %v2266_v14, 0.0  ;;  %v2268_v37 = vmul.f32 %v4360_v16, %v4360_v16 }
 0x1b7   : > { %v2113_v16 = vsel %vm1771_vm1, %v4355_v13, 0.0  ;;  %v2123_v14 = vsel %vm1771_vm1, %v4416_v22, 0.0 }
 0x1b8   : > { %v2096_v38 = vadd.f32 %v2095_v58, %v2094_v43  ;;  %v2485_v42 = vadd.f32 %v2484_v59, %v2483_v57  ;;  %v2111_v43 = vsel %vm1771_vm1, %v4335_v25, 0.0  ;;  %v2270_v57 = vmul.f32 %v4355_v13, %v4355_v13 }
 0x1b9   : > { %v2271_v59 = vmul.f32 %v4386_v33, %v4386_v33  ;;  %v2117_v13 = vsel %vm1771_vm1, %v4394_v63, 0.0 }
 0x1ba   : > { %v2098_v0 = vadd.f32 %v2097_v47, %v2096_v38  ;;  %v2487_v29 = vadd.f32 %v2486_v4, %v2485_v42  ;;  %v2500_v38 = vsel %vm1771_vm1, %v2268_v37, 0.0  ;;  %v2115_v47 = vsel %vm1771_vm1, %v4386_v33, 0.0 }
 0x1bb   : > { %v2502_v42 = vsel %vm1771_vm1, %v2269_v6, 0.0  ;;  %v2504_v4 = vsel %vm1771_vm1, %v2270_v57, 0.0  ;;  %v2131_v6 = vsel %vm1771_vm1, %v4450_v24, 0.0 }
 0x1bc   : > { %v2100_v51 = vadd.f32 %v2099_v26, %v2098_v0  ;;  %v2489_v20 = vadd.f32 %v2488_v35, %v2487_v29  ;;  %v2506_v29 = vsel %vm1771_vm1, %v2271_v59, 0.0  ;;  %v2272_v35 = vmul.f32 %v4394_v63, %v4394_v63 }
 0x1bd   : > { %v2121_v63 = vsel %vm1771_vm1, %v4391_v10, 0.0 }
 0x1be   : > { %v2102_v49 = vadd.f32 %v2101_v53, %v2100_v51  ;;  %v2491_v55 = vadd.f32 %v2490_v46, %v2489_v20  ;;  %v2273_v46 = vmul.f32 %v4363_v31, %v4363_v31  ;;  %v2274_v53 = vmul.f32 %v4391_v10, %v4391_v10 }
 0x1bf   : > { %v2125_v10 = vsel %vm1771_vm1, %v4442_v3, 0.0 }
 0x1c0   : > { %v2104_v11 = vadd.f32 %v2103_v45, %v2102_v49  ;;  %v2493_v50 = vadd.f32 %v2492_v52, %v2491_v55  ;;  %v2508_v49 = vsel %vm1771_vm1, %v2272_v35, 0.0  ;;  %v2275_v45 = vmul.f32 %v4416_v22, %v4416_v22 }
 0x1c1   : > { %v2512_v8 = vsel %vm1771_vm1, %v2274_v53, 0.0  ;;  %v2285_v53 = vmul.f32 %v4487_v9, %v4487_v9 }
 0x1c2   : > { %v2106_v39 = vadd.f32 %v2105_v61, %v2104_v11  ;;  %v2495_v15 = vadd.f32 %v2494_v19, %v2493_v50  ;;  %v2510_v11 = vsel %vm1771_vm1, %v2273_v46, 0.0  ;;  %v2514_v50 = vsel %vm1771_vm1, %v2275_v45, 0.0 }
 0x1c3   : > { %v2286_v45 = vmul.f32 %v4507_v54, %v4507_v54 }
 0x1c4   : > { %v2108_v30 = vadd.f32 %v2107_v27, %v2106_v39  ;;  %v2497_v34 = vadd.f32 %v2496_v56, %v2495_v15  ;;  %v2276_v27 = vmul.f32 %v4442_v3, %v4442_v3  ;;  %v2277_v39 = vmul.f32 %v4411_v21, %v4411_v21 }
 0x1c5   : > { %v2127_v15 = vsel %vm1771_vm1, %v4411_v21, 0.0  ;;  %v2129_v3 = vsel %vm1771_vm1, %v4419_v1, 0.0 }
 0x1c6   : > { %v2110_v44 = vadd.f32 %v2109_v12, %v2108_v30  ;;  %v2499_v58 = vadd.f32 %v2498_v7, %v2497_v34  ;;  %v2278_v30 = vmul.f32 %v4419_v1, %v4419_v1  ;;  %v2516_v37 = vsel %vm1771_vm1, %v2276_v27, 0.0 }
 0x1c7   : > { %v2279_v34 = vmul.f32 %v4450_v24, %v4450_v24  ;;  %v2133_v1 = vsel %vm1771_vm1, %v4472_v2, 0.0 }
 0x1c8   : > { %v2112_v5 = vadd.f32 %v2111_v43, %v2110_v44  ;;  %v2501_v32 = vadd.f32 %v2500_v38, %v2499_v58  ;;  %v2518_v44 = vsel %vm1771_vm1, %v2277_v39, 0.0  ;;  %v2520_v58 = vsel %vm1771_vm1, %v2278_v30, 0.0 }
 0x1c9   : > { %v2280_v38 = vmul.f32 %v4472_v2, %v4472_v2  ;;  %v2137_v2 = vsel %vm1771_vm1, %v4467_v40, 0.0 }
 0x1ca   : > { %v2114_v25 = vadd.f32 %v2113_v16, %v2112_v5  ;;  %v2503_v26 = vadd.f32 %v2502_v42, %v2501_v32  ;;  %v2522_v5 = vsel %vm1771_vm1, %v2279_v34, 0.0  ;;  %v2281_v16 = vmul.f32 %v4447_v41, %v4447_v41 }
 0x1cb   : > { %v2135_v32 = vsel %vm1771_vm1, %v4447_v41, 0.0  ;;  %v2282_v42 = vmul.f32 %v4467_v40, %v4467_v40  ;;  %v2141_v40 = vsel %vm1771_vm1, %v4510_v36, 0.0 }
 0x1cc   : > { %v2116_v0 = vadd.f32 %v2115_v47, %v2114_v25  ;;  %v2505_v51 = vadd.f32 %v2504_v4, %v2503_v26  ;;  %v2524_v26 = vsel %vm1771_vm1, %v2280_v38, 0.0  ;;  %v2283_v4 = vmul.f32 %v4493_v18, %v4493_v18 }
 0x1cd   : > { %v2526_v35 = vsel %vm1771_vm1, %v2281_v16, 0.0 }
 0x1ce   : > { %v2118_v33 = vadd.f32 %v2117_v13, %v2116_v0  ;;  %v2507_v20 = vadd.f32 %v2506_v29, %v2505_v51  ;;  %v2139_v29 = vsel %vm1771_vm1, %v4493_v18, 0.0  ;;  %v2528_v13 = vsel %vm1771_vm1, %v2282_v42, 0.0 }
 0x1d0   : > { %v2120_v48 = vadd.f32 %v2119_v60, %v2118_v33  ;;  %v2509_v55 = vadd.f32 %v2508_v49, %v2507_v20  ;;  %v2530_v33 = vsel %vm1771_vm1, %v2283_v4, 0.0  ;;  %v2284_v60 = vmul.f32 %v4510_v36, %v4510_v36 }
 0x1d1   : > { %v2145_v36 = vsel %vm1771_vm1, %v4507_v54, 0.0  ;;  %v2149_v54 = vsel %vm1771_vm1, %v4554_v17, 0.0 }
 0x1d2   : > { %v2122_v31 = vadd.f32 %v2121_v63, %v2120_v48  ;;  %v2511_v52 = vadd.f32 %v2510_v11, %v2509_v55  ;;  %v2143_v48 = vsel %vm1771_vm1, %v4487_v9, 0.0  ;;  %v2532_v55 = vsel %vm1771_vm1, %v2284_v60, 0.0 }
 0x1d4   : > { %v2124_v61 = vadd.f32 %v2123_v14, %v2122_v31  ;;  %v2513_v19 = vadd.f32 %v2512_v8, %v2511_v52  ;;  %v2287_v14 = vmul.f32 %v4537_v23, %v4537_v23  ;;  %v2147_v31 = vsel %vm1771_vm1, %v4537_v23, 0.0 }
 0x1d5   : > { %v2534_v52 = vsel %vm1771_vm1, %v2285_v53, 0.0  ;;  %v2289_v23 = vmul.f32 %v4531_v28, %v4531_v28 }
 0x1d6   : > { %v2126_v22 = vadd.f32 %v2125_v10, %v2124_v61  ;;  %v2515_v56 = vadd.f32 %v2514_v50, %v2513_v19  ;;  %v2536_v61 = vsel %vm1771_vm1, %v2286_v45, 0.0  ;;  %v2538_v27 = vsel %vm1771_vm1, %v2287_v14, 0.0 }
 0x1d7   : > { %v2288_v19 = vmul.f32 %v4554_v17, %v4554_v17  ;;  %v2542_v17 = vsel %vm1771_vm1, %v2289_v23, 0.0 }
 0x1d8   : > { %v2128_v7 = vadd.f32 %v2127_v15, %v2126_v22  ;;  %v2517_v12 = vadd.f32 %v2516_v37, %v2515_v56  ;;  %v2151_v22 = vsel %vm1771_vm1, %v4531_v28, 0.0  ;;  %v2290_v56 = vmul.f32 %v4547_v62, %v4547_v62 }
 0x1d9   : > { %v2153_v37 = vsel %vm1771_vm1, %v4547_v62, 0.0 }
 0x1da   : > { %v2130_v21 = vadd.f32 %v2129_v3, %v2128_v7  ;;  %v2519_v43 = vadd.f32 %v2518_v44, %v2517_v12  ;;  %v2540_v7 = vsel %vm1771_vm1, %v2288_v19, 0.0 }
 0x1dc   : > { %v2132_v57 = vadd.f32 %v2131_v6, %v2130_v21  ;;  %v2521_v59 = vadd.f32 %v2520_v58, %v2519_v43  ;;  %v2544_v6 = vsel %vm1771_vm1, %v2290_v56, 0.0 }
 0x1de   : > { %v2134_v24 = vadd.f32 %v2133_v1, %v2132_v57  ;;  %v2523_v47 = vadd.f32 %v2522_v5, %v2521_v59 }
 0x1e0   : > { %v2136_v25 = vadd.f32 %v2135_v32, %v2134_v24  ;;  %v2525_v0 = vadd.f32 %v2524_v26, %v2523_v47 }
 0x1e2   : > { %v2138_v41 = vadd.f32 %v2137_v2, %v2136_v25  ;;  %v2527_v51 = vadd.f32 %v2526_v35, %v2525_v0 }
 0x1e4   : > { %v2140_v46 = vadd.f32 %v2139_v29, %v2138_v41  ;;  %v2529_v20 = vadd.f32 %v2528_v13, %v2527_v51 }
 0x1e6   : > { %v2142_v18 = vadd.f32 %v2141_v40, %v2140_v46  ;;  %v2531_v49 = vadd.f32 %v2530_v33, %v2529_v20 }
 0x1e8   : > { %v2144_v63 = vadd.f32 %v2143_v48, %v2142_v18  ;;  %v2533_v11 = vadd.f32 %v2532_v55, %v2531_v49 }
 0x1ea   : > { %v2146_v9 = vadd.f32 %v2145_v36, %v2144_v63  ;;  %v2535_v8 = vadd.f32 %v2534_v52, %v2533_v11 }
 0x1ec   : > { %v2148_v50 = vadd.f32 %v2147_v31, %v2146_v9  ;;  %v2537_v10 = vadd.f32 %v2536_v61, %v2535_v8 }
 0x1ee   : > { %v2150_v39 = vadd.f32 %v2149_v54, %v2148_v50  ;;  %v2539_v15 = vadd.f32 %v2538_v27, %v2537_v10 }
 0x1f0   : > { %v2152_v30 = vadd.f32 %v2151_v22, %v2150_v39  ;;  %v2541_v34 = vadd.f32 %v2540_v7, %v2539_v15 }
 0x1f2   : > { %v2154_v3 = vadd.f32 %v2153_v37, %v2152_v30  ;;  %v2543_v12 = vadd.f32 %v2542_v17, %v2541_v34 }
 0x1f4   : > { %v2155_v44 = vrot.slane %v2154_v3, 4  ;;  %v2545_v28 = vadd.f32 %v2544_v6, %v2543_v12 }
 0x1f6   : > { %v2156_v21 = vadd.f32 %v2155_v44, %v2154_v3  ;;  %v2546_v43 = vrot.slane %v2545_v28, 4 }
 0x1f8   : > { %v2157_v58 = vrot.slane %v2156_v21, 2  ;;  %v2547_v57 = vadd.f32 %v2546_v43, %v2545_v28 }
 0x1fa   : > { %v2158_v5 = vadd.f32 %v2157_v58, %v2156_v21  ;;  %v2548_v38 = vrot.slane %v2547_v57, 2 }
 0x1fc   : > { %v2159_v59 = vrot.slane %v2158_v5, 1  ;;  %v2549_v62 = vadd.f32 %v2548_v38, %v2547_v57 }
 0x1fe   : > { %v2160_v1 = vadd.f32 %v2159_v59, %v2158_v5  ;;  %v2550_v16 = vrot.slane %v2549_v62, 1 }
 0x200   : > { %2162 = vst.msk [vmem:[%s295_s29] sm:$0x1] %vm2161_vm2, %v2160_v1  ;;  %v2551_v24 = vadd.f32 %v2550_v16, %v2549_v62 }
 0x202   : > { %2552 = vst.msk [vmem:[%s298_s9] sm:$0x1] %vm2161_vm2, %v2551_v24 }
 0x203 PF: > { %s18_s24 = sadd.s32 1, %s2953_s24  }
 0x204   : > { %p15_p5 = scmp.ge.s32.totalorder %s18_s24, 4  }
 0x206   :  { %17 = sbr.rel (!%p15_p5) target bundleno = 1 (0x1), region = 94 }

// kernel: downsample_bottleneck_forward.6
= control target key start
LH: loop header
LB: loop body
LE: loop exit
PB: predicated region body
PF: predicated region fallthrough
CT: control target
= control target key end

     0   :  { %s1596_s21 = smov 0   ;;  %s1598_s22 = smov 0   ;;  %s1827_s0 = inlined_call_operand.vmem [shape: bf16[2,272,12], index: 0, kind: input, shape index: {}]   ;;  %s1828_s1 = inlined_call_operand.vmem [shape: bf16[2,272,12], index: 1, kind: input, shape index: {}]   ;;  %s1829_s2 = inlined_call_operand.vmem [shape: bf16[3,12,4], index: 2, kind: input, shape index: {}]   ;;  %s1830_s3 = inlined_call_operand.vmem [shape: f32[1,4], index: 3, kind: input, shape index: {}]   ;;  %s1831_s4 = inlined_call_operand.vmem [shape: f32[2,256,4], index: 4, kind: output, shape index: {0}]   ;;  %s1832_s5 = inlined_call_operand.vmem [shape: f32[4,1,4], index: 5, kind: output, shape index: {1}]   ;;  %s1833_s6 = inlined_call_operand.vmem [shape: f32[4,1,4], index: 6, kind: output, shape index: {2}]  }
   0x1   :  { %s1600_s23 = smov 0   ;;  %s1602_s24 = smov 0  }
   0x2   :  { %s1604_s25 = smov 0  }
   0x3 LB: > { %s26_s26 = sadd.s32 1, %s1551_s23  ;;  %s29_s27 = sadd.s32 1, %s1555_s24  ;;  %s1559_s25 = sphi %s1604_s25, %s17_s25   ;;  %s1555_s24 = sphi %s1602_s24, %s1837_s24   ;;  %s1551_s23 = sphi %s1600_s23, %s1836_s23   ;;  %s1547_s22 = sphi %s1598_s22, %s1835_s22   ;;  %s1543_s21 = sphi %s1596_s21, %s1834_s21  }
   0x4   : > { %p27_p0 = scmp.ge.s32.totalorder %s26_s26, 2  ;;  %p1248_p1 = scmp.ge.s32.totalorder %s1559_s25, 1 }
   0x5   : > { %p249_p2 = scmp.lt.s32.totalorder %s1559_s25, 5 }
   0x6   : > { %s1839_s26 = smov (%p27_p0, %s26_s26), 0  ;;  %s1841_s27 = smov (!%p27_p0, %s29_s27), %s1555_s24 }
   0x7   : > { %p250_p3 = pnand %p1248_p1, %p249_p2  ;;  %p31_p4 = scmp.ge.s32.totalorder %s1841_s27, 2 }
   0x8   : > { %v1494_v0 = vld [vmem:[%s1829_s2] sm:$0x3f] (!%p250_p3)   ;;  %vm434_vm0 = vcmask (!%p250_p3), 1045504   ;;  %p298_p5 = scmp.lt.s32.totalorder (!%p250_p3), %s1547_s22, 1  ;;  %v1495_v2 = vld [vmem:[%s1829_s2 + $0x8] sm:$0x3f] (!%p250_p3)  }
   0x9   : > { %s1843_s27 = smov (%p31_p4, %s1841_s27), 0  ;;  %253 = sbr.rel (%p250_p3) target bundleno = 305 (0x131), region = 36 }
   0xa   : > { %1449 = vmatprep.subr.msk.bf16.mxu1 (!%p250_p3), %vm434_vm0, %v1494_v0  ;;  %v436_v1 = vsel (!%p250_p3), %vm434_vm0, %v1494_v0, 0  ;;  %s1256_s8 = sshll.u32 (!%p250_p3), %s1543_s21, 7  ;;  %1450 = vmatprep.subr.msk.bf16.mxu0 (!%p250_p3), %vm434_vm0, %v1495_v2  ;;  %v642_v3 = vsel (!%p250_p3), %vm434_vm0, %v1495_v2, 0  ;;  %v1500_v4 = vld [vmem:[%s1829_s2 + $0x10] sm:$0x3f] (!%p250_p3)   ;;  %vm409_vm1 = vcmask (!%p250_p3), 97280  }
   0xb   : > { %1346 = vmatpush3.bf16.msra.mxu1 (!%p250_p3), %v436_v1  ;;  %s342_s10 = sshra.s32 (!%p250_p3), %s1256_s8, 3  ;;  %1364 = vmatpush3.bf16.msra.mxu0 (!%p250_p3), %v642_v3  ;;  %s757_s18 = sadd.s32 (!%p250_p3), 16, %s1256_s8  ;;  %v851_v9 = vsel (!%p250_p3), %vm434_vm0, %v1500_v4, 0  ;;  %v1717_v38 = vld [vmem:[%s1830_s3] ss:$0 sm:$0xff] (!%p250_p3)  ;;  %vm966_vm2 = vcmask (!%p250_p3), 31744  }
   0xc   : > { %1451 = vmatprep.subr.msk.bf16.mxu1 (!%p250_p3), %vm434_vm0, %v1495_v2  ;;  %s1258_s14 = sshll.u32 (!%p250_p3), %s342_s10, 2  ;;  %1452 = vmatprep.subr.msk.bf16.mxu0 (!%p250_p3), %vm434_vm0, %v1500_v4  ;;  %s758_s30 = sshra.s32 (!%p250_p3), %s757_s18, 3  ;;  %vm1020_vm3 = vcmask (!%p250_p3), 24576  }
   0xd   : > { %s1296_s8 = sshll.u32 (!%p250_p3), %s758_s30, 2  ;;  %s1251_s11 = sshll.u32 (!%p250_p3), %s1543_s21, 4 }
   0xe   : > { %p311_p6 = scmp.lt.s32.totalorder (!%p250_p3), %s1251_s11, 31 }
  0x10   : > { %s1641_s9 = scalar_select %p298_p5, %s1547_s22, 1 }
  0x11   : > { %s1845_s11 = smov (!%p311_p6, %s1251_s11), 31 }
  0x12   : > { %s1453_s13 = smul.u32 136, %s1641_s9  ;;  %s1252_s12 = sshll.u32 %s1641_s9, 5 }
  0x13   : > { %s1254_s9 = sshll.u32 %s1547_s22, 1 }
  0x14   : > { %s302_s17 = scalar_lea.vmem %s1827_s0, %s1453_s13  ;;  %s307_s29 = scalar_lea.vmem %s1828_s1, %s1453_s13 }
  0x15   : > { %s1654_s19 = scalar_lea.vmem %s302_s17, %s1258_s14  ;;  %s1660_s7 = scalar_lea.vmem %s307_s29, %s1258_s14 }
  0x16   : > { %v1496_v5 = vld [vmem:[%s1654_s19] sm:$0xff]   ;;  %v1498_v6 = vld [vmem:[%s1654_s19 + $0x8] sm:$0xff]   ;;  %v1501_v10 = vld [vmem:[%s1654_s19 + $0x10] sm:$0xff]   ;;  %s1673_s10 = scalar_lea.vmem %s302_s17, %s1296_s8  ;;  %s314_s13 = sadd.s32 %s1252_s12, %s1845_s11 }
  0x17   : > { %1347 = vmatprep.mubr.msk.bf16.mxu1 %vm409_vm1, %v1496_v5  ;;  %v1497_v7 = vld [vmem:[%s1660_s7] sm:$0xff]   ;;  %v1499_v8 = vld [vmem:[%s1660_s7 + $0x8] sm:$0xff]   ;;  %v1502_v11 = vld [vmem:[%s1660_s7 + $0x10] sm:$0xff]   ;;  %s1253_s16 = sshll.u32 %s314_s13, 3  ;;  %s319_s20 = sadd.s32 %s1543_s21, %s1254_s9 }
  0x18   : > { %1348 = vmatmul.mubr.msk.bf16.vlgmr.msra.gmra.mrb[0].mxu1 %vm409_vm1, %v1498_v6  ;;  %1365 = vmatprep.mubr.msk.bf16.mxu0 %vm409_vm1, %v1497_v7  ;;  %v1503_v12 = vld [vmem:[%s1654_s19 + $0x18] sm:$0xff]   ;;  %v1505_v13 = vld [vmem:[%s1654_s19 + $0x20] sm:$0xff]   ;;  %v1507_v16 = vld [vmem:[%s1654_s19 + $0x28] sm:$0xff]   ;;  %p320_p7 = scmp.lt.s32.totalorder %s319_s20, 3 }
  0x19   : > { %1400 = vmatpush3.bf16.msra.mxu1 %v642_v3  ;;  %1366 = vmatmul.mubr.msk.bf16.vlgmr.msra.gmra.mrb[0].mxu0 %vm409_vm1, %v1499_v8  ;;  %v1504_v14 = vld [vmem:[%s1660_s7 + $0x18] sm:$0xff]   ;;  %v1506_v15 = vld [vmem:[%s1673_s10] sm:$0xff]   ;;  %v1509_v17 = vld [vmem:[%s1654_s19 + $0x30] sm:$0xff]  }
  0x1a   : > { %1382 = vmatpush3.bf16.msra.mxu0 %v851_v9  ;;  %1351 = vmatprep.mubr.msk.bf16.mxu1 %vm409_vm1, %v1501_v10  ;;  %v1508_v18 = vld [vmem:[%s1673_s10 + $0x8] sm:$0xff]   ;;  %v1510_v19 = vld [vmem:[%s1673_s10 + $0x10] sm:$0xff]   ;;  %v1511_v20 = vld [vmem:[%s1654_s19 + $0x38] sm:$0xff]   ;;  %s1724_s19 = scalar_lea.vmem %s1831_s4, %s1253_s16  ;;  %s1847_s20 = smov (!%p320_p7, %s319_s20), 3 }
  0x1b   : > { %1369 = vmatprep.mubr.msk.bf16.mxu0 %vm409_vm1, %v1502_v11  ;;  %v1513_v21 = vld [vmem:[%s1660_s7 + $0x20] sm:$0xff]   ;;  %v1512_v22 = vld [vmem:[%s1673_s10 + $0x18] sm:$0xff]   ;;  %v1515_v24 = vld [vmem:[%s1660_s7 + $0x28] sm:$0xff]   ;;  %s322_s29 = scalar_lea.vmem %s1832_s5, %s1847_s20 }
  0x1c   : > { %v1514_v23 = vld [vmem:[%s1673_s10 + $0x20] sm:$0xff]   ;;  %v1517_v25 = vld [vmem:[%s1660_s7 + $0x30] sm:$0xff]   ;;  %v1516_v26 = vld [vmem:[%s1673_s10 + $0x28] sm:$0xff]  }
  0x1d   : > { %v1518_v27 = vld [vmem:[%s1673_s10 + $0x30] sm:$0xff]   ;;  %v1519_v28 = vld [vmem:[%s1660_s7 + $0x38] sm:$0xff]   ;;  %s329_s7 = scalar_lea.vmem %s1833_s6, %s1847_s20 }
  0x1e   : > { %v1520_v29 = vld [vmem:[%s1673_s10 + $0x38] sm:$0xff]  }
  0x20   : > { %1352 = vmatmul.mubr.msk.bf16.gmra.mrb[4].mxu1 %vm409_vm1, %v1503_v12 }
  0x21   : > { %1355 = vmatprep.mubr.msk.bf16.mxu1 %vm409_vm1, %v1505_v13  ;;  %1370 = vmatmul.mubr.msk.bf16.gmra.mrb[4].mxu0 %vm409_vm1, %v1504_v14 }
  0x22   : > { %1383 = vmatprep.mubr.msk.bf16.mxu0 %vm409_vm1, %v1506_v15 }
  0x28   : > { %1356 = vmatmul.mubr.msk.bf16.gmra.mrb[8].mxu1 %vm409_vm1, %v1507_v16 }
  0x29   : > { %1359 = vmatprep.mubr.msk.bf16.mxu1 %vm409_vm1, %v1509_v17  ;;  %1384 = vmatmul.mubr.msk.bf16.vlgmr.msra.gmra.mrb[0].mxu0 %vm409_vm1, %v1508_v18 }
  0x2a   : > { %1387 = vmatprep.mubr.msk.bf16.mxu0 %vm409_vm1, %v1510_v19 }
  0x30   : > { %1360 = vmatmul.mubr.msk.bf16.gmra.mrb[12].mxu1 %vm409_vm1, %v1511_v20 }
  0x31   : > { %1373 = vmatprep.mubr.msk.bf16.mxu1 %vm409_vm1, %v1513_v21  ;;  %1388 = vmatmul.mubr.msk.bf16.gmra.mrb[4].mxu0 %vm409_vm1, %v1512_v22 }
  0x32   : > { %1391 = vmatprep.mubr.msk.bf16.mxu0 %vm409_vm1, %v1514_v23 }
  0x38   : > { %1374 = vmatmul.mubr.msk.bf16.vlgmr.msra.gmra.mrb[8].mxu1 %vm409_vm1, %v1515_v24 }
  0x39   : > { %1377 = vmatprep.mubr.msk.bf16.mxu1 %vm409_vm1, %v1517_v25  ;;  %1392 = vmatmul.mubr.msk.bf16.gmra.mrb[8].mxu0 %vm409_vm1, %v1516_v26 }
  0x3a   : > { %1395 = vmatprep.mubr.msk.bf16.mxu0 %vm409_vm1, %v1518_v27 }
  0x40   : > { %1378 = vmatmul.mubr.msk.bf16.gmra.mrb[12].mxu1 %vm409_vm1, %v1519_v28 }
  0x41   : > { %1396 = vmatmul.mubr.msk.bf16.gmra.mrb[12].mxu0 %vm409_vm1, %v1520_v29 }
  0xeb   : > { %v1349_v30 = vpop.f32.mrb[0].mxu1 }
  0xec   : > { %v472_v31 = vpop.f32.mrb[1].mxu1  ;;  %v537_v39 = vadd.f32 %v1349_v30, %v1717_v38 }
  0xed   : > { %v1350_v32 = vpop.f32.mrb[2].mxu1  ;;  %v535_v40 = vadd.f32 %v1717_v38, %v472_v31 }
  0xee   : > { %v475_v33 = vpop.f32.mrb[3].mxu1  ;;  %v538_v42 = vadd.f32 %v1350_v32, %v1717_v38 }
  0xef   : > { %v536_v45 = vadd.f32 %v1717_v38, %v475_v33 }
  0xf3   : > { %v1353_v34 = vpop.f32.mrb[4].mxu1 }
  0xf4   : > { %v488_v35 = vpop.f32.mrb[5].mxu1  ;;  %v541_v56 = vadd.f32 %v1353_v34, %v1717_v38 }
  0xf5   : > { %v1354_v36 = vpop.f32.mrb[6].mxu1  ;;  %v539_v59 = vadd.f32 %v1717_v38, %v488_v35 }
  0xf6   : > { %v491_v37 = vpop.f32.mrb[7].mxu1  ;;  %v542_v0 = vadd.f32 %v1354_v36, %v1717_v38 }
  0xf7   : > { %v540_v5 = vadd.f32 %v1717_v38, %v491_v37 }
  0xfc   : > { %v1385_v41 = vpop.f32.mrb[0].mxu0 }
  0xfd   : > { %v1402_v43 = vadd.f32 %v1385_v41, %v537_v39  ;;  %v887_v44 = vpop.f32.mrb[1].mxu0 }
  0xfe   : > { %v1404_v46 = vadd.f32 %v887_v44, %v535_v40  ;;  %v1386_v47 = vpop.f32.mrb[2].mxu0 }
  0xff   : > { %969 = vst.msk [vmem:[%s1724_s19 + $0x10] sm:$0xff] %vm966_vm2, %v1402_v43  ;;  %v1406_v48 = vadd.f32 %v1386_v47, %v538_v42  ;;  %v890_v49 = vpop.f32.mrb[3].mxu0  ;;  %v1024_v52 = vmul.f32 %v1402_v43, %v1402_v43  ;;  %v986_v60 = vsel %vm966_vm2, %v1402_v43, 0.0 }
 0x100   : > { %967 = vst.msk [vmem:[%s1724_s19] sm:$0xff] %vm966_vm2, %v1404_v46  ;;  %v1022_v50 = vmul.f32 %v1404_v46, %v1404_v46  ;;  %v1408_v51 = vadd.f32 %v890_v49, %v536_v45  ;;  %v983_v53 = vsel %vm966_vm2, %v1404_v46, 0.0 }
 0x101   : > { %970 = vst.msk [vmem:[%s1724_s19 + $0x18] sm:$0xff] %vm966_vm2, %v1406_v48  ;;  %v1025_v57 = vmul.f32 %v1406_v48, %v1406_v48  ;;  %v1041_v6 = vsel %vm966_vm2, %v1024_v52, 0.0  ;;  %v988_v7 = vsel %vm966_vm2, %v1406_v48, 0.0 }
 0x102   : > { %968 = vst.msk [vmem:[%s1724_s19 + $0x8] sm:$0xff] %vm966_vm2, %v1408_v51  ;;  %v984_v54 = vsel %vm966_vm2, %v1408_v51, 0.0  ;;  %v1023_v55 = vmul.f32 %v1408_v51, %v1408_v51  ;;  %v1038_v61 = vsel %vm966_vm2, %v1022_v50, 0.0 }
 0x103   : > { %v985_v58 = vadd.f32 %v984_v54, %v983_v53  ;;  %v1043_v10 = vsel %vm966_vm2, %v1025_v57, 0.0 }
 0x104   : > { %v1039_v62 = vsel %vm966_vm2, %v1023_v55, 0.0  ;;  %v1389_v63 = vpop.f32.mrb[4].mxu0 }
 0x105   : > { %v987_v1 = vadd.f32 %v986_v60, %v985_v58  ;;  %v1040_v2 = vadd.f32 %v1039_v62, %v1038_v61  ;;  %v1410_v3 = vadd.f32 %v1389_v63, %v541_v56  ;;  %v903_v4 = vpop.f32.mrb[5].mxu0 }
 0x106   : > { %v1412_v8 = vadd.f32 %v903_v4, %v539_v59  ;;  %v1390_v9 = vpop.f32.mrb[6].mxu0 }
 0x107   : > { %v1042_v11 = vadd.f32 %v1041_v6, %v1040_v2  ;;  %973 = vst.msk [vmem:[%s1724_s19 + $0x30] sm:$0xff] %vm966_vm2, %v1410_v3  ;;  %v989_v12 = vadd.f32 %v988_v7, %v987_v1  ;;  %v906_v13 = vpop.f32.mrb[7].mxu0  ;;  %v1414_v16 = vadd.f32 %v1390_v9, %v542_v0  ;;  %v1028_v20 = vmul.f32 %v1410_v3, %v1410_v3 }
 0x108   : > { %971 = vst.msk [vmem:[%s1724_s19 + $0x20] sm:$0xff] %vm966_vm2, %v1412_v8  ;;  %v990_v14 = vsel %vm966_vm2, %v1412_v8, 0.0  ;;  %v1026_v15 = vmul.f32 %v1412_v8, %v1412_v8  ;;  %v1416_v17 = vadd.f32 %v906_v13, %v540_v5  ;;  %v994_v29 = vsel %vm966_vm2, %v1410_v3, 0.0 }
 0x109   : > { %v991_v18 = vadd.f32 %v990_v14, %v989_v12  ;;  %v1044_v19 = vadd.f32 %v1043_v10, %v1042_v11  ;;  %974 = vst.msk [vmem:[%s1724_s19 + $0x38] sm:$0xff] %vm966_vm2, %v1414_v16  ;;  %v1029_v30 = vmul.f32 %v1414_v16, %v1414_v16  ;;  %v996_v41 = vsel %vm966_vm2, %v1414_v16, 0.0 }
 0x10a   : > { %v1045_v21 = vsel %vm966_vm2, %v1026_v15, 0.0  ;;  %972 = vst.msk [vmem:[%s1724_s19 + $0x28] sm:$0xff] %vm966_vm2, %v1416_v17  ;;  %v992_v22 = vsel %vm966_vm2, %v1416_v17, 0.0  ;;  %v1027_v26 = vmul.f32 %v1416_v17, %v1416_v17  ;;  %v1049_v46 = vsel %vm966_vm2, %v1028_v20, 0.0 }
 0x10b   : > { %v1375_v23 = vpop.f32.mrb[8].mxu1  ;;  %v1046_v24 = vadd.f32 %v1045_v21, %v1044_v19  ;;  %v993_v25 = vadd.f32 %v992_v22, %v991_v18  ;;  %v1051_v54 = vsel %vm966_vm2, %v1029_v30, 0.0 }
 0x10c   : > { %v1417_v27 = vadd.f32 %v1375_v23, %v1717_v38  ;;  %v710_v28 = vpop.f32.mrb[9].mxu1  ;;  %v1393_v31 = vpop.f32.mrb[8].mxu0  ;;  %v1047_v35 = vsel %vm966_vm2, %v1027_v26, 0.0 }
 0x10d   : > { %v1419_v32 = vadd.f32 %v1717_v38, %v710_v28  ;;  %v1376_v33 = vpop.f32.mrb[10].mxu1  ;;  %v995_v34 = vadd.f32 %v994_v29, %v993_v25  ;;  %v919_v37 = vpop.f32.mrb[9].mxu0  ;;  %v1048_v42 = vadd.f32 %v1047_v35, %v1046_v24 }
 0x10e   : > { %v1418_v36 = vadd.f32 %v1417_v27, %v1393_v31  ;;  %v1421_v39 = vadd.f32 %v1376_v33, %v1717_v38  ;;  %v713_v40 = vpop.f32.mrb[11].mxu1  ;;  %v1394_v44 = vpop.f32.mrb[10].mxu0 }
 0x10f   : > { %v1420_v43 = vadd.f32 %v1419_v32, %v919_v37  ;;  %v1423_v45 = vadd.f32 %v1717_v38, %v713_v40  ;;  %v997_v47 = vadd.f32 %v996_v41, %v995_v34  ;;  %v922_v49 = vpop.f32.mrb[11].mxu0  ;;  %v1050_v50 = vadd.f32 %v1049_v46, %v1048_v42 }
 0x110   : > { %977 = vst.msk [vmem:[%s1724_s19 + $0x50] sm:$0xff] %vm966_vm2, %v1418_v36  ;;  %v1422_v48 = vadd.f32 %v1421_v39, %v1394_v44  ;;  %v1032_v61 = vmul.f32 %v1418_v36, %v1418_v36  ;;  %v1002_v1 = vsel %vm966_vm2, %v1418_v36, 0.0 }
 0x111   : > { %975 = vst.msk [vmem:[%s1724_s19 + $0x40] sm:$0xff] %vm966_vm2, %v1420_v43  ;;  %v998_v51 = vsel %vm966_vm2, %v1420_v43, 0.0  ;;  %v1030_v52 = vmul.f32 %v1420_v43, %v1420_v43  ;;  %v1424_v53 = vadd.f32 %v1423_v45, %v922_v49  ;;  %v1052_v56 = vadd.f32 %v1051_v54, %v1050_v50 }
 0x112   : > { %v999_v55 = vadd.f32 %v998_v51, %v997_v47  ;;  %978 = vst.msk [vmem:[%s1724_s19 + $0x58] sm:$0xff] %vm966_vm2, %v1422_v48  ;;  %v1033_v7 = vmul.f32 %v1422_v48, %v1422_v48  ;;  %v1004_v13 = vsel %vm966_vm2, %v1422_v48, 0.0  ;;  %v1057_v18 = vsel %vm966_vm2, %v1032_v61, 0.0 }
 0x113   : > { %v1053_v57 = vsel %vm966_vm2, %v1030_v52, 0.0  ;;  %976 = vst.msk [vmem:[%s1724_s19 + $0x48] sm:$0xff] %vm966_vm2, %v1424_v53  ;;  %v1000_v58 = vsel %vm966_vm2, %v1424_v53, 0.0  ;;  %v1031_v59 = vmul.f32 %v1424_v53, %v1424_v53  ;;  %v1379_v60 = vpop.f32.mrb[12].mxu1 }
 0x114   : > { %v1001_v62 = vadd.f32 %v1000_v58, %v999_v55  ;;  %v1425_v63 = vadd.f32 %v1379_v60, %v1717_v38  ;;  %v726_v0 = vpop.f32.mrb[13].mxu1  ;;  %v1054_v2 = vadd.f32 %v1053_v57, %v1052_v56  ;;  %v1397_v4 = vpop.f32.mrb[12].mxu0  ;;  %v1059_v26 = vsel %vm966_vm2, %v1033_v7, 0.0 }
 0x115   : > { %v1055_v3 = vsel %vm966_vm2, %v1031_v59, 0.0  ;;  %v1427_v5 = vadd.f32 %v1717_v38, %v726_v0  ;;  %v1380_v6 = vpop.f32.mrb[14].mxu1  ;;  %v935_v10 = vpop.f32.mrb[13].mxu0 }
 0x116   : > { %v1003_v8 = vadd.f32 %v1002_v1, %v1001_v62  ;;  %v1426_v9 = vadd.f32 %v1425_v63, %v1397_v4  ;;  %v1429_v11 = vadd.f32 %v1380_v6, %v1717_v38  ;;  %v729_v12 = vpop.f32.mrb[15].mxu1  ;;  %v1056_v14 = vadd.f32 %v1055_v3, %v1054_v2  ;;  %v1398_v16 = vpop.f32.mrb[14].mxu0 }
 0x117   : > { %v1428_v15 = vadd.f32 %v1427_v5, %v935_v10  ;;  %v1431_v17 = vadd.f32 %v1717_v38, %v729_v12  ;;  %v938_v21 = vpop.f32.mrb[15].mxu0 }
 0x118   : > { %981 = vst.msk [vmem:[%s1724_s19 + $0x70] sm:$0xff] %vm966_vm2, %v1426_v9  ;;  %v1005_v19 = vadd.f32 %v1004_v13, %v1003_v8  ;;  %v1430_v20 = vadd.f32 %v1429_v11, %v1398_v16  ;;  %v1058_v22 = vadd.f32 %v1057_v18, %v1056_v14  ;;  %v1036_v31 = vmul.f32 %v1426_v9, %v1426_v9 }
 0x119   : > { %979 = vst.msk [vmem:[%s1724_s19 + $0x60] sm:$0xff] %vm966_vm2, %v1428_v15  ;;  %v1006_v23 = vsel %vm966_vm2, %v1428_v15, 0.0  ;;  %v1034_v24 = vmul.f32 %v1428_v15, %v1428_v15  ;;  %v1432_v25 = vadd.f32 %v1431_v17, %v938_v21  ;;  %v1010_v33 = vsel %vm966_vm2, %v1426_v9, 0.0 }
 0x11a   : > { %v1007_v27 = vadd.f32 %v1006_v23, %v1005_v19  ;;  %982 = vst.msk [vmem:[%s1724_s19 + $0x78] sm:$0xff] %vm966_vm2, %v1430_v20  ;;  %v1060_v38 = vadd.f32 %v1059_v26, %v1058_v22  ;;  %v1037_v36 = vmul.f32 %v1430_v20, %v1430_v20  ;;  %v1012_v39 = vsel %vm966_vm2, %v1430_v20, 0.0 }
 0x11b   : > { %v1061_v28 = vsel %vm966_vm2, %v1034_v24, 0.0  ;;  %980 = vst.msk [vmem:[%s1724_s19 + $0x68] sm:$0xff] %vm966_vm2, %v1432_v25  ;;  %v1008_v29 = vsel %vm966_vm2, %v1432_v25, 0.0  ;;  %v1035_v30 = vmul.f32 %v1432_v25, %v1432_v25  ;;  %v1065_v41 = vsel %vm966_vm2, %v1036_v31, 0.0 }
 0x11c   : > { %v1009_v32 = vadd.f32 %v1008_v29, %v1007_v27  ;;  %v1062_v34 = vadd.f32 %v1061_v28, %v1060_v38  ;;  %v1067_v44 = vsel %vm966_vm2, %v1037_v36, 0.0 }
 0x11d   : > { %v1063_v35 = vsel %vm966_vm2, %v1035_v30, 0.0 }
 0x11e   : > { %v1011_v37 = vadd.f32 %v1010_v33, %v1009_v32  ;;  %v1064_v40 = vadd.f32 %v1063_v35, %v1062_v34 }
 0x120   : > { %v1013_v42 = vadd.f32 %v1012_v39, %v1011_v37  ;;  %v1066_v43 = vadd.f32 %v1065_v41, %v1064_v40 }
 0x122   : > { %v1014_v45 = vrot.slane %v1013_v42, 4  ;;  %v1068_v46 = vadd.f32 %v1067_v44, %v1066_v43 }
 0x124   : > { %v1015_v47 = vadd.f32 %v1014_v45, %v1013_v42  ;;  %v1069_v48 = vrot.slane %v1068_v46, 4 }
 0x126   : > { %v1016_v49 = vrot.slane %v1015_v47, 2  ;;  %v1070_v50 = vadd.f32 %v1069_v48, %v1068_v46 }
 0x128   : > { %v1017_v51 = vadd.f32 %v1016_v49, %v1015_v47  ;;  %v1071_v52 = vrot.slane %v1070_v50, 2 }
 0x12a   : > { %v1018_v53 = vrot.slane %v1017_v51, 1  ;;  %v1072_v54 = vadd.f32 %v1071_v52, %v1070_v50 }
 0x12c   : > { %v1019_v55 = vadd.f32 %v1018_v53, %v1017_v51  ;;  %v1073_v56 = vrot.slane %v1072_v54, 1 }
 0x12e   : > { %1021 = vst.msk [vmem:[%s322_s29] sm:$0x1] %vm1020_vm3, %v1019_v55  ;;  %v1074_v57 = vadd.f32 %v1073_v56, %v1072_v54 }
 0x130   : > { %1075 = vst.msk [vmem:[%s329_s7] sm:$0x1] %vm1020_vm3, %v1074_v57 }
 0x131 PF: > { %s17_s25 = sadd.s32 1, %s1559_s25   ;;  %s1834_s21 = smov %s1551_s23 }
 0x132   : > { %p14_p8 = scmp.ge.s32.totalorder %s17_s25, 6   ;;  %s1835_s22 = smov %s1555_s24 }
 0x133   : > { %s1836_s23 = smov %s1839_s26  ;;  %s1837_s24 = smov %s1843_s27 }
 0x134   :  { %16 = sbr.rel (!%p14_p8) target bundleno = 3 (0x3), region = 98 }

// kernel: downsample_bottleneck_forward.7
= control target key start
LH: loop header
LB: loop body
LE: loop exit
PB: predicated region body
PF: predicated region fallthrough
CT: control target
= control target key end

     0   :  { %s2436_s0 = inlined_call_operand.vmem [shape: f32[2,256,4], index: 0, kind: input, shape index: {}]   ;;  %s2437_s1 = inlined_call_operand.vmem [shape: f32[1,4], index: 1, kind: input, shape index: {}]   ;;  %s2438_s2 = inlined_call_operand.vmem [shape: f32[1,4], index: 2, kind: input, shape index: {}]   ;;  %s2439_s3 = inlined_call_operand.vmem [shape: bf16[4,32], index: 3, kind: input, shape index: {}]   ;;  %s2440_s4 = inlined_call_operand.vmem [shape: f32[1,32], index: 4, kind: input, shape index: {}]   ;;  %s2441_s5 = inlined_call_operand.vmem [shape: bf16[2,272,48], index: 5, kind: input, shape index: {}]   ;;  %s2442_s6 = inlined_call_operand.vmem [shape: bf16[2,272,48], index: 6, kind: input, shape index: {}]   ;;  %s2443_s7 = inlined_call_operand.vmem [shape: bf16[3,48,32], index: 7, kind: input, shape index: {}]   ;;  %s2444_s8 = inlined_call_operand.vmem [shape: f32[1,32], index: 8, kind: input, shape index: {}]   ;;  %s2445_s9 = inlined_call_operand.hbm [shape: f32[2,256,32], index: 9, kind: output, shape index: {}]  }
   0x1   :  { %2454 = sst [smem:[#allocation11_spill]] %s2439_s3 }
   0x2   :  { %2455 = sst [smem:[#allocation12_spill]] %s2442_s6 }
   0x3   :  { %14 = vsyncpa [#allocation3], 0 }
   0x4   :  { %16 = vsyncpa [#allocation3 + $0x1], 0  ;;  %s2038_s30 = smov 0   ;;  %s2040_s10 = smov 0  }
   0x5   :  { %s2042_s11 = smov 0   ;;  %s2044_s12 = smov 0  }
   0x6   :  { %s2046_s13 = smov 0   ;;  %s2048_s14 = smov 0  }
   0x7   :  { %s2050_s15 = smov 0   ;;  %s2052_s16 = smov 0  }
   0x8 LB: > { %2456 = sst [smem:[#allocation5_spill]] %s1963_s11  ;;  %s1473_s17 = sadd.s32 4294967295, %s1983_s16   ;;  %s1983_s16 = sphi %s2052_s16, %s22_s16   ;;  %s1979_s15 = sphi %s2050_s15, %s2474_s15   ;;  %s1975_s14 = sphi %s2048_s14, %s2473_s14   ;;  %s1971_s13 = sphi %s2046_s13, %s2472_s13   ;;  %s1967_s12 = sphi %s2044_s12, %s2471_s12   ;;  %s1963_s11 = sphi %s2042_s11, %s2470_s11   ;;  %s1959_s10 = sphi %s2040_s10, %s2476_s10   ;;  %s1955_s30 = sphi %s2038_s30, %s2475_s30  }
   0x9   : > { %2457 = sst [smem:[#allocation6_spill]] %s1975_s14  ;;  %s1474_s18 = sadd.s32 4294967294, %s1983_s16  }
   0xa   : > { %2458 = sst [smem:[#allocation7_spill]] %s1979_s15  ;;  %s31_s19 = sadd.s32 1, %s1975_s14 }
   0xb   : > { %p32_p0 = scmp.ge.s32.totalorder %s31_s19, 2  ;;  %s34_s20 = sadd.s32 1, %s1979_s15 }
   0xc   : > { %p259_p1 = scmp.ne.s32.totalorder %s1963_s11, %s1959_s10  ;;  %p260_p2 = scmp.eq.s32.totalorder %s1473_s17, 3 }
   0xd   : > { %s2478_s19 = smov (%p32_p0, %s31_s19), 0  ;;  %s2480_s20 = smov (!%p32_p0, %s34_s20), %s1979_s15 }
   0xe   : > { %2459 = sst [smem:[#allocation8_spill]] %s2478_s19  ;;  %s245_s21 = ssub.s32 %s1975_s14, %s2478_s19 }
   0xf   : > { %p2089_p3 = por %p260_p2, %p259_p1  ;;  %p36_p4 = scmp.ge.s32.totalorder %s2480_s20, 2 }
  0x10   : > { %p265_p5 = scmp.ne.s32.totalorder %s1959_s10, %s1955_s30  ;;  %p266_p6 = scmp.eq.s32.totalorder %s1474_s18, 3 }
  0x11   : > { %p1477_p7 = scmp.ge.s32.totalorder %s1983_s16, 1  ;;  %s2482_s20 = smov (%p36_p4, %s2480_s20), 0 }
  0x12   : > { %2461 = sst [smem:[#allocation9_spill]] %s2482_s20  ;;  %p2098_p8 = por %p266_p6, %p265_p5 }
  0x13   : > { %p331_p9 = scmp.lt.s32.totalorder %s1983_s16, 5  ;;  %s244_s24 = ssub.s32 %s1979_s15, %s2482_s20 }
  0x14   : > { %s249_s25 = sadd.s32 1, %s1963_s11  ;;  %s246_s26 = sor.u32 %s245_s21, %s244_s24 }
  0x15   : > { %p332_p10 = pnand %p1477_p7, %p331_p9  ;;  %p247_p11 = scmp.eq.s32.totalorder %s246_s26, 0 }
  0x16   : > { %v1856_v0 = vld [vmem:[%s2443_s7 + $0x18] sm:$0xff] (!%p332_p10)   ;;  %p382_p12 = scmp.lt.s32.totalorder (!%p332_p10), %s1971_s13, 1  ;;  %v1857_v1 = vld [vmem:[%s2443_s7 + $0x20] sm:$0xff] (!%p332_p10)   ;;  %s2447_s21 = sshll.u32 (!%p332_p10), %s1967_s12, 7  ;;  %vm539_vm0 = vcmask (!%p332_p10), 1041408   ;;  %v1858_v3 = vld [vmem:[%s2443_s7 + $0x28] sm:$0xff] (!%p332_p10)  }
  0x17   : > { %s2107_s27 = scalar_select %p247_p11, %s1963_s11, %s249_s25  }
  0x18   : > { %335 = sbr.rel (%p332_p10) target bundleno = 341 (0x155), region = 56  ;;  %1657 = vmatprep.subr.bf16.mxu0 (!%p332_p10), %v1856_v0  ;;  %s2122_s25 = sshra.s32 (!%p332_p10), %s2447_s21, 3  ;;  %v2143_v5 = vld [vmem:[%s2443_s7] sm:$0xff] (!%p332_p10)   ;;  %vm747_vm1 = vcmask (!%p332_p10), 392192   ;;  %v1862_v6 = vld [vmem:[%s2443_s7 + $0x30] sm:$0xff] (!%p332_p10)   ;;  %v1868_v12 = vld [vmem:[%s2443_s7 + $0x38] sm:$0xff] (!%p332_p10)  }
  0x19   : > { %2463 = sst [smem:[#allocation10_spill]] %s2107_s27  ;;  %1658 = vmatpush3.bf16.msra.mxu0 (!%p332_p10), %v1856_v0  ;;  %s2464_s3 = sld [smem:[#allocation11_spill]] (!%p332_p10)  ;;  %v2163_v10 = vld [vmem:[%s2437_s1] ss:$0 sm:$0xff] (!%p332_p10)  ;;  %vm514_vm2 = vcmask (!%p332_p10), 31744   ;;  %v1865_v57 = vld [vmem:[%s2443_s7 + $0x8] sm:$0xff] (!%p332_p10)  }
  0x1a   : > { %1659 = vmatprep.subr.bf16.mxu0 (!%p332_p10), %v1857_v1  ;;  %s2451_s20 = sshll.u32 (!%p332_p10), %s2122_s25, 2  ;;  %s2465_s6 = sld [smem:[#allocation12_spill]] (!%p332_p10)  ;;  %v2173_v11 = vld [vmem:[%s2438_s2] ss:$0 sm:$0xff] (!%p332_p10)  ;;  %vm1328_vm3 = vcmask (!%p332_p10), 261120  }
  0x1b   : > { %s2138_s28 = sshll.u32 (!%p332_p10), %s1967_s12, 4  ;;  %s378_s27 = sand.u32 (!%p332_p10), 1, %s1959_s10  }
  0x1c   : > { %p384_p13 = scmp.lt.s32.totalorder (!%p332_p10), %s2138_s28, 31 }
  0x1d   : > { %1660 = vmatpush3.bf16.msra.mxu0 (!%p332_p10), %v1857_v1 }
  0x1e   : > { %1661 = vmatprep.subr.bf16.mxu0 (!%p332_p10), %v1858_v3 }
  0x1f   : > { %s2118_s24 = scalar_select %p382_p12, %s1971_s13, 1  ;;  %v506_v2 = vld [vmem:[%s2464_s3] sm:$0x3] }
  0x20   : > { %1781 = vmatprep.subr.msk.bf16.mxu1 %vm539_vm0, %v506_v2  ;;  %v541_v4 = vsel %vm539_vm0, %v506_v2, 0  ;;  %s385_s15 = scalar_select %p384_p13, %s2138_s28, 31 }
  0x21   : > { %s2452_s18 = smul.u32 136, %s2118_s24  ;;  %1618 = vmatpush3.bf16.msra.mxu1 %v541_v4  ;;  %s1480_s3 = sshll.u32 %s2118_s24, 5  ;;  %1662 = vmatpush3.bf16.msra.mxu0 %v1858_v3  ;;  %v1872_v4 = vld [vmem:[%s2443_s7 + $0x40] sm:$0xff]  }
  0x22   : > { %1635 = vmatprep.subr.bf16.mxu1 %v2143_v5  ;;  %1679 = vmatprep.subr.bf16.mxu0 %v1862_v6  ;;  %s387_s19 = sadd.s32 %s1480_s3, %s385_s15 }
  0x23   : > { %s400_s26 = scalar_lea.vmem %s2465_s6, %s2452_s18  ;;  %s1478_s18 = sshll.u32 %s378_s27, 7 }
  0x24   : > { %s2147_s29 = scalar_lea.vmem %s400_s26, %s2451_s20  ;;  %s2466_s26 = sshll.u32 %s1967_s12, 7 }
  0x25   : > { %v1859_v7 = vld [vmem:[%s2147_s29] sm:$0xff]   ;;  %v1860_v8 = vld [vmem:[%s2147_s29 + $0x8] sm:$0xff]   ;;  %v1863_v9 = vld [vmem:[%s2147_s29 + $0x10] sm:$0xff]   ;;  %s2167_s17 = sadd.s32 16, %s2466_s26  ;;  %s1481_s20 = sshll.u32 %s387_s19, 3 }
  0x26   : > { %1663 = vmatprep.mubr.msk.bf16.mxu0 %vm747_vm1, %v1859_v7  ;;  %s2178_s3 = scalar_lea.vmem %s2436_s0, %s1481_s20  ;;  %s1106_s6 = sshra.s32 %s2167_s17, 3  ;;  %v1864_v23 = vld [vmem:[%s2147_s29 + $0x18] sm:$0xff]   ;;  %v1866_v32 = vld [vmem:[%s2147_s29 + $0x20] sm:$0xff]   ;;  %v1867_v2 = vld [vmem:[%s2147_s29 + $0x28] sm:$0xff]  }
  0x27   : > { %1664 = vmatmul.mubr.msk.bf16.vlgmr.msra.gmra.mrb[0].mxu0 %vm747_vm1, %v1860_v8  ;;  %v404_v13 = vld [vmem:[%s2178_s3] sm:$0xff]  ;;  %v405_v14 = vld [vmem:[%s2178_s3 + $0x8] sm:$0xff]  ;;  %v406_v15 = vld [vmem:[%s2178_s3 + $0x10] sm:$0xff]  ;;  %s2205_s11 = sshll.u32 %s1106_s6, 2  ;;  %s2467_s20 = smul.u32 136, %s2118_s24 }
  0x28   : > { %1667 = vmatprep.mubr.msk.bf16.mxu0 %vm747_vm1, %v1863_v9  ;;  %1680 = vmatpush3.bf16.msra.mxu0 %v1862_v6  ;;  %v427_v16 = vmul.f32 %v2163_v10, %v404_v13  ;;  %v428_v17 = vmul.f32 %v2163_v10, %v405_v14  ;;  %v407_v18 = vld [vmem:[%s2178_s3 + $0x18] sm:$0xff]  ;;  %v429_v19 = vmul.f32 %v2163_v10, %v406_v15  ;;  %v408_v20 = vld [vmem:[%s2178_s3 + $0x20] sm:$0xff]  ;;  %v409_v21 = vld [vmem:[%s2178_s3 + $0x28] sm:$0xff]  ;;  %s2468_s12 = sshll.u32 %s2122_s25, 2  ;;  %s1571_s24 = sshll.u32 %s1971_s13, 5 }
  0x29   : > { %1681 = vmatprep.subr.bf16.mxu0 %v1868_v12  ;;  %v430_v22 = vmul.f32 %v2163_v10, %v407_v18  ;;  %v431_v24 = vmul.f32 %v2163_v10, %v408_v20  ;;  %v432_v25 = vmul.f32 %v2163_v10, %v409_v21  ;;  %v410_v26 = vld [vmem:[%s2178_s3 + $0x30] sm:$0xff]  ;;  %v411_v27 = vld [vmem:[%s2178_s3 + $0x38] sm:$0xff]  ;;  %v412_v37 = vld [vmem:[%s2178_s3 + $0x40] sm:$0xff]  ;;  %s2223_s19 = scalar_lea.vmem %s2441_s5, %s2467_s20  ;;  %s1358_s21 = sadd.s32 %s1571_s24, %s2138_s28 }
  0x2a   : > { %v450_v28 = vadd.f32 %v2173_v11, %v427_v16  ;;  %v451_v29 = vadd.f32 %v2173_v11, %v428_v17  ;;  %v452_v30 = vadd.f32 %v2173_v11, %v429_v19  ;;  %v433_v31 = vmul.f32 %v2163_v10, %v410_v26  ;;  %v413_v38 = vld [vmem:[%s2178_s3 + $0x48] sm:$0xff]  ;;  %v414_v43 = vld [vmem:[%s2178_s3 + $0x50] sm:$0xff]  ;;  %v415_v48 = vld [vmem:[%s2178_s3 + $0x58] sm:$0xff]  ;;  %s2235_s14 = scalar_lea.vmem %s2223_s19, %s2205_s11  ;;  %s2251_s15 = scalar_lea.vmem %s2223_s19, %s2468_s12 }
  0x2b   : > { %v453_v33 = vadd.f32 %v2173_v11, %v430_v22  ;;  %v454_v34 = vadd.f32 %v2173_v11, %v431_v24  ;;  %v455_v35 = vadd.f32 %v2173_v11, %v432_v25  ;;  %v434_v36 = vmul.f32 %v2163_v10, %v411_v27  ;;  %v416_v61 = vld [vmem:[%s2178_s3 + $0x60] sm:$0xff]  ;;  %v417_v62 = vld [vmem:[%s2178_s3 + $0x68] sm:$0xff]  ;;  %v1869_v9 = vld [vmem:[%s2147_s29 + $0x30] sm:$0xff]   ;;  %s2326_s19 = scalar_lea.vmem [#allocation2], %s1478_s18  ;;  %s1572_s13 = sshll.u32 %s1358_s21, 7 }
  0x2c   : > { %1682 = vmatpush3.bf16.msra.mxu0 %v1868_v12  ;;  %v466_v39 = vmax.f32 %v450_v28, 0.0  ;;  %v467_v40 = vmax.f32 %v451_v29, 0.0  ;;  %v468_v41 = vmax.f32 %v452_v30, 0.0  ;;  %v456_v42 = vadd.f32 %v2173_v11, %v433_v31  ;;  %v418_v16 = vld [vmem:[%s2178_s3 + $0x70] sm:$0xff]  ;;  %v419_v21 = vld [vmem:[%s2178_s3 + $0x78] sm:$0xff]  ;;  %s1361_s28 = sshll.u32 %s2326_s19, 4  ;;  %s2369_s17 = scalar_lea.hbm %s2445_s9, %s1572_s13  ;;  %s2374_s28 = int_to_ptr.vmem [resolvable:$true] %s1361_s28 }
  0x2d   : > { %v469_v44 = vmax.f32 %v453_v33, 0.0  ;;  %v470_v45 = vmax.f32 %v454_v34, 0.0  ;;  %v471_v46 = vmax.f32 %v455_v35, 0.0  ;;  %v457_v47 = vadd.f32 %v2173_v11, %v434_v36  ;;  %1683 = vmatprep.subr.bf16.mxu0 %v1872_v4  ;;  %v1870_v34 = vld [vmem:[%s2147_s29 + $0x38] sm:$0xff]   ;;  %v1873_v35 = vld [vmem:[%s2235_s14] sm:$0xff]   ;;  %s2384_s12 = scalar_lea.sflag [#allocation3], %s378_s27 }
  0x2e   : > { %v482_v49 = vmin.f32 %v466_v39, 6.0  ;;  %v483_v50 = vmin.f32 %v467_v40, 6.0  ;;  %v484_v51 = vmin.f32 %v468_v41, 6.0  ;;  %v472_v52 = vmax.f32 %v456_v42, 0.0  ;;  %s1985_s25 = smov [#allocation2]  }
  0x2f   : > { %1668 = vmatmul.mubr.msk.bf16.gmra.mrb[4].mxu0 %vm747_vm1, %v1864_v23  ;;  %v485_v53 = vmin.f32 %v469_v44, 6.0  ;;  %v486_v54 = vmin.f32 %v470_v45, 6.0  ;;  %v487_v55 = vmin.f32 %v471_v46, 6.0  ;;  %v473_v56 = vmax.f32 %v457_v47, 0.0  ;;  %v1871_v23 = vld [vmem:[%s2443_s7 + $0x10] sm:$0xff]   ;;  %v1874_v44 = vld [vmem:[%s2235_s14 + $0x8] sm:$0xff]  }
  0x30   : > { %1671 = vmatprep.mubr.msk.bf16.mxu0 %vm747_vm1, %v1866_v32  ;;  %v498_v58 = vpack.c.bf16 %v483_v50, %v482_v49  ;;  %v435_v59 = vmul.f32 %v2163_v10, %v412_v37  ;;  %v436_v60 = vmul.f32 %v2163_v10, %v413_v38  ;;  %v488_v1 = vmin.f32 %v472_v52, 6.0  ;;  %1684 = vmatpush3.bf16.msra.mxu0 %v1872_v4  ;;  %v1877_v45 = vld [vmem:[%s2235_s14 + $0x10] sm:$0xff]   ;;  %v1878_v49 = vld [vmem:[%s2235_s14 + $0x18] sm:$0xff]   ;;  %v1881_v50 = vld [vmem:[%s2235_s14 + $0x20] sm:$0xff]   ;;  %s1893_s6 = sshll.u32 %s1985_s25, 4  ;;  %s1894_s6 = int_to_ptr.vmem [resolvable:$false] %s1893_s6 }
  0x31   : > { %v499_v63 = vpack.c.bf16 %v485_v53, %v484_v51  ;;  %v500_v0 = vpack.c.bf16 %v487_v55, %v486_v54  ;;  %v437_v3 = vmul.f32 %v2163_v10, %v414_v43  ;;  %v438_v8 = vmul.f32 %v2163_v10, %v415_v48  ;;  %v1875_v48 = vld [vmem:[%s2251_s15] sm:$0xff]   ;;  %v1876_v51 = vld [vmem:[%s2251_s15 + $0x8] sm:$0xff]   ;;  %v1879_v52 = vld [vmem:[%s2251_s15 + $0x10] sm:$0xff]   ;;  %s1895_s29 = scalar_lea.vmem %s1894_s6, 4096  ;;  %p1896_p4 = scmp.lt.s32.totalorder %s2374_s28, %s1894_s6 }
  0x32   : > { %1619 = vmatprep.mubr.msk.bf16.mxu1 %vm514_vm2, %v498_v58  ;;  %v458_v6 = vadd.f32 %v2173_v11, %v435_v59  ;;  %v459_v7 = vadd.f32 %v2173_v11, %v436_v60  ;;  %v439_v12 = vmul.f32 %v2163_v10, %v416_v61  ;;  %v489_v13 = vmin.f32 %v473_v56, 6.0  ;;  %v1882_v53 = vld [vmem:[%s2235_s14 + $0x28] sm:$0xff]   ;;  %v1885_v54 = vld [vmem:[%s2235_s14 + $0x30] sm:$0xff]   ;;  %v1880_v55 = vld [vmem:[%s2251_s15 + $0x18] sm:$0xff]  }
  0x33   : > { %1620 = vmatmul.mubr.msk.bf16.vlgmr.msra.gmra.mrb[0].mxu1 %vm514_vm2, %v499_v63  ;;  %v460_v14 = vadd.f32 %v2173_v11, %v437_v3  ;;  %v440_v15 = vmul.f32 %v2163_v10, %v417_v62  ;;  %v461_v19 = vadd.f32 %v2173_v11, %v438_v8  ;;  %v441_v27 = vmul.f32 %v2163_v10, %v418_v16  ;;  %v1883_v56 = vld [vmem:[%s2251_s15 + $0x20] sm:$0xff]   ;;  %v1884_v58 = vld [vmem:[%s2251_s15 + $0x28] sm:$0xff]   ;;  %v1887_v59 = vld [vmem:[%s2251_s15 + $0x30] sm:$0xff]  }
  0x34   : > { %1636 = vmatpush3.bf16.msra.mxu1 %v2143_v5  ;;  %1623 = vmatprep.mubr.msk.bf16.mxu1 %vm514_vm2, %v500_v0  ;;  %v474_v17 = vmax.f32 %v458_v6, 0.0  ;;  %v475_v18 = vmax.f32 %v459_v7, 0.0  ;;  %v462_v20 = vadd.f32 %v2173_v11, %v439_v12  ;;  %v501_v28 = vpack.c.bf16 %v489_v13, %v488_v1  ;;  %v1888_v60 = vld [vmem:[%s2251_s15 + $0x38] sm:$0xff]   ;;  %v1487_v1 = vld [vmem:[%s2440_s4] ss:$0 sm:$0xff]  ;;  %s1889_s15 = scalar_lea.vmem %s2374_s28, 2048 }
  0x35   : > { %1637 = vmatprep.subr.bf16.mxu1 %v1865_v57  ;;  %v476_v22 = vmax.f32 %v460_v14, 0.0  ;;  %v463_v5 = vadd.f32 %v2173_v11, %v440_v15  ;;  %v477_v26 = vmax.f32 %v461_v19, 0.0  ;;  %v442_v31 = vmul.f32 %v2163_v10, %v419_v21  ;;  %p1890_p0 = scmp.ne.s32.totalorder %s2374_s28, %s1889_s15  ;;  %p1897_p5 = scmp.lt.s32.totalorder %s1895_s29, %s1889_s15 }
  0x36   : > { %v490_v24 = vmin.f32 %v474_v17, 6.0  ;;  %v491_v25 = vmin.f32 %v475_v18, 6.0  ;;  %v478_v29 = vmax.f32 %v462_v20, 0.0  ;;  %v464_v36 = vadd.f32 %v2173_v11, %v441_v27 }
  0x37   : > { %1672 = vmatmul.mubr.msk.bf16.gmra.mrb[8].mxu0 %vm747_vm1, %v1867_v2  ;;  %v479_v30 = vmax.f32 %v463_v5, 0.0  ;;  %v492_v33 = vmin.f32 %v476_v22, 6.0  ;;  %v493_v37 = vmin.f32 %v477_v26, 6.0  ;;  %v465_v40 = vadd.f32 %v2173_v11, %v442_v31  ;;  %v1496_v2 = vld [vmem:[%s2444_s8] ss:$0 sm:$0xff]  ;;  %p1891_p1 = pnand %p1890_p0, %p2089_p3  ;;  %p1898_p6 = por %p1897_p5, %p1896_p4 }
  0x38   : > { %1675 = vmatprep.mubr.msk.bf16.mxu0 %vm747_vm1, %v1869_v9  ;;  %1638 = vmatpush3.bf16.msra.mxu1 %v1865_v57  ;;  %v502_v32 = vpack.c.bf16 %v491_v25, %v490_v24  ;;  %v494_v38 = vmin.f32 %v478_v29, 6.0  ;;  %v480_v41 = vmax.f32 %v464_v36, 0.0  ;;  %v1886_v57 = vld [vmem:[%s2235_s14 + $0x38] sm:$0xff]   ;;  %v2318_v7 = vadd.f32 %v1496_v2, %v1487_v1 }
  0x39   : > { %1639 = vmatprep.subr.bf16.mxu1 %v1871_v23  ;;  %v495_v39 = vmin.f32 %v479_v30, 6.0  ;;  %v503_v10 = vpack.c.bf16 %v493_v37, %v492_v33  ;;  %v481_v42 = vmax.f32 %v465_v40, 0.0  ;;  %p1892_p2 = pneg %p1891_p1 }
  0x3a   : > { %v496_v11 = vmin.f32 %v480_v41, 6.0 }
  0x3b   : > { %1624 = vmatmul.mubr.msk.bf16.gmra.mrb[4].mxu1 %vm514_vm2, %v501_v28  ;;  %v504_v43 = vpack.c.bf16 %v495_v39, %v494_v38  ;;  %v497_v46 = vmin.f32 %v481_v42, 6.0  ;;  %p1899_p7 = pnand %p1898_p6, %p1892_p2 }
  0x3c   : > { %1627 = vmatprep.mubr.msk.bf16.mxu1 %vm514_vm2, %v502_v32  ;;  %1640 = vmatpush3.bf16.msra.mxu1 %v1871_v23 }
  0x3d   : > { %v505_v47 = vpack.c.bf16 %v497_v46, %v496_v11 }
  0x3f   : > { %1676 = vmatmul.mubr.msk.bf16.gmra.mrb[12].mxu0 %vm747_vm1, %v1870_v34 }
  0x40   : > { %1685 = vmatprep.mubr.msk.bf16.mxu0 %vm747_vm1, %v1873_v35 }
  0x43   : > { %1628 = vmatmul.mubr.msk.bf16.gmra.mrb[8].mxu1 %vm514_vm2, %v503_v10 }
  0x44   : > { %1631 = vmatprep.mubr.msk.bf16.mxu1 %vm514_vm2, %v504_v43 }
  0x47   : > { %1686 = vmatmul.mubr.msk.bf16.vlgmr.msra.gmra.mrb[0].mxu0 %vm747_vm1, %v1874_v44 }
  0x48   : > { %1689 = vmatprep.mubr.msk.bf16.mxu0 %vm747_vm1, %v1877_v45 }
  0x4b   : > { %1632 = vmatmul.mubr.msk.bf16.gmra.mrb[12].mxu1 %vm514_vm2, %v505_v47 }
  0x4c   : > { %1641 = vmatprep.mubr.msk.bf16.mxu1 %vm747_vm1, %v1875_v48 }
  0x4f   : > { %1690 = vmatmul.mubr.msk.bf16.gmra.mrb[4].mxu0 %vm747_vm1, %v1878_v49 }
  0x50   : > { %1693 = vmatprep.mubr.msk.bf16.mxu0 %vm747_vm1, %v1881_v50 }
  0x53   : > { %1642 = vmatmul.mubr.msk.bf16.vlgmr.msra.gmra.mrb[0].mxu1 %vm747_vm1, %v1876_v51 }
  0x54   : > { %1645 = vmatprep.mubr.msk.bf16.mxu1 %vm747_vm1, %v1879_v52 }
  0x57   : > { %1694 = vmatmul.mubr.msk.bf16.gmra.mrb[8].mxu0 %vm747_vm1, %v1882_v53 }
  0x58   : > { %1697 = vmatprep.mubr.msk.bf16.mxu0 %vm747_vm1, %v1885_v54 }
  0x5b   : > { %1646 = vmatmul.mubr.msk.bf16.gmra.mrb[4].mxu1 %vm747_vm1, %v1880_v55 }
  0x5c   : > { %1649 = vmatprep.mubr.msk.bf16.mxu1 %vm747_vm1, %v1883_v56 }
  0x5f   : > { %1698 = vmatmul.mubr.msk.bf16.gmra.mrb[12].mxu0 %vm747_vm1, %v1886_v57 }
  0x63   : > { %1650 = vmatmul.mubr.msk.bf16.gmra.mrb[8].mxu1 %vm747_vm1, %v1884_v58 }
  0x64   : > { %1653 = vmatprep.mubr.msk.bf16.mxu1 %vm747_vm1, %v1887_v59 }
  0x6b   : > { %1654 = vmatmul.mubr.msk.bf16.gmra.mrb[12].mxu1 %vm747_vm1, %v1888_v60 }
 0x11a   : > { %v1687_v61 = vpop.f32.mrb[0].mxu0 }
 0x11b   : > { %v1249_v62 = vpop.f32.mrb[1].mxu0 }
 0x11c   : > { %v1688_v63 = vpop.f32.mrb[2].mxu0 }
 0x11d   : > { %v1252_v0 = vpop.f32.mrb[3].mxu0 }
 0x122   : > { %v1691_v3 = vpop.f32.mrb[4].mxu0 }
 0x123   : > { %v1265_v4 = vpop.f32.mrb[5].mxu0 }
 0x124   : > { %v1692_v6 = vpop.f32.mrb[6].mxu0 }
 0x125   : > { %v1268_v8 = vpop.f32.mrb[7].mxu0 }
 0x126   : > { %v1643_v9 = vpop.f32.mrb[0].mxu1 }
 0x127   : > { %v1702_v12 = vadd.f32 %v2318_v7, %v1643_v9  ;;  %v806_v13 = vpop.f32.mrb[1].mxu1 }
 0x128   : > { %v1705_v14 = vadd.f32 %v2318_v7, %v806_v13  ;;  %v1644_v15 = vpop.f32.mrb[2].mxu1 }
 0x129   : > { %v1703_v17 = vadd.f32 %v1702_v12, %v1687_v61  ;;  %v1708_v18 = vadd.f32 %v2318_v7, %v1644_v15  ;;  %v809_v19 = vpop.f32.mrb[3].mxu1 }
 0x12a   : > { %v1695_v16 = vpop.f32.mrb[8].mxu0  ;;  %v1706_v21 = vadd.f32 %v1705_v14, %v1249_v62  ;;  %v1711_v22 = vadd.f32 %v2318_v7, %v809_v19 }
 0x12b   : > { %v1281_v20 = vpop.f32.mrb[9].mxu0  ;;  %1331 = vst.msk [vmem:[%s2326_s19 + $0x10] sm:$0xff] %vm1328_vm3, %v1703_v17  ;;  %v1709_v5 = vadd.f32 %v1708_v18, %v1688_v63 }
 0x12c   : > { %v1696_v23 = vpop.f32.mrb[10].mxu0  ;;  %1329 = vst.msk [vmem:[%s2326_s19] sm:$0xff] %vm1328_vm3, %v1706_v21  ;;  %v1712_v25 = vadd.f32 %v1711_v22, %v1252_v0 }
 0x12d   : > { %v1284_v24 = vpop.f32.mrb[11].mxu0  ;;  %1332 = vst.msk [vmem:[%s2326_s19 + $0x18] sm:$0xff] %vm1328_vm3, %v1709_v5 }
 0x12e   : > { %1330 = vst.msk [vmem:[%s2326_s19 + $0x8] sm:$0xff] %vm1328_vm3, %v1712_v25  ;;  %v1647_v26 = vpop.f32.mrb[4].mxu1 }
 0x12f   : > { %v1714_v27 = vadd.f32 %v2318_v7, %v1647_v26  ;;  %v822_v28 = vpop.f32.mrb[5].mxu1 }
 0x130   : > { %v1717_v29 = vadd.f32 %v2318_v7, %v822_v28  ;;  %v1648_v30 = vpop.f32.mrb[6].mxu1 }
 0x131   : > { %v1715_v32 = vadd.f32 %v1714_v27, %v1691_v3  ;;  %v1720_v33 = vadd.f32 %v2318_v7, %v1648_v30  ;;  %v825_v34 = vpop.f32.mrb[7].mxu1 }
 0x132   : > { %v1699_v31 = vpop.f32.mrb[12].mxu0  ;;  %v1718_v36 = vadd.f32 %v1717_v29, %v1265_v4  ;;  %v1723_v37 = vadd.f32 %v2318_v7, %v825_v34 }
 0x133   : > { %v1297_v35 = vpop.f32.mrb[13].mxu0  ;;  %1335 = vst.msk [vmem:[%s2326_s19 + $0x30] sm:$0xff] %vm1328_vm3, %v1715_v32  ;;  %v1721_v39 = vadd.f32 %v1720_v33, %v1692_v6 }
 0x134   : > { %v1700_v38 = vpop.f32.mrb[14].mxu0  ;;  %1333 = vst.msk [vmem:[%s2326_s19 + $0x20] sm:$0xff] %vm1328_vm3, %v1718_v36  ;;  %v1724_v10 = vadd.f32 %v1723_v37, %v1268_v8 }
 0x135   : > { %v1300_v40 = vpop.f32.mrb[15].mxu0  ;;  %1336 = vst.msk [vmem:[%s2326_s19 + $0x38] sm:$0xff] %vm1328_vm3, %v1721_v39 }
 0x136   : > { %1334 = vst.msk [vmem:[%s2326_s19 + $0x28] sm:$0xff] %vm1328_vm3, %v1724_v10  ;;  %v1651_v41 = vpop.f32.mrb[8].mxu1 }
 0x137   : > { %v1726_v42 = vadd.f32 %v2318_v7, %v1651_v41  ;;  %v838_v43 = vpop.f32.mrb[9].mxu1 }
 0x138   : > { %v1729_v44 = vadd.f32 %v2318_v7, %v838_v43  ;;  %v1652_v45 = vpop.f32.mrb[10].mxu1 }
 0x139   : > { %v1727_v11 = vadd.f32 %v1726_v42, %v1695_v16  ;;  %v1732_v46 = vadd.f32 %v2318_v7, %v1652_v45  ;;  %v841_v47 = vpop.f32.mrb[11].mxu1 }
 0x13a   : > { %v1730_v48 = vadd.f32 %v1729_v44, %v1281_v20  ;;  %v1735_v49 = vadd.f32 %v2318_v7, %v841_v47 }
 0x13b   : > { %1339 = vst.msk [vmem:[%s2326_s19 + $0x50] sm:$0xff] %vm1328_vm3, %v1727_v11  ;;  %v1733_v50 = vadd.f32 %v1732_v46, %v1696_v23 }
 0x13c   : > { %1337 = vst.msk [vmem:[%s2326_s19 + $0x40] sm:$0xff] %vm1328_vm3, %v1730_v48  ;;  %v1736_v51 = vadd.f32 %v1735_v49, %v1284_v24 }
 0x13d   : > { %1340 = vst.msk [vmem:[%s2326_s19 + $0x58] sm:$0xff] %vm1328_vm3, %v1733_v50 }
 0x13e   : > { %1338 = vst.msk [vmem:[%s2326_s19 + $0x48] sm:$0xff] %vm1328_vm3, %v1736_v51  ;;  %v1655_v52 = vpop.f32.mrb[12].mxu1 }
 0x13f   : > { %v1738_v53 = vadd.f32 %v2318_v7, %v1655_v52  ;;  %v854_v54 = vpop.f32.mrb[13].mxu1 }
 0x140   : > { %v1741_v55 = vadd.f32 %v2318_v7, %v854_v54  ;;  %v1656_v56 = vpop.f32.mrb[14].mxu1 }
 0x141   : > { %v1739_v57 = vadd.f32 %v1738_v53, %v1699_v31  ;;  %v1744_v58 = vadd.f32 %v2318_v7, %v1656_v56  ;;  %v857_v59 = vpop.f32.mrb[15].mxu1 }
 0x142   : > { %v1742_v60 = vadd.f32 %v1741_v55, %v1297_v35  ;;  %v1747_v61 = vadd.f32 %v2318_v7, %v857_v59 }
 0x143   : > { %1343 = vst.msk [vmem:[%s2326_s19 + $0x70] sm:$0xff] %vm1328_vm3, %v1739_v57  ;;  %v1745_v62 = vadd.f32 %v1744_v58, %v1700_v38 }
 0x144   : > { %1341 = vst.msk [vmem:[%s2326_s19 + $0x60] sm:$0xff] %vm1328_vm3, %v1742_v60  ;;  %v1748_v63 = vadd.f32 %v1747_v61, %v1300_v40 }
 0x145   : > { %1344 = vst.msk [vmem:[%s2326_s19 + $0x78] sm:$0xff] %vm1328_vm3, %v1745_v62 }
 0x146   : > { %1342 = vst.msk [vmem:[%s2326_s19 + $0x68] sm:$0xff] %vm1328_vm3, %v1748_v63 }
 0x147   : > { %1902 = shalt.err (!%p1899_p7)
}
 0x148   : > { %s1903_s3 = scalar_lea.hbm %s2369_s17, 2048  ;;  %s1907_s27 = scalar_lea.hbm %s2445_s9, 8192 }
 0x149   : > { %p1904_p9 = scmp.ne.s32.totalorder %s2369_s17, %s1903_s3  ;;  %p1908_p12 = scmp.lt.u32.totalorder %s2369_s17, %s2445_s9 }
 0x14a   : > { %p1909_p13 = scmp.lt.u32.totalorder %s1907_s27, %s1903_s3  ;;  %p1911_p1 = scmp.lt.u32.totalorder %s1903_s3, %s2369_s17 }
 0x14b   : > { %p1905_p10 = pnand %p1904_p9, %p2089_p3 }
 0x14c   : > { %p1910_p0 = por %p1909_p13, %p1908_p12 }
 0x14d   : > { %p1906_p11 = pneg %p1905_p10 }
 0x14e   : > { %p1912_p2 = por %p1911_p1, %p1910_p0 }
 0x150   : > { %p1913_p4 = pnand %p1912_p2, %p1906_p11 }
 0x152   : > { %1916 = shalt.err (!%p1913_p4)
}
 0x153   : > { %s1986_s24 = smov 128   ;;  %s1987_s21 = smov 8  }
 0x154   : > { %1783 = dma.vmem_to_hbm [thread:$0]  (%p2089_p3), %s2374_s28, 2048, %s2369_s17, %s2384_s12, %s1986_s24, %s1986_s24, %s1987_s21  }
 0x155 PF: > { %p1789_p5 = scmp.ge.s32.totalorder %s1983_s16, 2  ;;  %s1376_s13 = sand.u32 1, %s1955_s30  }
 0x156   : > { %s1377_s14 = scalar_lea.sflag [#allocation3], %s1376_s13 }
 0x157   : > { %p1786_p6 = pnand %p1789_p5, %p2098_p8 }
 0x159   : > { %1950 = dma.done.wait (!%p1786_p6), %s1377_s14, 2048  }
 0x15a   : > { %1952 = vsyncadd (!%p1786_p6), %s1377_s14, 4294965248  ;;  %s22_s16 = sadd.s32 1, %s1983_s16   ;;  %s2469_s26 = sld [smem:[#allocation5_spill]] }
 0x15b   : > { %p19_p7 = scmp.ge.s32.totalorder %s22_s16, 6   ;;  %s2470_s11 = sld [smem:[#allocation10_spill]] }
 0x15c   : > { %s2471_s12 = sld [smem:[#allocation6_spill]]  ;;  %s2472_s13 = sld [smem:[#allocation7_spill]] }
 0x15d   : > { %s2473_s14 = sld [smem:[#allocation8_spill]]  ;;  %s2474_s15 = sld [smem:[#allocation9_spill]] }
 0x15e   : > { %s2475_s30 = smov %s1959_s10  ;;  %21 = sbr.rel (!%p19_p7) target bundleno = 8 (0x8), region = 102 }
 0x160   : > { %s2476_s10 = smov %s2469_s26 }
 0x165   :  { %1382 = vsyncpa [#allocation3], 1 }
 0x166   :  { %1384 = vsyncpa [#allocation3 + $0x1], 1 }

</bundles_post_ra>
